<compile_context>
chip_gen: v7x
topology: tpu7x:2x2x1
jax: 0.10.0
libtpu: 0.0.40
codegen_flags: <defaults>
</compile_context>

<pallas_src>
import jax
import jax.numpy as jnp
from jax.experimental import pallas as pl
from jax.experimental.pallas import tpu as pltpu

NUM_JOINTS = 24
D = H = W = 8                 # resolution of the skinning-weight volume ws
HW = H * W
DHW = D * H * W
TILE_P = 1024                 # points per kernel tile (points live on lanes)

# Standard SMPL kinematic tree (24 joints).
SMPL_PARENTS = (-1, 0, 0, 0, 1, 2, 3, 4, 5, 6, 7, 8, 9, 9, 9,
                12, 13, 14, 16, 17, 18, 19, 20, 21)


# ----------------------------------------------------------------------------
# Pallas kernel: trilinear sample of the A-folded volume + apply transform
# ----------------------------------------------------------------------------
def lbs_kernel(coef_ref, trans_ref, ps_ref, volA_ref, out_ref):
    # coef_ref : SMEM (6,)   [sx, sy, sz, ox, oy, oz]
    # trans_ref: SMEM (B*3,) root translations, flattened
    # ps_ref   : VMEM (1, 3, TILE_P)        points, xyz on sublanes, P on lanes
    # volA_ref : VMEM (1, D, 16, H*W)       A-folded volume, split by depth
    # out_ref  : VMEM (1, 3, TILE_P)
    b = pl.program_id(0)

    ps_t = ps_ref[0]                       # (3, TILE_P)
    px = ps_t[0:1, :]                      # (1, TILE_P)
    py = ps_t[1:2, :]
    pz = ps_t[2:3, :]

    # Continuous voxel index per axis (grid_sample, align_corners=False):
    #   i = ((2*(p - b_min)/(b_max - b_min) - 1 + 1) * size - 1) / 2
    #     = p * scale + offset          (scale/offset precomputed, SMEM scalars)
    ix = px * coef_ref[0] + coef_ref[3]    # along W (x)
    iy = py * coef_ref[1] + coef_ref[4]    # along H (y)
    iz = pz * coef_ref[2] + coef_ref[5]    # along D (z)

    # Depth tent factor fd[d, p] = max(0, 1 - |d - iz_p|), shape (D, TILE_P).
    # Out-of-range corners never fall inside the tent -> zeros-padding for free.
    d_idx = jax.lax.broadcasted_iota(jnp.int32, (D, TILE_P), 0).astype(jnp.float32)
    fd = jnp.maximum(0.0, 1.0 - jnp.abs(d_idx - iz))

    # Combined h/w tent plane (H*W, TILE_P); voxel (h, w) indices generated
    # in-register (W is a power of two -> shift / mask, no div/mod).
    k_hw = jax.lax.broadcasted_iota(jnp.int32, (HW, TILE_P), 0)
    h_idx = (k_hw >> 3).astype(jnp.float32)          # k // W
    w_idx = (k_hw & (W - 1)).astype(jnp.float32)     # k %  W
    w_hw = (jnp.maximum(0.0, 1.0 - jnp.abs(h_idx - iy)) *
            jnp.maximum(0.0, 1.0 - jnp.abs(w_idx - ix)))     # (64, TILE_P)

    # Blended (already A-folded) transform, points on lanes:
    #   acc[m, p] = sum_d fd[d, p] * (volA_d[d] @ w_hw)[m, p]
    # (fd factors out of the h/w contraction, so scaling the (16, TILE_P)
    #  result is exact and much cheaper than scaling the weight plane.)
    acc = fd[0:1, :] * jnp.dot(volA_ref[0, 0], w_hw,
                               preferred_element_type=jnp.float32)
    for d in range(1, D):
        td = jnp.dot(volA_ref[0, d], w_hw, preferred_element_type=jnp.float32)
        acc = acc + fd[d:d + 1, :] * td                      # (16, TILE_P)

    tx = trans_ref[3 * b + 0]
    ty = trans_ref[3 * b + 1]
    tz = trans_ref[3 * b + 2]

    # Apply the blended 4x4 to [p; 1] (xyz rows only); direct row stores.
    out_ref[0, 0:1, :] = (acc[0:1, :] * px + acc[1:2, :] * py
                          + acc[2:3, :] * pz + acc[3:4, :] + tx)
    out_ref[0, 1:2, :] = (acc[4:5, :] * px + acc[5:6, :] * py
                          + acc[6:7, :] * pz + acc[7:8, :] + ty)
    out_ref[0, 2:3, :] = (acc[8:9, :] * px + acc[9:10, :] * py
                          + acc[10:11, :] * pz + acc[11:12, :] + tz)


# ----------------------------------------------------------------------------
# Plain-JAX glue: rodrigues + kinematic chain (24 joints, tiny compute)
# ----------------------------------------------------------------------------
def batch_rodrigues(rot_vecs, eps=1e-8):
    # NOTE: eps is added INSIDE the vector before the norm (SMPL's quirk,
    # matches the original torch batch_rodrigues) - intentional, do not "fix".
    n = rot_vecs.shape[0]
    angle = jnp.linalg.norm(rot_vecs + eps, axis=1, keepdims=True)      # (N, 1)
    rot_dir = rot_vecs / angle
    cos = jnp.cos(angle)[:, None, :]                                    # (N, 1, 1)
    sin = jnp.sin(angle)[:, None, :]
    rx, ry, rz = jnp.split(rot_dir, 3, axis=1)
    zeros = jnp.zeros((n, 1), dtype=rot_vecs.dtype)
    K = jnp.concatenate(
        [zeros, -rz, ry, rz, zeros, -rx, -ry, rx, zeros], axis=1
    ).reshape(n, 3, 3)
    ident = jnp.eye(3, dtype=rot_vecs.dtype)[None]
    return ident + sin * K + (1.0 - cos) * jnp.einsum('nij,njk->nik', K, K)


def rigid_transform(poses_mat, Js, parents=SMPL_PARENTS):
    # poses_mat: (B, 24, 3, 3); Js: (24, 3).  init_pose is None path of LBSkinner.
    B = poses_mat.shape[0]
    Jb = jnp.broadcast_to(Js[None, :, :, None], (B, NUM_JOINTS, 3, 1))

    def make_A(R, t):
        R_homo = jnp.concatenate([R, jnp.zeros((B, 1, 3), R.dtype)], axis=1)  # (B,4,3)
        t_homo = jnp.concatenate([t, jnp.ones((B, 1, 1), R.dtype)], axis=1)   # (B,4,1)
        return jnp.concatenate([R_homo, t_homo], axis=2)                      # (B,4,4)

    results = [make_A(poses_mat[:, 0], Jb[:, 0])]
    for i in range(1, len(parents)):
        j_here = Jb[:, i] - Jb[:, parents[i]]
        A_here = make_A(poses_mat[:, i], j_here)
        results.append(jnp.matmul(results[parents[i]], A_here))
    results = jnp.stack(results, axis=1)                                      # (B,24,4,4)

    # A = results - pad_left3(results @ [J; 0])   (init_pose is None branch)
    Js_w0 = jnp.concatenate([Jb, jnp.zeros((B, NUM_JOINTS, 1, 1), Jb.dtype)], axis=2)
    init_bone = jnp.matmul(results, Js_w0)                                    # (B,24,4,1)
    init_bone = jnp.concatenate(
        [jnp.zeros((B, NUM_JOINTS, 4, 3), init_bone.dtype), init_bone], axis=3)
    return results - init_bone                                                # (B,24,4,4)


@jax.jit
def lbs_skinner_forward(ps, poses, trans, ws, Js, b_min, b_max):
    # ps: (B, P, 3); poses: (B, 24, 3) axis-angle; trans: (B, 3)
    # ws: (24, D, H, W); Js: (24, 3); b_min/b_max: (3,)
    B, P, _ = ps.shape

    poses_mat = batch_rodrigues(poses.reshape(-1, 3)).reshape(B, NUM_JOINTS, 3, 3)
    A = rigid_transform(poses_mat, Js)                        # (B, 24, 4, 4)
    A_flat = A.reshape(B, NUM_JOINTS, 16)

    # Fold the joint transforms into the volume, split by depth:
    #   volA_d[b, d, m, h*W+w] = sum_k ws[k,d,h,w] * A_flat[b,k,m]
    ws_d = ws.reshape(NUM_JOINTS, D, HW)                      # (24, D, 64)
    volA_d = jnp.einsum('kdv,bkm->bdmv', ws_d, A_flat)        # (B, D, 16, 64)

    # Normalization coefficients: continuous index i = p * scale + offset.
    size = jnp.array([float(W), float(H), float(D)], jnp.float32)   # x->W, y->H, z->D
    scale = size / (b_max - b_min)
    offset = -b_min * scale - 0.5
    coef = jnp.concatenate([scale, offset]).astype(jnp.float32)     # (6,) -> SMEM

    trans_flat = trans.reshape(-1).astype(jnp.float32)              # (B*3,) -> SMEM

    # Lane-dense point / output layout: (B, 3, P), padded to a TILE_P multiple.
    # (Callers able to supply (B, 3, P) directly would skip these HBM passes.)
    P_pad = ((P + TILE_P - 1) // TILE_P) * TILE_P
    ps_t = jnp.transpose(ps, (0, 2, 1))                       # (B, 3, P)
    if P_pad != P:
        ps_t = jnp.pad(ps_t, ((0, 0), (0, 0), (0, P_pad - P)))

    out_t = pl.pallas_call(
        lbs_kernel,
        out_shape=jax.ShapeDtypeStruct((B, 3, P_pad), jnp.float32),
        grid_spec=pltpu.PrefetchScalarGridSpec(
            num_scalar_prefetch=2,                            # coef, trans_flat
            grid=(B, P_pad // TILE_P),
            in_specs=[
                pl.BlockSpec((1, 3, TILE_P), lambda b, j, c, t: (b, 0, j)),   # points
                pl.BlockSpec((1, D, 16, HW), lambda b, j, c, t: (b, 0, 0, 0)),  # volA_d
            ],
            out_specs=pl.BlockSpec((1, 3, TILE_P), lambda b, j, c, t: (b, 0, j)),
        ),
        compiler_params=pltpu.CompilerParams(
            dimension_semantics=("parallel", "parallel")),
    )(coef, trans_flat, ps_t, volA_d)

    return jnp.transpose(out_t, (0, 2, 1))[:, :P, :]          # (B, P, 3)


# ----------------------------------------------------------------------------
# Pure-JAX reference (gather-based trilinear sample) for verification
# ----------------------------------------------------------------------------
def ref_grid_sample(vol_cdhw, nps):
    def unnorm(c, size):
        i = ((c + 1.0) * size - 1.0) * 0.5
        i0 = jnp.floor(i)
        return i0.astype(jnp.int32), i - i0

    ix0, fx = unnorm(nps[:, 0], W)
    iy0, fy = unnorm(nps[:, 1], H)
    iz0, fz = unnorm(nps[:, 2], D)

    def fetch(iz, iy, ix):
        valid = ((iz >= 0) & (iz < D) & (iy >= 0) & (iy < H)
                 & (ix >= 0) & (ix < W))
        izc = jnp.clip(iz, 0, D - 1)
        iyc = jnp.clip(iy, 0, H - 1)
        ixc = jnp.clip(ix, 0, W - 1)
        vals = vol_cdhw[:, izc, iyc, ixc]           # (24, N)
        return jnp.where(valid[None, :], vals, 0.0)

    out = 0.0
    for dz in (0, 1):
        for dy in (0, 1):
            for dx in (0, 1):
                wgt = ((fz if dz else 1.0 - fz)
                       * (fy if dy else 1.0 - fy)
                       * (fx if dx else 1.0 - fx))
                out = out + wgt[None, :] * fetch(iz0 + dz, iy0 + dy, ix0 + dx)
    return out.T                                     # (N, 24)


def ref_forward(ps, poses, trans, ws, Js, b_min, b_max):
    B, P, _ = ps.shape
    poses_mat = batch_rodrigues(poses.reshape(-1, 3)).reshape(B, NUM_JOINTS, 3, 3)
    A = rigid_transform(poses_mat, Js)
    nps = 2.0 * (ps.reshape(-1, 3) - b_min[None, :]) / (b_max - b_min)[None, :] - 1.0
    ps_ws = ref_grid_sample(ws, nps).reshape(B, P, NUM_JOINTS)
    T = jnp.matmul(ps_ws, A.reshape(B, NUM_JOINTS, 16)).reshape(B, P, 4, 4)
    ph = jnp.concatenate([ps, jnp.ones((B, P, 1), ps.dtype)], axis=2)
    v = jnp.matmul(T, ph[..., None])[:, :, :3, 0] + trans[:, None, :]
    return v


# TODO(synk): the `batch_inds is not None` scatter path, the `ps is a list`
# (tps != ps) path and the `init_pose is not None` branch of LBSkinner.forward
# are not implemented; only the default batched path (batch_inds=None,
# init_pose=None) is covered.  GridSamplerMine3d is assumed to follow
# F.grid_sample trilinear / align_corners=False / zeros-padding semantics.

if __name__ == "__main__":
    key = jax.random.PRNGKey(0)
    kw, kj, kp, kpo, kt = jax.random.split(key, 5)

    B, P = 2, 2000                      # P not a multiple of TILE_P -> pad path
    b_min = jnp.array([-1.2, -1.5, -0.8], dtype=jnp.float32)
    b_max = jnp.array([1.2, 0.9, 0.8], dtype=jnp.float32)

    # Skinning-weight volume (soft weights over 24 joints per voxel).
    ws = jax.nn.softmax(
        2.0 * jax.random.normal(kw, (NUM_JOINTS, D, H, W), dtype=jnp.float32), axis=0)
    Js = 0.3 * jax.random.normal(kj, (NUM_JOINTS, 3), dtype=jnp.float32)

    # Query points strictly inside the bounding box.
    u = jax.random.uniform(kp, (B, P, 3), dtype=jnp.float32, minval=0.05, maxval=0.95)
    ps = b_min + u * (b_max - b_min)

    poses = 0.2 * jax.random.normal(kpo, (B, NUM_JOINTS, 3), dtype=jnp.float32)
    trans = 0.1 * jax.random.normal(kt, (B, 3), dtype=jnp.float32)

    out = lbs_skinner_forward(ps, poses, trans, ws, Js, b_min, b_max)
    out = jax.block_until_ready(out)

    ref = jax.block_until_ready(ref_forward(ps, poses, trans, ws, Js, b_min, b_max))
    assert out.shape == (B, P, 3)
    assert jnp.allclose(out, ref, atol=5e-4, rtol=5e-4), (
        float(jnp.max(jnp.abs(out - ref))))

    print("KERNEL_OK")
</pallas_src>

<mosaic_0001>
module attributes {stable_mosaic.version = 11 : i64} {
  func.func @lbs_kernel(%arg0: i32, %arg1: i32, %arg2: memref<6xf32, #tpu.memory_space<smem>>, %arg3: memref<6xf32, #tpu.memory_space<smem>>, %arg4: memref<1x3x1024xf32, #tpu.memory_space<vmem>>, %arg5: memref<1x8x16x64xf32, #tpu.memory_space<vmem>>, %arg6: memref<1x3x1024xf32, #tpu.memory_space<vmem>>) attributes {dimension_semantics = [#tpu.dimension_semantics<parallel>, #tpu.dimension_semantics<parallel>], iteration_bounds = array<i64: 2, 2>, scalar_prefetch = 2 : i64, scratch_operands = 0 : i64, tpu.core_type = #tpu.core_type<tc>, window_params = [{transform_indices = @transform_0, window_bounds = array<i64: 1, 3, 1024>}, {transform_indices = @transform_1, window_bounds = array<i64: 1, 8, 16, 64>}, {transform_indices = @transform_2, window_bounds = array<i64: 1, 3, 1024>}]} {
    %c0 = arith.constant 0 : index
    %c0_0 = arith.constant 0 : index
    %c0_1 = arith.constant 0 : index
    %0 = vector.load %arg4[%c0, %c0_0, %c0_1] : memref<1x3x1024xf32, #tpu.memory_space<vmem>>, vector<1x3x1024xf32>
    %1 = vector.shape_cast %0 : vector<1x3x1024xf32> to vector<3x1024xf32>
    %2 = vector.extract_strided_slice %1 {offsets = [0, 0], sizes = [1, 1024], strides = [1, 1]} : vector<3x1024xf32> to vector<1x1024xf32>
    %3 = vector.extract_strided_slice %1 {offsets = [1, 0], sizes = [1, 1024], strides = [1, 1]} : vector<3x1024xf32> to vector<1x1024xf32>
    %4 = vector.extract_strided_slice %1 {offsets = [2, 0], sizes = [1, 1024], strides = [1, 1]} : vector<3x1024xf32> to vector<1x1024xf32>
    %c0_2 = arith.constant 0 : index
    %5 = memref.load %arg2[%c0_2] : memref<6xf32, #tpu.memory_space<smem>>
    %6 = vector.broadcast %5 : f32 to vector<1x1024xf32>
    %7 = arith.mulf %2, %6 : vector<1x1024xf32>
    %c3 = arith.constant 3 : index
    %8 = memref.load %arg2[%c3] : memref<6xf32, #tpu.memory_space<smem>>
    %9 = vector.broadcast %8 : f32 to vector<1x1024xf32>
    %10 = arith.addf %7, %9 : vector<1x1024xf32>
    %c1 = arith.constant 1 : index
    %11 = memref.load %arg2[%c1] : memref<6xf32, #tpu.memory_space<smem>>
    %12 = vector.broadcast %11 : f32 to vector<1x1024xf32>
    %13 = arith.mulf %3, %12 : vector<1x1024xf32>
    %c4 = arith.constant 4 : index
    %14 = memref.load %arg2[%c4] : memref<6xf32, #tpu.memory_space<smem>>
    %15 = vector.broadcast %14 : f32 to vector<1x1024xf32>
    %16 = arith.addf %13, %15 : vector<1x1024xf32>
    %c2 = arith.constant 2 : index
    %17 = memref.load %arg2[%c2] : memref<6xf32, #tpu.memory_space<smem>>
    %18 = vector.broadcast %17 : f32 to vector<1x1024xf32>
    %19 = arith.mulf %4, %18 : vector<1x1024xf32>
    %c5 = arith.constant 5 : index
    %20 = memref.load %arg2[%c5] : memref<6xf32, #tpu.memory_space<smem>>
    %21 = vector.broadcast %20 : f32 to vector<1x1024xf32>
    %22 = arith.addf %19, %21 : vector<1x1024xf32>
    %23 = tpu.iota {dimensions = array<i32: 0>} : vector<8x1024xi32>
    %24 = arith.sitofp %23 : vector<8x1024xi32> to vector<8x1024xf32>
    %25 = vector.broadcast %22 : vector<1x1024xf32> to vector<8x1024xf32>
    %26 = arith.subf %24, %25 : vector<8x1024xf32>
    %27 = math.absf %26 : vector<8x1024xf32>
    %cst = arith.constant 1.000000e+00 : f32
    %28 = vector.broadcast %cst : f32 to vector<8x1024xf32>
    %29 = arith.subf %28, %27 : vector<8x1024xf32>
    %cst_3 = arith.constant 0.000000e+00 : f32
    %30 = vector.broadcast %cst_3 : f32 to vector<8x1024xf32>
    %31 = arith.maximumf %30, %29 : vector<8x1024xf32>
    %32 = tpu.iota {dimensions = array<i32: 0>} : vector<64x1024xi32>
    %c3_i32 = arith.constant 3 : i32
    %33 = vector.broadcast %c3_i32 : i32 to vector<64x1024xi32>
    %34 = arith.shrsi %32, %33 : vector<64x1024xi32>
    %35 = arith.sitofp %34 : vector<64x1024xi32> to vector<64x1024xf32>
    %c7_i32 = arith.constant 7 : i32
    %36 = vector.broadcast %c7_i32 : i32 to vector<64x1024xi32>
    %37 = arith.andi %32, %36 : vector<64x1024xi32>
    %38 = arith.sitofp %37 : vector<64x1024xi32> to vector<64x1024xf32>
    %39 = vector.broadcast %16 : vector<1x1024xf32> to vector<64x1024xf32>
    %40 = arith.subf %35, %39 : vector<64x1024xf32>
    %41 = math.absf %40 : vector<64x1024xf32>
    %cst_4 = arith.constant 1.000000e+00 : f32
    %42 = vector.broadcast %cst_4 : f32 to vector<64x1024xf32>
    %43 = arith.subf %42, %41 : vector<64x1024xf32>
    %cst_5 = arith.constant 0.000000e+00 : f32
    %44 = vector.broadcast %cst_5 : f32 to vector<64x1024xf32>
    %45 = arith.maximumf %44, %43 : vector<64x1024xf32>
    %46 = vector.broadcast %10 : vector<1x1024xf32> to vector<64x1024xf32>
    %47 = arith.subf %38, %46 : vector<64x1024xf32>
    %48 = math.absf %47 : vector<64x1024xf32>
    %cst_6 = arith.constant 1.000000e+00 : f32
    %49 = vector.broadcast %cst_6 : f32 to vector<64x1024xf32>
    %50 = arith.subf %49, %48 : vector<64x1024xf32>
    %cst_7 = arith.constant 0.000000e+00 : f32
    %51 = vector.broadcast %cst_7 : f32 to vector<64x1024xf32>
    %52 = arith.maximumf %51, %50 : vector<64x1024xf32>
    %53 = arith.mulf %45, %52 : vector<64x1024xf32>
    %54 = vector.extract_strided_slice %31 {offsets = [0, 0], sizes = [1, 1024], strides = [1, 1]} : vector<8x1024xf32> to vector<1x1024xf32>
    %c0_8 = arith.constant 0 : index
    %c0_9 = arith.constant 0 : index
    %c0_10 = arith.constant 0 : index
    %c0_11 = arith.constant 0 : index
    %55 = vector.load %arg5[%c0_8, %c0_9, %c0_10, %c0_11] : memref<1x8x16x64xf32, #tpu.memory_space<vmem>>, vector<1x1x16x64xf32>
    %56 = vector.shape_cast %55 : vector<1x1x16x64xf32> to vector<16x64xf32>
    %cst_12 = arith.constant dense<0.000000e+00> : vector<16x1024xf32>
    %57 = tpu.matmul %56, %53, %cst_12 {dimension_numbers = #tpu.dot_dimension_numbers<[1], [0], [0], [1], [0, 0, 1, 1], [], []>} : vector<16x64xf32>, vector<64x1024xf32>, vector<16x1024xf32> -> vector<16x1024xf32>
    %58 = vector.broadcast %54 : vector<1x1024xf32> to vector<16x1024xf32>
    %59 = arith.mulf %58, %57 : vector<16x1024xf32>
    %c0_13 = arith.constant 0 : index
    %c1_14 = arith.constant 1 : index
    %c0_15 = arith.constant 0 : index
    %c0_16 = arith.constant 0 : index
    %60 = vector.load %arg5[%c0_13, %c1_14, %c0_15, %c0_16] : memref<1x8x16x64xf32, #tpu.memory_space<vmem>>, vector<1x1x16x64xf32>
    %61 = vector.shape_cast %60 : vector<1x1x16x64xf32> to vector<16x64xf32>
    %cst_17 = arith.constant dense<0.000000e+00> : vector<16x1024xf32>
    %62 = tpu.matmul %61, %53, %cst_17 {dimension_numbers = #tpu.dot_dimension_numbers<[1], [0], [0], [1], [0, 0, 1, 1], [], []>} : vector<16x64xf32>, vector<64x1024xf32>, vector<16x1024xf32> -> vector<16x1024xf32>
    %63 = vector.extract_strided_slice %31 {offsets = [1, 0], sizes = [1, 1024], strides = [1, 1]} : vector<8x1024xf32> to vector<1x1024xf32>
    %64 = vector.broadcast %63 : vector<1x1024xf32> to vector<16x1024xf32>
    %65 = arith.mulf %64, %62 : vector<16x1024xf32>
    %66 = arith.addf %59, %65 : vector<16x1024xf32>
    %c0_18 = arith.constant 0 : index
    %c2_19 = arith.constant 2 : index
    %c0_20 = arith.constant 0 : index
    %c0_21 = arith.constant 0 : index
    %67 = vector.load %arg5[%c0_18, %c2_19, %c0_20, %c0_21] : memref<1x8x16x64xf32, #tpu.memory_space<vmem>>, vector<1x1x16x64xf32>
    %68 = vector.shape_cast %67 : vector<1x1x16x64xf32> to vector<16x64xf32>
    %cst_22 = arith.constant dense<0.000000e+00> : vector<16x1024xf32>
    %69 = tpu.matmul %68, %53, %cst_22 {dimension_numbers = #tpu.dot_dimension_numbers<[1], [0], [0], [1], [0, 0, 1, 1], [], []>} : vector<16x64xf32>, vector<64x1024xf32>, vector<16x1024xf32> -> vector<16x1024xf32>
    %70 = vector.extract_strided_slice %31 {offsets = [2, 0], sizes = [1, 1024], strides = [1, 1]} : vector<8x1024xf32> to vector<1x1024xf32>
    %71 = vector.broadcast %70 : vector<1x1024xf32> to vector<16x1024xf32>
    %72 = arith.mulf %71, %69 : vector<16x1024xf32>
    %73 = arith.addf %66, %72 : vector<16x1024xf32>
    %c0_23 = arith.constant 0 : index
    %c3_24 = arith.constant 3 : index
    %c0_25 = arith.constant 0 : index
    %c0_26 = arith.constant 0 : index
    %74 = vector.load %arg5[%c0_23, %c3_24, %c0_25, %c0_26] : memref<1x8x16x64xf32, #tpu.memory_space<vmem>>, vector<1x1x16x64xf32>
    %75 = vector.shape_cast %74 : vector<1x1x16x64xf32> to vector<16x64xf32>
    %cst_27 = arith.constant dense<0.000000e+00> : vector<16x1024xf32>
    %76 = tpu.matmul %75, %53, %cst_27 {dimension_numbers = #tpu.dot_dimension_numbers<[1], [0], [0], [1], [0, 0, 1, 1], [], []>} : vector<16x64xf32>, vector<64x1024xf32>, vector<16x1024xf32> -> vector<16x1024xf32>
    %77 = vector.extract_strided_slice %31 {offsets = [3, 0], sizes = [1, 1024], strides = [1, 1]} : vector<8x1024xf32> to vector<1x1024xf32>
    %78 = vector.broadcast %77 : vector<1x1024xf32> to vector<16x1024xf32>
    %79 = arith.mulf %78, %76 : vector<16x1024xf32>
    %80 = arith.addf %73, %79 : vector<16x1024xf32>
    %c0_28 = arith.constant 0 : index
    %c4_29 = arith.constant 4 : index
    %c0_30 = arith.constant 0 : index
    %c0_31 = arith.constant 0 : index
    %81 = vector.load %arg5[%c0_28, %c4_29, %c0_30, %c0_31] : memref<1x8x16x64xf32, #tpu.memory_space<vmem>>, vector<1x1x16x64xf32>
    %82 = vector.shape_cast %81 : vector<1x1x16x64xf32> to vector<16x64xf32>
    %cst_32 = arith.constant dense<0.000000e+00> : vector<16x1024xf32>
    %83 = tpu.matmul %82, %53, %cst_32 {dimension_numbers = #tpu.dot_dimension_numbers<[1], [0], [0], [1], [0, 0, 1, 1], [], []>} : vector<16x64xf32>, vector<64x1024xf32>, vector<16x1024xf32> -> vector<16x1024xf32>
    %84 = vector.extract_strided_slice %31 {offsets = [4, 0], sizes = [1, 1024], strides = [1, 1]} : vector<8x1024xf32> to vector<1x1024xf32>
    %85 = vector.broadcast %84 : vector<1x1024xf32> to vector<16x1024xf32>
    %86 = arith.mulf %85, %83 : vector<16x1024xf32>
    %87 = arith.addf %80, %86 : vector<16x1024xf32>
    %c0_33 = arith.constant 0 : index
    %c5_34 = arith.constant 5 : index
    %c0_35 = arith.constant 0 : index
    %c0_36 = arith.constant 0 : index
    %88 = vector.load %arg5[%c0_33, %c5_34, %c0_35, %c0_36] : memref<1x8x16x64xf32, #tpu.memory_space<vmem>>, vector<1x1x16x64xf32>
    %89 = vector.shape_cast %88 : vector<1x1x16x64xf32> to vector<16x64xf32>
    %cst_37 = arith.constant dense<0.000000e+00> : vector<16x1024xf32>
    %90 = tpu.matmul %89, %53, %cst_37 {dimension_numbers = #tpu.dot_dimension_numbers<[1], [0], [0], [1], [0, 0, 1, 1], [], []>} : vector<16x64xf32>, vector<64x1024xf32>, vector<16x1024xf32> -> vector<16x1024xf32>
    %91 = vector.extract_strided_slice %31 {offsets = [5, 0], sizes = [1, 1024], strides = [1, 1]} : vector<8x1024xf32> to vector<1x1024xf32>
    %92 = vector.broadcast %91 : vector<1x1024xf32> to vector<16x1024xf32>
    %93 = arith.mulf %92, %90 : vector<16x1024xf32>
    %94 = arith.addf %87, %93 : vector<16x1024xf32>
    %c0_38 = arith.constant 0 : index
    %c6 = arith.constant 6 : index
    %c0_39 = arith.constant 0 : index
    %c0_40 = arith.constant 0 : index
    %95 = vector.load %arg5[%c0_38, %c6, %c0_39, %c0_40] : memref<1x8x16x64xf32, #tpu.memory_space<vmem>>, vector<1x1x16x64xf32>
    %96 = vector.shape_cast %95 : vector<1x1x16x64xf32> to vector<16x64xf32>
    %cst_41 = arith.constant dense<0.000000e+00> : vector<16x1024xf32>
    %97 = tpu.matmul %96, %53, %cst_41 {dimension_numbers = #tpu.dot_dimension_numbers<[1], [0], [0], [1], [0, 0, 1, 1], [], []>} : vector<16x64xf32>, vector<64x1024xf32>, vector<16x1024xf32> -> vector<16x1024xf32>
    %98 = vector.extract_strided_slice %31 {offsets = [6, 0], sizes = [1, 1024], strides = [1, 1]} : vector<8x1024xf32> to vector<1x1024xf32>
    %99 = vector.broadcast %98 : vector<1x1024xf32> to vector<16x1024xf32>
    %100 = arith.mulf %99, %97 : vector<16x1024xf32>
    %101 = arith.addf %94, %100 : vector<16x1024xf32>
    %c0_42 = arith.constant 0 : index
    %c7 = arith.constant 7 : index
    %c0_43 = arith.constant 0 : index
    %c0_44 = arith.constant 0 : index
    %102 = vector.load %arg5[%c0_42, %c7, %c0_43, %c0_44] : memref<1x8x16x64xf32, #tpu.memory_space<vmem>>, vector<1x1x16x64xf32>
    %103 = vector.shape_cast %102 : vector<1x1x16x64xf32> to vector<16x64xf32>
    %cst_45 = arith.constant dense<0.000000e+00> : vector<16x1024xf32>
    %104 = tpu.matmul %103, %53, %cst_45 {dimension_numbers = #tpu.dot_dimension_numbers<[1], [0], [0], [1], [0, 0, 1, 1], [], []>} : vector<16x64xf32>, vector<64x1024xf32>, vector<16x1024xf32> -> vector<16x1024xf32>
    %105 = vector.extract_strided_slice %31 {offsets = [7, 0], sizes = [1, 1024], strides = [1, 1]} : vector<8x1024xf32> to vector<1x1024xf32>
    %106 = vector.broadcast %105 : vector<1x1024xf32> to vector<16x1024xf32>
    %107 = arith.mulf %106, %104 : vector<16x1024xf32>
    %108 = arith.addf %101, %107 : vector<16x1024xf32>
    %c3_i32_46 = arith.constant 3 : i32
    %109 = arith.muli %c3_i32_46, %arg0 : i32
    %c0_i32 = arith.constant 0 : i32
    %110 = arith.addi %109, %c0_i32 : i32
    %111 = arith.index_cast %110 : i32 to index
    %112 = memref.load %arg3[%111] : memref<6xf32, #tpu.memory_space<smem>>
    %c3_i32_47 = arith.constant 3 : i32
    %113 = arith.muli %c3_i32_47, %arg0 : i32
    %c1_i32 = arith.constant 1 : i32
    %114 = arith.addi %113, %c1_i32 : i32
    %115 = arith.index_cast %114 : i32 to index
    %116 = memref.load %arg3[%115] : memref<6xf32, #tpu.memory_space<smem>>
    %c3_i32_48 = arith.constant 3 : i32
    %117 = arith.muli %c3_i32_48, %arg0 : i32
    %c2_i32 = arith.constant 2 : i32
    %118 = arith.addi %117, %c2_i32 : i32
    %119 = arith.index_cast %118 : i32 to index
    %120 = memref.load %arg3[%119] : memref<6xf32, #tpu.memory_space<smem>>
    %121 = vector.extract_strided_slice %108 {offsets = [0, 0], sizes = [1, 1024], strides = [1, 1]} : vector<16x1024xf32> to vector<1x1024xf32>
    %122 = arith.mulf %121, %2 : vector<1x1024xf32>
    %123 = vector.extract_strided_slice %108 {offsets = [1, 0], sizes = [1, 1024], strides = [1, 1]} : vector<16x1024xf32> to vector<1x1024xf32>
    %124 = arith.mulf %123, %3 : vector<1x1024xf32>
    %125 = arith.addf %122, %124 : vector<1x1024xf32>
    %126 = vector.extract_strided_slice %108 {offsets = [2, 0], sizes = [1, 1024], strides = [1, 1]} : vector<16x1024xf32> to vector<1x1024xf32>
    %127 = arith.mulf %126, %4 : vector<1x1024xf32>
    %128 = arith.addf %125, %127 : vector<1x1024xf32>
    %129 = vector.extract_strided_slice %108 {offsets = [3, 0], sizes = [1, 1024], strides = [1, 1]} : vector<16x1024xf32> to vector<1x1024xf32>
    %130 = arith.addf %128, %129 : vector<1x1024xf32>
    %131 = vector.broadcast %112 : f32 to vector<1x1024xf32>
    %132 = arith.addf %130, %131 : vector<1x1024xf32>
    %c0_49 = arith.constant 0 : index
    %c0_50 = arith.constant 0 : index
    %c0_51 = arith.constant 0 : index
    %133 = vector.load %arg6[%c0_49, %c0_50, %c0_51] : memref<1x3x1024xf32, #tpu.memory_space<vmem>>, vector<1x1x1024xf32>
    %134 = vector.shape_cast %133 : vector<1x1x1024xf32> to vector<1x1024xf32>
    %135 = vector.shape_cast %132 : vector<1x1024xf32> to vector<1x1x1024xf32>
    tpu.vector_store %arg6[%c0_49, %c0_50, %c0_51], %135 {strides = array<i32>} : memref<1x3x1024xf32, #tpu.memory_space<vmem>>, vector<1x1x1024xf32>,
    %136 = vector.extract_strided_slice %108 {offsets = [4, 0], sizes = [1, 1024], strides = [1, 1]} : vector<16x1024xf32> to vector<1x1024xf32>
    %137 = arith.mulf %136, %2 : vector<1x1024xf32>
    %138 = vector.extract_strided_slice %108 {offsets = [5, 0], sizes = [1, 1024], strides = [1, 1]} : vector<16x1024xf32> to vector<1x1024xf32>
    %139 = arith.mulf %138, %3 : vector<1x1024xf32>
    %140 = arith.addf %137, %139 : vector<1x1024xf32>
    %141 = vector.extract_strided_slice %108 {offsets = [6, 0], sizes = [1, 1024], strides = [1, 1]} : vector<16x1024xf32> to vector<1x1024xf32>
    %142 = arith.mulf %141, %4 : vector<1x1024xf32>
    %143 = arith.addf %140, %142 : vector<1x1024xf32>
    %144 = vector.extract_strided_slice %108 {offsets = [7, 0], sizes = [1, 1024], strides = [1, 1]} : vector<16x1024xf32> to vector<1x1024xf32>
    %145 = arith.addf %143, %144 : vector<1x1024xf32>
    %146 = vector.broadcast %116 : f32 to vector<1x1024xf32>
    %147 = arith.addf %145, %146 : vector<1x1024xf32>
    %c0_52 = arith.constant 0 : index
    %c1_53 = arith.constant 1 : index
    %c0_54 = arith.constant 0 : index
    %148 = vector.load %arg6[%c0_52, %c1_53, %c0_54] : memref<1x3x1024xf32, #tpu.memory_space<vmem>>, vector<1x1x1024xf32>
    %149 = vector.shape_cast %148 : vector<1x1x1024xf32> to vector<1x1024xf32>
    %150 = vector.shape_cast %147 : vector<1x1024xf32> to vector<1x1x1024xf32>
    tpu.vector_store %arg6[%c0_52, %c1_53, %c0_54], %150 {strides = array<i32>} : memref<1x3x1024xf32, #tpu.memory_space<vmem>>, vector<1x1x1024xf32>,
    %151 = vector.extract_strided_slice %108 {offsets = [8, 0], sizes = [1, 1024], strides = [1, 1]} : vector<16x1024xf32> to vector<1x1024xf32>
    %152 = arith.mulf %151, %2 : vector<1x1024xf32>
    %153 = vector.extract_strided_slice %108 {offsets = [9, 0], sizes = [1, 1024], strides = [1, 1]} : vector<16x1024xf32> to vector<1x1024xf32>
    %154 = arith.mulf %153, %3 : vector<1x1024xf32>
    %155 = arith.addf %152, %154 : vector<1x1024xf32>
    %156 = vector.extract_strided_slice %108 {offsets = [10, 0], sizes = [1, 1024], strides = [1, 1]} : vector<16x1024xf32> to vector<1x1024xf32>
    %157 = arith.mulf %156, %4 : vector<1x1024xf32>
    %158 = arith.addf %155, %157 : vector<1x1024xf32>
    %159 = vector.extract_strided_slice %108 {offsets = [11, 0], sizes = [1, 1024], strides = [1, 1]} : vector<16x1024xf32> to vector<1x1024xf32>
    %160 = arith.addf %158, %159 : vector<1x1024xf32>
    %161 = vector.broadcast %120 : f32 to vector<1x1024xf32>
    %162 = arith.addf %160, %161 : vector<1x1024xf32>
    %c0_55 = arith.constant 0 : index
    %c2_56 = arith.constant 2 : index
    %c0_57 = arith.constant 0 : index
    %163 = vector.load %arg6[%c0_55, %c2_56, %c0_57] : memref<1x3x1024xf32, #tpu.memory_space<vmem>>, vector<1x1x1024xf32>
    %164 = vector.shape_cast %163 : vector<1x1x1024xf32> to vector<1x1024xf32>
    %165 = vector.shape_cast %162 : vector<1x1024xf32> to vector<1x1x1024xf32>
    tpu.vector_store %arg6[%c0_55, %c2_56, %c0_57], %165 {strides = array<i32>} : memref<1x3x1024xf32, #tpu.memory_space<vmem>>, vector<1x1x1024xf32>,
    return
  }
  func.func @transform_0(%arg0: i32, %arg1: i32, %arg2: memref<6xf32, #tpu.memory_space<smem>>, %arg3: memref<6xf32, #tpu.memory_space<smem>>) -> (i32, i32, i32) {
    %c0_i32 = arith.constant 0 : i32
    %c0_i32_0 = arith.constant 0 : i32
    return %arg0, %c0_i32, %arg1 : i32, i32, i32
  }
  func.func @transform_1(%arg0: i32, %arg1: i32, %arg2: memref<6xf32, #tpu.memory_space<smem>>, %arg3: memref<6xf32, #tpu.memory_space<smem>>) -> (i32, i32, i32, i32) {
    %c0_i32 = arith.constant 0 : i32
    %c0_i32_0 = arith.constant 0 : i32
    %c0_i32_1 = arith.constant 0 : i32
    %c0_i32_2 = arith.constant 0 : i32
    return %arg0, %c0_i32, %c0_i32_0, %c0_i32_1 : i32, i32, i32, i32
  }
  func.func @transform_2(%arg0: i32, %arg1: i32, %arg2: memref<6xf32, #tpu.memory_space<smem>>, %arg3: memref<6xf32, #tpu.memory_space<smem>>) -> (i32, i32, i32) {
    %c0_i32 = arith.constant 0 : i32
    %c0_i32_0 = arith.constant 0 : i32
    return %arg0, %c0_i32, %arg1 : i32, i32, i32
  }
}

</mosaic_0001>

<bundles_post_ra>
// kernel: sub.86
= control target key start
LH: loop header
LB: loop body
LE: loop exit
PB: predicated region body
PF: predicated region fallthrough
CT: control target
= control target key end

     0   :  { %v12_v3 = vmov 0.0   ;;  %s37_s0 = inlined_call_operand.vmem [shape: f32[3], index: 0, kind: input, shape index: {}]   ;;  %s38_s1 = inlined_call_operand.vmem [shape: f32[3], index: 1, kind: input, shape index: {}]   ;;  %s39_s2 = inlined_call_operand.vmem [shape: bf16[3], index: 2, kind: output, shape index: {}]  }
   0x1   :  { %v3_v0 = vld [vmem:[%s37_s0] sm:$0x1] }
   0x2   :  { %v4_v1 = vld [vmem:[%s38_s1] sm:$0x1] }
   0x3   :  { %v7_v2 = vsub.f32 %v3_v0, %v4_v1 }
   0x5   :  { %v9_v4 = vpack.c.bf16 %v12_v3, %v7_v2 }
   0x7   :  { %10 = vst [vmem:[%s39_s2] sm:$0x1] %v9_v4 }

// kernel: lbs_skinner_forward.1
= control target key start
LH: loop header
LB: loop body
LE: loop exit
PB: predicated region body
PF: predicated region fallthrough
CT: control target
= control target key end

     0   :  { %s7191_s0 = inlined_call_operand.vmem [shape: f32[6], index: 0, kind: input, shape index: {}]   ;;  %s7192_s2 = inlined_call_operand.vmem [shape: f32[2,3,2048], index: 2, kind: input, shape index: {}]   ;;  %s7193_s3 = inlined_call_operand.vmem [shape: f32[2,8,16,64], index: 3, kind: input, shape index: {}]   ;;  %s7194_s4 = inlined_call_operand.vmem [shape: f32[2,3,2048], index: 4, kind: output, shape index: {}]   ;;  %s7195_s1 = inlined_call_operand.vmem [shape: f32[6], index: 1, kind: input, shape index: {}]  }
   0x1   :  { %s9_s17 = sshll.u32 %s7191_s0, 4  ;;  %s13_s20 = sshll.u32 %s7195_s1, 4  ;;  %s10_s17 = int_to_ptr.vmem [resolvable:$true] %s9_s17  ;;  %s14_s20 = int_to_ptr.vmem [resolvable:$true] %s13_s20 }
   0x2   :  { %s5506_s21 = scalar_lea.vmem %s10_s17, 16  ;;  %p5511_p1 = scmp.lt.s32.totalorder %s10_s17, %s10_s17 }
   0x3   :  { %p5507_p0 = scmp.ne.s32.totalorder %s10_s17, %s5506_s21  ;;  %p5512_p2 = scmp.lt.s32.totalorder %s5506_s21, %s5506_s21 }
   0x5   :  { %p5513_p3 = por %p5512_p2, %p5511_p1 }
   0x7   :  { %p5514_p4 = pnand %p5513_p3, %p5507_p0 }
   0x9   :  { %5517 = shalt.err (!%p5514_p4)  }
   0xa   :  { %s5572_s22 = smov [#allocation3]   ;;  %s5518_s23 = scalar_lea.vmem %s14_s20, 16 }
   0xb   :  { %12 = dma.vmem_to_smem %s10_s17, 16, %s5572_s22, [#allocation2] }
   0xc   :  { %p5519_p5 = scmp.ne.s32.totalorder %s14_s20, %s5518_s23  ;;  %p5523_p6 = scmp.lt.s32.totalorder %s14_s20, %s14_s20 }
   0xd   :  { %p5524_p7 = scmp.lt.s32.totalorder %s5518_s23, %s5518_s23 }
   0xf   :  { %p5525_p8 = por %p5524_p7, %p5523_p6 }
  0x11   :  { %p5526_p9 = pnand %p5525_p8, %p5519_p5 }
  0x13   :  { %5529 = shalt.err (!%p5526_p9)  }
  0x14   :  { %s5573_s0 = smov [#allocation4]  }
  0x15   :  { %16 = dma.vmem_to_smem %s14_s20, 16, %s5573_s0, [#allocation2] }
  0x16   :  { %5550 = dma.done.wait [#allocation2], 32 }
  0x17   :  { %5551 = vsyncadd [#allocation2], 4294967264 }
  0x18   :  { %18 = sfence }
  0x19   :  { %s5607_s1 = smov 0   ;;  %s5609_s24 = smov 0  }
  0x1a   :  { %s5611_s25 = smov 0   ;;  %s5613_s26 = smov 0  }
  0x1b   :  { %s5615_s27 = smov 0  }
  0x1c LB: > { %s33_s28 = sadd.s32 1, %s5562_s25  ;;  %s36_s29 = sadd.s32 1, %s5566_s26  ;;  %s5570_s27 = sphi %s5615_s27, %s24_s27   ;;  %s5566_s26 = sphi %s5613_s26, %s7276_s26   ;;  %s5562_s25 = sphi %s5611_s25, %s7275_s25   ;;  %s5558_s24 = sphi %s5609_s24, %s7274_s24   ;;  %s5554_s1 = sphi %s5607_s1, %s7273_s1  }
  0x1d   : > { %p34_p10 = scmp.ge.s32.totalorder %s33_s28, 2  ;;  %p4847_p11 = scmp.ge.s32.totalorder %s5570_s27, 1 }
  0x1e   : > { %p155_p12 = scmp.lt.s32.totalorder %s5570_s27, 5 }
  0x1f   : > { %s7278_s28 = smov (%p34_p10, %s33_s28), 0  ;;  %s7280_s29 = smov (!%p34_p10, %s36_s29), %s5566_s26 }
  0x20   : > { %p156_p13 = pnand %p4847_p11, %p155_p12  ;;  %p38_p0 = scmp.ge.s32.totalorder %s7280_s29, 2 }
  0x22   : > { %s7282_s29 = smov (%p38_p0, %s7280_s29), 0  ;;  %159 = sbr.rel (%p156_p13) target bundleno = 725 (0x2d5), region = 28 }
  0x29   : > { %s4848_s30 = sshll.u32 %s5554_s1, 3  ;;  %p191_p1 = scmp.lt.s32.totalorder %s5558_s24, 1  ;;  %v255_v0 = vlaneseq  ;;  %v7196_v1 = vmov 0.0   ;;  %vm1135_vm0 = vcmask 523264  }
  0x2a   : > { %p193_p2 = scmp.lt.s32.totalorder %s4848_s30, 15  ;;  %s219_s5 = sld [smem:[#allocation3]]  ;;  %1206 = vmatprep.mubr.f32.mxu0 %v7196_v1  ;;  %1283 = vmatprep.mubr.f32.mxu1 %v7196_v1 }
  0x2b   : > { %s5643_s6 = scalar_select %p191_p1, %s5558_s24, 1  ;;  %v5645_v2 = vshrl.u32 %v255_v0, 7 }
  0x2c   : > { %s7284_s30 = smov (!%p193_p2, %s4848_s30), 15  ;;  %s5648_s8 = sld [smem:[#allocation3 + $0x3]] }
  0x2d   : > { %7227 = vst [vmem:[#allocation6_spill] sm:$0xff] %v5645_v2  ;;  %s4849_s7 = sshll.u32 %s5643_s6, 4  ;;  %v366_v3 = vadd.s32 8, %v5645_v2  ;;  %v373_v4 = vshra.s32 %v5645_v2, 3  ;;  %v389_v5 = vand.u32 7, %v5645_v2  ;;  %s5655_s10 = sld [smem:[#allocation3 + $0x1]] }
  0x2e   : > { %s5653_s9 = sadd.s32 %s4849_s7, %s7284_s30  ;;  %v5658_v6 = vsub.s32 1, %v5645_v2  ;;  %v5661_v7 = vsub.s32 5, %v5645_v2  ;;  %v5664_v8 = vsub.s32 0, %v5645_v2  ;;  %v5667_v9 = vsub.s32 4, %v5645_v2  ;;  %s4858_s12 = sld [smem:[#allocation3 + $0x4]] }
  0x2f   : > { %s4850_s11 = sshll.u32 %s5653_s9, 2  ;;  %v374_v10 = vshra.s32 %v366_v3, 3  ;;  %v5670_v11 = vcvt.s32.f32 %v373_v4  ;;  %v390_v12 = vand.u32 7, %v366_v3  ;;  %v5672_v13 = vcvt.s32.f32 %v389_v5  ;;  %s4943_s16 = sshll.u32 %s5643_s6, 7 }
  0x30   : > { %7228 = vst [vmem:[#allocation7_spill] sm:$0xff] %v5661_v7  ;;  %7229 = vst [vmem:[#allocation8_spill] sm:$0xff] %v5667_v9  ;;  %s5679_s15 = scalar_lea.vmem %s7192_s2, %s4850_s11  ;;  %v5681_v14 = vstv %s219_s5  ;;  %v367_v15 = vadd.s32 16, %v5645_v2  ;;  %v368_v16 = vadd.s32 24, %v5645_v2  ;;  %v5686_v17 = vadd.s32 32, %v5645_v2  ;;  %s5963_s19 = scalar_lea.vmem %s7193_s3, %s4943_s16 }
  0x31   : > { %v215_v18 = vld [vmem:[%s5679_s15] sm:$0x77]  ;;  %v5689_v19 = vcvt.s32.f32 %v374_v10  ;;  %v5691_v20 = vcvt.s32.f32 %v390_v12  ;;  %v216_v21 = vld [vmem:[%s5679_s15 + $0x8] sm:$0x77]  ;;  %v5695_v22 = vadd.s32 40, %v5645_v2  ;;  %v5698_v23 = vadd.s32 48, %v5645_v2  ;;  %s213_s7 = scalar_lea.vmem %s7194_s4, %s4850_s11 }
  0x32   : > { %v221_v24 = vmul.f32 %v5681_v14, %v215_v18  ;;  %v222_v25 = vmul.f32 %v5681_v14, %v216_v21  ;;  %v375_v26 = vshra.s32 %v367_v15, 3  ;;  %v376_v27 = vshra.s32 %v368_v16, 3  ;;  %s4859_s20 = sld [smem:[#allocation3 + $0x2]]  ;;  %s4860_s21 = sld [smem:[#allocation3 + $0x5]] }
  0x33   : > { %v5703_v28 = vstv %s5648_s8  ;;  %v391_v29 = vand.u32 7, %v367_v15  ;;  %v392_v30 = vand.u32 7, %v368_v16  ;;  %v377_v31 = vshra.s32 %v5686_v17, 3  ;;  %s4165_s22 = smul.u32 3, %s5558_s24 }
  0x34   : > { %v227_v32 = vadd.f32 %v5703_v28, %v221_v24  ;;  %v5708_v33 = vstv %s5655_s10  ;;  %v228_v34 = vadd.f32 %v5703_v28, %v222_v25  ;;  %v5711_v35 = vcvt.s32.f32 %v375_v26 }
  0x35   : > { %v233_v36 = vmul.f32 %v5708_v33, %v215_v18  ;;  %v5714_v37 = vstv %s4858_s12  ;;  %v234_v38 = vmul.f32 %v5708_v33, %v216_v21  ;;  %v5717_v39 = vcvt.s32.f32 %v376_v27  ;;  %s4167_s23 = sadd.s32 1, %s4165_s22  ;;  %s4169_s0 = sadd.s32 2, %s4165_s22 }
  0x36   : > { %v748_v40 = vrot.slane %v227_v32, %v5667_v9  ;;  %v756_v41 = vrot.slane %v228_v34, %v5667_v9  ;;  %v744_v42 = vrot.slane %v227_v32, %v5664_v8  ;;  %v752_v43 = vrot.slane %v228_v34, %v5664_v8  ;;  %s4166_s1 = sld [smem:[#allocation4 + %s4165_s22]] }
  0x37   : > { %v239_v44 = vadd.f32 %v5714_v37, %v233_v36  ;;  %v5725_v45 = vadd.f32 %v5714_v37, %v234_v38  ;;  %v5727_v46 = vcvt.s32.f32 %v391_v29  ;;  %v5729_v47 = vcvt.s32.f32 %v392_v30  ;;  %s4168_s24 = sld [smem:[#allocation4 + %s4167_s23]] }
  0x38   : > { %v5732_v48 = vrot.slane %v748_v40, %v5664_v8  ;;  %v5735_v49 = vrot.slane %v756_v41, %v5664_v8  ;;  %v5738_v50 = vrot.slane %v744_v42, %v5664_v8  ;;  %v5741_v51 = vrot.slane %v752_v43, %v5664_v8  ;;  %s4170_s30 = sld [smem:[#allocation4 + %s4169_s0]] }
  0x39   : > { %v416_v52 = vrot.slane %v239_v44, %v5661_v7  ;;  %v424_v53 = vrot.slane %v5725_v45, %v5661_v7  ;;  %v412_v54 = vrot.slane %v239_v44, %v5658_v6  ;;  %v420_v55 = vrot.slane %v5725_v45, %v5658_v6 }
  0x3a   : > { %v814_v56 = vsub.f32 %v5672_v13, %v5732_v48  ;;  %v822_v57 = vsub.f32 %v5691_v20, %v5732_v48  ;;  %v816_v58 = vsub.f32 %v5672_v13, %v5735_v49  ;;  %v824_v59 = vsub.f32 %v5691_v20, %v5735_v49 }
  0x3b   : > { %v5758_v60 = vrot.slane %v416_v52, %v5658_v6  ;;  %v5761_v61 = vrot.slane %v424_v53, %v5658_v6  ;;  %v5764_v62 = vrot.slane %v412_v54, %v5658_v6  ;;  %v813_v63 = vsub.f32 %v5672_v13, %v5738_v50 }
  0x3c   : > { %v878_v0 = vand.u32 2147483647, %v814_v56  ;;  %v886_v3 = vand.u32 2147483647, %v822_v57  ;;  %v880_v4 = vand.u32 2147483647, %v816_v58  ;;  %v821_v5 = vsub.f32 %v5691_v20, %v5738_v50 }
  0x3d   : > { %v482_v10 = vsub.f32 %v5670_v11, %v5758_v60  ;;  %v490_v12 = vsub.f32 %v5689_v19, %v5758_v60  ;;  %v484_v15 = vsub.f32 %v5670_v11, %v5761_v61  ;;  %v492_v16 = vsub.f32 %v5689_v19, %v5761_v61 }
  0x3e   : > { %v942_v18 = vsub.f32 1.0, %v878_v0  ;;  %v950_v21 = vsub.f32 1.0, %v886_v3  ;;  %v888_v24 = vand.u32 2147483647, %v824_v59  ;;  %v944_v25 = vsub.f32 1.0, %v880_v4 }
  0x3f   : > { %v546_v26 = vand.u32 2147483647, %v482_v10  ;;  %v554_v27 = vand.u32 2147483647, %v490_v12  ;;  %v548_v29 = vand.u32 2147483647, %v484_v15  ;;  %v481_v30 = vsub.f32 %v5670_v11, %v5764_v62 }
  0x40   : > { %v1006_v32 = vmax.f32 %v942_v18, 0.0  ;;  %v1014_v34 = vmax.f32 %v950_v21, 0.0  ;;  %v556_v36 = vand.u32 2147483647, %v492_v16  ;;  %v952_v38 = vsub.f32 1.0, %v888_v24 }
  0x41   : > { %v610_v40 = vsub.f32 1.0, %v546_v26  ;;  %v618_v41 = vsub.f32 1.0, %v554_v27  ;;  %v612_v42 = vsub.f32 1.0, %v548_v29  ;;  %v1008_v43 = vmax.f32 %v944_v25, 0.0 }
  0x42   : > { %v620_v44 = vsub.f32 1.0, %v556_v36  ;;  %v1016_v45 = vmax.f32 %v952_v38, 0.0  ;;  %v489_v52 = vsub.f32 %v5689_v19, %v5764_v62  ;;  %v545_v53 = vand.u32 2147483647, %v481_v30 }
  0x43   : > { %v674_v54 = vmax.f32 %v610_v40, 0.0  ;;  %v682_v56 = vmax.f32 %v618_v41, 0.0  ;;  %v676_v57 = vmax.f32 %v612_v42, 0.0  ;;  %v877_v58 = vand.u32 2147483647, %v813_v63 }
  0x44   : > { %v684_v59 = vmax.f32 %v620_v44, 0.0  ;;  %v553_v0 = vand.u32 2147483647, %v489_v52  ;;  %v609_v3 = vsub.f32 1.0, %v545_v53  ;;  %v885_v4 = vand.u32 2147483647, %v821_v5 }
  0x45   : > { %v1070_v10 = vmul.f32 %v1006_v32, %v674_v54  ;;  %v1078_v12 = vmul.f32 %v1014_v34, %v682_v56  ;;  %v1072_v15 = vmul.f32 %v1008_v43, %v676_v57  ;;  %v941_v16 = vsub.f32 1.0, %v877_v58 }
  0x46   : > { %v1080_v18 = vmul.f32 %v1016_v45, %v684_v59  ;;  %v617_v21 = vsub.f32 1.0, %v553_v0  ;;  %v673_v24 = vmax.f32 %v609_v3, 0.0  ;;  %v949_v25 = vsub.f32 1.0, %v885_v4 }
  0x47   : > { %v5782_v26 = vpack.c.bf16 %v1078_v12, %v1070_v10  ;;  %v1005_v27 = vmax.f32 %v941_v16, 0.0  ;;  %v5785_v29 = vrot.slane %v420_v55, %v5658_v6  ;;  %v815_v63 = vsub.f32 %v5672_v13, %v5741_v51 }
  0x48   : > { %v5789_v30 = vpack.c.bf16 %v1080_v18, %v1072_v15  ;;  %v681_v5 = vmax.f32 %v617_v21, 0.0  ;;  %v1013_v32 = vmax.f32 %v949_v25, 0.0  ;;  %v823_v34 = vsub.f32 %v5691_v20, %v5741_v51 }
  0x49   : > { %4945 = vmatprep.subr.bf16.mxu0 %v5782_v26  ;;  %v1069_v36 = vmul.f32 %v1005_v27, %v673_v24  ;;  %v483_v38 = vsub.f32 %v5670_v11, %v5785_v29  ;;  %v491_v55 = vsub.f32 %v5689_v19, %v5785_v29  ;;  %v879_v40 = vand.u32 2147483647, %v815_v63 }
  0x4a   : > { %4961 = vmatprep.subr.bf16.mxu1 %v5789_v30  ;;  %v1077_v41 = vmul.f32 %v1013_v32, %v681_v5  ;;  %v887_v42 = vand.u32 2147483647, %v823_v34  ;;  %v498_v43 = vsub.f32 %v5711_v35, %v5758_v60  ;;  %v506_v44 = vsub.f32 %v5717_v39, %v5758_v60 }
  0x4b   : > { %v547_v45 = vand.u32 2147483647, %v483_v38  ;;  %v555_v52 = vand.u32 2147483647, %v491_v55  ;;  %v943_v53 = vsub.f32 1.0, %v879_v40  ;;  %v830_v54 = vsub.f32 %v5727_v46, %v5732_v48 }
  0x4c   : > { %v5805_v56 = vpack.c.bf16 %v1077_v41, %v1069_v36  ;;  %v951_v57 = vsub.f32 1.0, %v887_v42  ;;  %v562_v58 = vand.u32 2147483647, %v498_v43  ;;  %v570_v59 = vand.u32 2147483647, %v506_v44 }
  0x4d   : > { %v611_v0 = vsub.f32 1.0, %v547_v45  ;;  %v619_v3 = vsub.f32 1.0, %v555_v52  ;;  %v1007_v4 = vmax.f32 %v943_v53, 0.0  ;;  %v838_v10 = vsub.f32 %v5729_v47, %v5732_v48 }
  0x4e   : > { %4947 = vmatpush1.bf16.msra.mxu0 %v5805_v56  ;;  %v1015_v12 = vmax.f32 %v951_v57, 0.0  ;;  %v626_v15 = vsub.f32 1.0, %v562_v58  ;;  %v634_v16 = vsub.f32 1.0, %v570_v59  ;;  %v894_v18 = vand.u32 2147483647, %v830_v54 }
  0x4f   : > { %v675_v21 = vmax.f32 %v611_v0, 0.0  ;;  %v683_v24 = vmax.f32 %v619_v3, 0.0  ;;  %v902_v25 = vand.u32 2147483647, %v838_v10  ;;  %v500_v27 = vsub.f32 %v5711_v35, %v5761_v61 }
  0x50   : > { %v690_v63 = vmax.f32 %v626_v15, 0.0  ;;  %v698_v5 = vmax.f32 %v634_v16, 0.0  ;;  %v958_v32 = vsub.f32 1.0, %v894_v18  ;;  %v508_v34 = vsub.f32 %v5717_v39, %v5761_v61 }
  0x51   : > { %v1071_v36 = vmul.f32 %v1007_v4, %v675_v21  ;;  %v1079_v38 = vmul.f32 %v1015_v12, %v683_v24  ;;  %v966_v55 = vsub.f32 1.0, %v902_v25  ;;  %v564_v40 = vand.u32 2147483647, %v500_v27 }
  0x52   : > { %v1022_v41 = vmax.f32 %v958_v32, 0.0  ;;  %v572_v42 = vand.u32 2147483647, %v508_v34  ;;  %v832_v43 = vsub.f32 %v5727_v46, %v5735_v49  ;;  %v840_v44 = vsub.f32 %v5729_v47, %v5735_v49 }
  0x53   : > { %v5818_v45 = vpack.c.bf16 %v1079_v38, %v1071_v36  ;;  %v1030_v52 = vmax.f32 %v966_v55, 0.0  ;;  %v628_v53 = vsub.f32 1.0, %v564_v40  ;;  %v497_v54 = vsub.f32 %v5711_v35, %v5764_v62 }
  0x54   : > { %v1086_v57 = vmul.f32 %v1022_v41, %v690_v63  ;;  %v636_v58 = vsub.f32 1.0, %v572_v42  ;;  %v896_v59 = vand.u32 2147483647, %v832_v43  ;;  %v904_v0 = vand.u32 2147483647, %v840_v44 }
  0x55   : > { %7230 = vst [vmem:[#allocation9_spill] sm:$0xff] %v5818_v45  ;;  %4963 = vmatpush1.bf16.msra.mxu1 %v5818_v45  ;;  %v1094_v3 = vmul.f32 %v1030_v52, %v698_v5  ;;  %v692_v4 = vmax.f32 %v628_v53, 0.0  ;;  %v505_v10 = vsub.f32 %v5717_v39, %v5764_v62  ;;  %v561_v12 = vand.u32 2147483647, %v497_v54 }
  0x56   : > { %v700_v15 = vmax.f32 %v636_v58, 0.0  ;;  %v960_v16 = vsub.f32 1.0, %v896_v59  ;;  %v968_v18 = vsub.f32 1.0, %v904_v0  ;;  %v829_v21 = vsub.f32 %v5727_v46, %v5738_v50 }
  0x57   : > { %v5827_v24 = vpack.c.bf16 %v1094_v3, %v1086_v57  ;;  %v569_v25 = vand.u32 2147483647, %v505_v10  ;;  %v625_v27 = vsub.f32 1.0, %v561_v12  ;;  %v837_v63 = vsub.f32 %v5729_v47, %v5738_v50 }
  0x58   : > { %v1024_v32 = vmax.f32 %v960_v16, 0.0  ;;  %v1032_v5 = vmax.f32 %v968_v18, 0.0  ;;  %v893_v34 = vand.u32 2147483647, %v829_v21  ;;  %v499_v36 = vsub.f32 %v5711_v35, %v5785_v29 }
  0x59   : > { %4949 = vmatprep.subr.bf16.mxu0 %v5827_v24  ;;  %v633_v38 = vsub.f32 1.0, %v569_v25  ;;  %v689_v55 = vmax.f32 %v625_v27, 0.0  ;;  %v901_v40 = vand.u32 2147483647, %v837_v63  ;;  %v507_v41 = vsub.f32 %v5717_v39, %v5785_v29 }
  0x5a   : > { %v1088_v42 = vmul.f32 %v1024_v32, %v692_v4  ;;  %v1096_v43 = vmul.f32 %v1032_v5, %v700_v15  ;;  %v957_v44 = vsub.f32 1.0, %v893_v34  ;;  %v563_v52 = vand.u32 2147483647, %v499_v36 }
  0x5b   : > { %v697_v53 = vmax.f32 %v633_v38, 0.0  ;;  %v965_v54 = vsub.f32 1.0, %v901_v40  ;;  %v571_v57 = vand.u32 2147483647, %v507_v41  ;;  %v831_v58 = vsub.f32 %v5727_v46, %v5741_v51 }
  0x5c   : > { %v5838_v59 = vpack.c.bf16 %v1096_v43, %v1088_v42  ;;  %v1021_v0 = vmax.f32 %v957_v44, 0.0  ;;  %v627_v3 = vsub.f32 1.0, %v563_v52  ;;  %v839_v10 = vsub.f32 %v5729_v47, %v5741_v51 }
  0x5d   : > { %v1029_v12 = vmax.f32 %v965_v54, 0.0  ;;  %v635_v16 = vsub.f32 1.0, %v571_v57  ;;  %v895_v18 = vand.u32 2147483647, %v831_v58  ;;  %v378_v4 = vshra.s32 %v5695_v22, 3 }
  0x5e   : > { %7231 = vst [vmem:[#allocation10_spill] sm:$0xff] %v5838_v59  ;;  %4965 = vmatprep.subr.bf16.mxu1 %v5838_v59  ;;  %v1085_v15 = vmul.f32 %v1021_v0, %v689_v55  ;;  %v691_v21 = vmax.f32 %v627_v3, 0.0  ;;  %v903_v25 = vand.u32 2147483647, %v839_v10  ;;  %v5846_v27 = vcvt.s32.f32 %v377_v31 }
  0x5f   : > { %v1093_v63 = vmul.f32 %v1029_v12, %v697_v53  ;;  %v699_v32 = vmax.f32 %v635_v16, 0.0  ;;  %v959_v5 = vsub.f32 1.0, %v895_v18  ;;  %v5848_v34 = vcvt.s32.f32 %v378_v4 }
  0x60   : > { %v967_v36 = vsub.f32 1.0, %v903_v25  ;;  %v393_v38 = vand.u32 7, %v5686_v17  ;;  %v394_v40 = vand.u32 7, %v5695_v22  ;;  %v514_v41 = vsub.f32 %v5846_v27, %v5758_v60 }
  0x61   : > { %v5854_v55 = vpack.c.bf16 %v1093_v63, %v1085_v15  ;;  %v1023_v42 = vmax.f32 %v959_v5, 0.0  ;;  %v522_v31 = vsub.f32 %v5848_v34, %v5758_v60  ;;  %v516_v43 = vsub.f32 %v5846_v27, %v5761_v61 }
  0x62   : > { %v1031_v44 = vmax.f32 %v967_v36, 0.0  ;;  %v5860_v52 = vcvt.s32.f32 %v393_v38  ;;  %v5862_v53 = vcvt.s32.f32 %v394_v40  ;;  %v578_v17 = vand.u32 2147483647, %v514_v41 }
  0x63   : > { %4951 = vmatpush1.bf16.msra.mxu0 %v5854_v55  ;;  %v1087_v22 = vmul.f32 %v1023_v42, %v691_v21  ;;  %v586_v54 = vand.u32 2147483647, %v522_v31  ;;  %v524_v57 = vsub.f32 %v5848_v34, %v5761_v61  ;;  %v580_v58 = vand.u32 2147483647, %v516_v43 }
  0x64   : > { %v1095_v0 = vmul.f32 %v1031_v44, %v699_v32  ;;  %v642_v3 = vsub.f32 1.0, %v578_v17  ;;  %v846_v10 = vsub.f32 %v5860_v52, %v5732_v48  ;;  %v854_v12 = vsub.f32 %v5862_v53, %v5732_v48 }
  0x65   : > { %v650_v16 = vsub.f32 1.0, %v586_v54  ;;  %v588_v18 = vand.u32 2147483647, %v524_v57  ;;  %v644_v4 = vsub.f32 1.0, %v580_v58  ;;  %v848_v15 = vsub.f32 %v5860_v52, %v5735_v49 }
  0x66   : > { %v5873_v21 = vpack.c.bf16 %v1095_v0, %v1087_v22  ;;  %v706_v25 = vmax.f32 %v642_v3, 0.0  ;;  %v910_v63 = vand.u32 2147483647, %v846_v10  ;;  %v918_v5 = vand.u32 2147483647, %v854_v12 }
  0x67   : > { %v714_v36 = vmax.f32 %v650_v16, 0.0  ;;  %v652_v32 = vsub.f32 1.0, %v588_v18  ;;  %v708_v38 = vmax.f32 %v644_v4, 0.0  ;;  %v856_v40 = vsub.f32 %v5862_v53, %v5735_v49 }
  0x68   : > { %7232 = vst [vmem:[#allocation11_spill] sm:$0xff] %v5873_v21  ;;  %4967 = vmatpush1.bf16.msra.mxu1 %v5873_v21  ;;  %v974_v41 = vsub.f32 1.0, %v910_v63  ;;  %v982_v42 = vsub.f32 1.0, %v918_v5  ;;  %v912_v31 = vand.u32 2147483647, %v848_v15  ;;  %v513_v43 = vsub.f32 %v5846_v27, %v5764_v62 }
  0x69   : > { %v716_v44 = vmax.f32 %v652_v32, 0.0  ;;  %v920_v17 = vand.u32 2147483647, %v856_v40  ;;  %v521_v22 = vsub.f32 %v5848_v34, %v5764_v62  ;;  %v845_v54 = vsub.f32 %v5860_v52, %v5738_v50 }
  0x6a   : > { %v1038_v57 = vmax.f32 %v974_v41, 0.0  ;;  %v1046_v58 = vmax.f32 %v982_v42, 0.0  ;;  %v976_v0 = vsub.f32 1.0, %v912_v31  ;;  %v577_v3 = vand.u32 2147483647, %v513_v43 }
  0x6b   : > { %v984_v10 = vsub.f32 1.0, %v920_v17  ;;  %v585_v12 = vand.u32 2147483647, %v521_v22  ;;  %v853_v16 = vsub.f32 %v5862_v53, %v5738_v50  ;;  %v909_v18 = vand.u32 2147483647, %v845_v54 }
  0x6c   : > { %v1102_v4 = vmul.f32 %v1038_v57, %v706_v25  ;;  %v1110_v15 = vmul.f32 %v1046_v58, %v714_v36  ;;  %v1040_v63 = vmax.f32 %v976_v0, 0.0  ;;  %v641_v5 = vsub.f32 1.0, %v577_v3 }
  0x6d   : > { %v1048_v32 = vmax.f32 %v984_v10, 0.0  ;;  %v649_v40 = vsub.f32 1.0, %v585_v12  ;;  %v917_v1 = vand.u32 2147483647, %v853_v16  ;;  %v973_v21 = vsub.f32 1.0, %v909_v18 }
  0x6e   : > { %v5886_v59 = vpack.c.bf16 %v1110_v15, %v1102_v4  ;;  %v1104_v41 = vmul.f32 %v1040_v63, %v708_v38  ;;  %v705_v42 = vmax.f32 %v641_v5, 0.0  ;;  %v515_v31 = vsub.f32 %v5846_v27, %v5785_v29 }
  0x6f   : > { %v1112_v43 = vmul.f32 %v1048_v32, %v716_v44  ;;  %v713_v17 = vmax.f32 %v649_v40, 0.0  ;;  %v981_v22 = vsub.f32 1.0, %v917_v1  ;;  %v1037_v45 = vmax.f32 %v973_v21, 0.0 }
  0x70   : > { %4953 = vmatprep.subr.bf16.mxu0 %v5886_v59  ;;  %v523_v25 = vsub.f32 %v5848_v34, %v5785_v29  ;;  %v579_v36 = vand.u32 2147483647, %v515_v31  ;;  %v847_v54 = vsub.f32 %v5860_v52, %v5741_v51  ;;  %v855_v38 = vsub.f32 %v5862_v53, %v5741_v51 }
  0x71   : > { %v5897_v57 = vpack.c.bf16 %v1112_v43, %v1104_v41  ;;  %v1045_v58 = vmax.f32 %v981_v22, 0.0  ;;  %v1101_v0 = vmul.f32 %v1037_v45, %v705_v42  ;;  %v372_v44 = vadd.s32 56, %v5645_v2 }
  0x72   : > { %v587_v1 = vand.u32 2147483647, %v523_v25  ;;  %v643_v21 = vsub.f32 1.0, %v579_v36  ;;  %v911_v3 = vand.u32 2147483647, %v847_v54  ;;  %v379_v10 = vshra.s32 %v5698_v23, 3 }
  0x73   : > { %7233 = vst [vmem:[#allocation12_spill] sm:$0xff] %v5897_v57  ;;  %4969 = vmatprep.subr.bf16.mxu1 %v5897_v57  ;;  %v1109_v12 = vmul.f32 %v1045_v58, %v713_v17  ;;  %v919_v16 = vand.u32 2147483647, %v855_v38  ;;  %v380_v18 = vshra.s32 %v372_v44, 3  ;;  %v395_v4 = vand.u32 7, %v5698_v23 }
  0x74   : > { %v651_v15 = vsub.f32 1.0, %v587_v1  ;;  %v707_v63 = vmax.f32 %v643_v21, 0.0  ;;  %v975_v5 = vsub.f32 1.0, %v911_v3  ;;  %v5903_v32 = vcvt.s32.f32 %v379_v10 }
  0x75   : > { %v5905_v45 = vpack.c.bf16 %v1109_v12, %v1101_v0  ;;  %v983_v40 = vsub.f32 1.0, %v919_v16  ;;  %v5907_v41 = vcvt.s32.f32 %v380_v18  ;;  %v396_v42 = vand.u32 7, %v372_v44 }
  0x76   : > { %v715_v31 = vmax.f32 %v651_v15, 0.0  ;;  %v1039_v43 = vmax.f32 %v975_v5, 0.0  ;;  %v5909_v22 = vcvt.s32.f32 %v395_v4  ;;  %v530_v17 = vsub.f32 %v5903_v32, %v5758_v60 }
  0x77   : > { %4955 = vmatpush1.bf16.msra.mxu0 %v5905_v45  ;;  %v1047_v23 = vmax.f32 %v983_v40, 0.0  ;;  %v5914_v25 = vcvt.s32.f32 %v396_v42  ;;  %v538_v36 = vsub.f32 %v5907_v41, %v5758_v60  ;;  %v532_v54 = vsub.f32 %v5903_v32, %v5761_v61 }
  0x78   : > { %v1103_v38 = vmul.f32 %v1039_v43, %v707_v63  ;;  %v594_v58 = vand.u32 2147483647, %v530_v17  ;;  %v862_v0 = vsub.f32 %v5909_v22, %v5732_v48  ;;  %v540_v44 = vsub.f32 %v5907_v41, %v5761_v61 }
  0x79   : > { %v1111_v1 = vmul.f32 %v1047_v23, %v715_v31  ;;  %v602_v21 = vand.u32 2147483647, %v538_v36  ;;  %v870_v3 = vsub.f32 %v5914_v25, %v5732_v48  ;;  %v596_v10 = vand.u32 2147483647, %v532_v54 }
  0x7a   : > { %v658_v12 = vsub.f32 1.0, %v594_v58  ;;  %v926_v16 = vand.u32 2147483647, %v862_v0  ;;  %v604_v60 = vand.u32 2147483647, %v540_v44  ;;  %v864_v18 = vsub.f32 %v5909_v22, %v5735_v49 }
  0x7b   : > { %v5928_v4 = vpack.c.bf16 %v1111_v1, %v1103_v38  ;;  %v666_v15 = vsub.f32 1.0, %v602_v21  ;;  %v934_v63 = vand.u32 2147483647, %v870_v3  ;;  %v660_v5 = vsub.f32 1.0, %v596_v10 }
  0x7c   : > { %v722_v40 = vmax.f32 %v658_v12, 0.0  ;;  %v990_v42 = vsub.f32 1.0, %v926_v16  ;;  %v668_v61 = vsub.f32 1.0, %v604_v60  ;;  %v872_v31 = vsub.f32 %v5914_v25, %v5735_v49 }
  0x7d   : > { %7234 = vst [vmem:[#allocation13_spill] sm:$0xff] %v5928_v4  ;;  %4971 = vmatpush1.bf16.msra.mxu1 %v5928_v4  ;;  %v730_v48 = vmax.f32 %v666_v15, 0.0  ;;  %v998_v43 = vsub.f32 1.0, %v934_v63  ;;  %v724_v17 = vmax.f32 %v660_v5, 0.0  ;;  %v928_v23 = vand.u32 2147483647, %v864_v18 }
  0x7e   : > { %v1054_v36 = vmax.f32 %v990_v42, 0.0  ;;  %v732_v54 = vmax.f32 %v668_v61, 0.0  ;;  %v936_v58 = vand.u32 2147483647, %v872_v31  ;;  %v529_v38 = vsub.f32 %v5903_v32, %v5764_v62 }
  0x7f   : > { %v1062_v0 = vmax.f32 %v998_v43, 0.0  ;;  %v992_v44 = vsub.f32 1.0, %v928_v23  ;;  %v537_v1 = vsub.f32 %v5907_v41, %v5764_v62  ;;  %v861_v49 = vsub.f32 %v5909_v22, %v5738_v50 }
  0x80   : > { %v1118_v21 = vmul.f32 %v1054_v36, %v722_v40  ;;  %v1000_v3 = vsub.f32 1.0, %v936_v58  ;;  %v593_v10 = vand.u32 2147483647, %v529_v38  ;;  %v869_v12 = vsub.f32 %v5914_v25, %v5738_v50  ;;  %v217_v58 = vld [vmem:[%s5679_s15 + $0x10] sm:$0x77] }
  0x81   : > { %v1126_v16 = vmul.f32 %v1062_v0, %v730_v48  ;;  %v1056_v60 = vmax.f32 %v992_v44, 0.0  ;;  %v601_v18 = vand.u32 2147483647, %v537_v1  ;;  %v925_v15 = vand.u32 2147483647, %v861_v49 }
  0x82   : > { %v1064_v63 = vmax.f32 %v1000_v3, 0.0  ;;  %v657_v5 = vsub.f32 1.0, %v593_v10  ;;  %v933_v42 = vand.u32 2147483647, %v869_v12  ;;  %v531_v62 = vsub.f32 %v5903_v32, %v5785_v29  ;;  %v218_v3 = vld [vmem:[%s5679_s15 + $0x18] sm:$0x77] }
  0x83   : > { %v5943_v61 = vpack.c.bf16 %v1126_v16, %v1118_v21  ;;  %v1120_v31 = vmul.f32 %v1056_v60, %v724_v17  ;;  %v665_v40 = vsub.f32 1.0, %v601_v18  ;;  %v989_v43 = vsub.f32 1.0, %v925_v15 }
  0x84   : > { %v1128_v23 = vmul.f32 %v1064_v63, %v732_v54  ;;  %v721_v50 = vmax.f32 %v657_v5, 0.0  ;;  %v997_v48 = vsub.f32 1.0, %v933_v42  ;;  %v539_v36 = vsub.f32 %v5907_v41, %v5785_v29 }
  0x85   : > { %7235 = vst [vmem:[#allocation14_spill] sm:$0xff] %v5943_v61  ;;  %4957 = vmatprep.subr.bf16.mxu0 %v5943_v61  ;;  %v729_v38 = vmax.f32 %v665_v40, 0.0  ;;  %v1053_v0 = vmax.f32 %v989_v43, 0.0  ;;  %v595_v44 = vand.u32 2147483647, %v531_v62  ;;  %v863_v17 = vsub.f32 %v5909_v22, %v5741_v51 }
  0x86   : > { %v5951_v1 = vpack.c.bf16 %v1128_v23, %v1120_v31  ;;  %v1061_v49 = vmax.f32 %v997_v48, 0.0  ;;  %v603_v54 = vand.u32 2147483647, %v539_v36  ;;  %v871_v21 = vsub.f32 %v5914_v25, %v5741_v51 }
  0x87   : > { %v1117_v29 = vmul.f32 %v1053_v0, %v721_v50  ;;  %v659_v10 = vsub.f32 1.0, %v595_v44  ;;  %v927_v12 = vand.u32 2147483647, %v863_v17  ;;  %v223_v16 = vmul.f32 %v5681_v14, %v217_v58  ;;  %v5977_v0 = vld [vmem:[%s5963_s19] sm:$0xff] }
  0x88   : > { %7236 = vst [vmem:[#allocation15_spill] sm:$0xff] %v5951_v1  ;;  %4973 = vmatprep.subr.bf16.mxu1 %v5951_v1  ;;  %v1125_v60 = vmul.f32 %v1061_v49, %v729_v38  ;;  %v667_v18 = vsub.f32 1.0, %v603_v54  ;;  %v935_v15 = vand.u32 2147483647, %v871_v21  ;;  %v235_v63 = vmul.f32 %v5708_v33, %v217_v58 }
  0x89   : > { %v723_v5 = vmax.f32 %v659_v10, 0.0  ;;  %v991_v42 = vsub.f32 1.0, %v927_v12  ;;  %v229_v51 = vadd.f32 %v5703_v28, %v223_v16  ;;  %v224_v62 = vmul.f32 %v5681_v14, %v218_v3 }
  0x8a   : > { %v5967_v31 = vpack.c.bf16 %v1125_v60, %v1117_v29  ;;  %v731_v40 = vmax.f32 %v667_v18, 0.0  ;;  %v999_v43 = vsub.f32 1.0, %v935_v15  ;;  %v241_v23 = vadd.f32 %v5714_v37, %v235_v63 }
  0x8b   : > { %v1055_v50 = vmax.f32 %v991_v42, 0.0  ;;  %v764_v48 = vrot.slane %v229_v51, %v5667_v9  ;;  %v5972_v36 = vadd.f32 %v5703_v28, %v224_v62  ;;  %v236_v58 = vmul.f32 %v5708_v33, %v218_v3 }
  0x8c   : > { %7237 = vst [vmem:[#allocation16_spill] sm:$0xff] %v5967_v31  ;;  %4959 = vmatpush1.bf16.msra.mxu0 %v5967_v31  ;;  %v1063_v38 = vmax.f32 %v999_v43, 0.0  ;;  %v432_v14 = vrot.slane %v241_v23, %v5661_v7  ;;  %v428_v44 = vrot.slane %v241_v23, %v5658_v6  ;;  %v760_v17 = vrot.slane %v229_v51, %v5664_v8  ;;  %v6020_v51 = vld [vmem:[%s5963_s19 + $0x8] sm:$0xff] }
  0x8d   : > { %v1119_v49 = vmul.f32 %v1055_v50, %v723_v5  ;;  %v5983_v54 = vrot.slane %v764_v48, %v5664_v8  ;;  %v5986_v28 = vadd.f32 %v5714_v37, %v236_v58  ;;  %v772_v33 = vrot.slane %v5972_v36, %v5667_v9 }
  0x8e   : > { %v1127_v21 = vmul.f32 %v1063_v38, %v731_v40  ;;  %v5991_v3 = vrot.slane %v432_v14, %v5658_v6  ;;  %v5994_v29 = vrot.slane %v428_v44, %v5658_v6  ;;  %v5997_v10 = vrot.slane %v760_v17, %v5664_v8 }
  0x8f   : > { %4861 = vmatmul.mubr.msk.f32.vlgmr.msra.gmra.mrb[0].mxu0 %vm1135_vm0, %v5977_v0  ;;  %v818_v37 = vsub.f32 %v5672_v13, %v5983_v54  ;;  %v826_v12 = vsub.f32 %v5691_v20, %v5983_v54  ;;  %v440_v16 = vrot.slane %v5986_v28, %v5661_v7  ;;  %v6008_v60 = vrot.slane %v772_v33, %v5664_v8 }
  0x90   : > { %v6010_v18 = vpack.c.bf16 %v1127_v21, %v1119_v49  ;;  %v486_v15 = vsub.f32 %v5670_v11, %v5991_v3  ;;  %v494_v63 = vsub.f32 %v5689_v19, %v5991_v3  ;;  %v485_v5 = vsub.f32 %v5670_v11, %v5994_v29 }
  0x91   : > { %v7239_v42 = vmov 0.0   ;;  %v882_v62 = vand.u32 2147483647, %v818_v37  ;;  %v890_v40 = vand.u32 2147483647, %v826_v12  ;;  %v6023_v43 = vrot.slane %v440_v16, %v5658_v6 }
  0x92   : > { %7238 = vst [vmem:[#allocation17_spill] sm:$0xff] %v6010_v18  ;;  %1212 = vmatprep.mubr.f32.mxu0 %v7239_v42  ;;  %v820_v23 = vsub.f32 %v5672_v13, %v6008_v60  ;;  %4975 = vmatpush1.bf16.msra.mxu1 %v6010_v18  ;;  %v550_v50 = vand.u32 2147483647, %v486_v15  ;;  %v558_v48 = vand.u32 2147483647, %v494_v63  ;;  %v828_v58 = vsub.f32 %v5691_v20, %v6008_v60 }
  0x93   : > { %v493_v38 = vsub.f32 %v5689_v19, %v5994_v29  ;;  %v946_v14 = vsub.f32 1.0, %v882_v62  ;;  %v954_v44 = vsub.f32 1.0, %v890_v40  ;;  %v488_v17 = vsub.f32 %v5670_v11, %v6023_v43  ;;  %4862 = vmatmul.mubr.msk.f32.gmra.mrb[2].mxu0 %vm1135_vm0, %v6020_v51 }
  0x94   : > { %v496_v49 = vsub.f32 %v5689_v19, %v6023_v43  ;;  %v614_v33 = vsub.f32 1.0, %v550_v50  ;;  %v622_v21 = vsub.f32 1.0, %v558_v48  ;;  %v884_v37 = vand.u32 2147483647, %v820_v23  ;;  %1360 = vmatprep.mubr.f32.mxu0 %v7239_v42 }
  0x95   : > { %v892_v12 = vand.u32 2147483647, %v828_v58  ;;  %4863 = vmatmul.mubr.msk.f32.vlgmr.msra.gmra.mrb[0].mxu1 %vm1135_vm0, %v5977_v0  ;;  %v1010_v16 = vmax.f32 %v946_v14, 0.0  ;;  %v1018_v15 = vmax.f32 %v954_v44, 0.0  ;;  %v552_v63 = vand.u32 2147483647, %v488_v17 }
  0x96   : > { %v560_v62 = vand.u32 2147483647, %v496_v49  ;;  %v678_v40 = vmax.f32 %v614_v33, 0.0  ;;  %v686_v7 = vmax.f32 %v622_v21, 0.0  ;;  %v948_v9 = vsub.f32 1.0, %v884_v37  ;;  %1289 = vmatprep.mubr.f32.mxu1 %v7239_v42 }
  0x97   : > { %v956_v2 = vsub.f32 1.0, %v892_v12  ;;  %v616_v18 = vsub.f32 1.0, %v552_v63  ;;  %v549_v48 = vand.u32 2147483647, %v485_v5  ;;  %v557_v23 = vand.u32 2147483647, %v493_v38 }
  0x98   : > { %v624_v50 = vsub.f32 1.0, %v560_v62  ;;  %v1074_v58 = vmul.f32 %v1010_v16, %v678_v40  ;;  %v1082_v1 = vmul.f32 %v1018_v15, %v686_v7  ;;  %v1012_v4 = vmax.f32 %v948_v9, 0.0 }
  0x99   : > { %v1020_v31 = vmax.f32 %v956_v2, 0.0  ;;  %v680_v57 = vmax.f32 %v616_v18, 0.0  ;;  %v613_v14 = vsub.f32 1.0, %v549_v48  ;;  %v621_v44 = vsub.f32 1.0, %v557_v23  ;;  %4864 = vmatmul.mubr.msk.f32.gmra.mrb[2].mxu1 %vm1135_vm0, %v6020_v51 }
  0x9a   : > { %v688_v61 = vmax.f32 %v624_v50, 0.0  ;;  %v6044_v17 = vpack.c.bf16 %v1082_v1, %v1074_v58  ;;  %v817_v49 = vsub.f32 %v5672_v13, %v5997_v10  ;;  %v825_v5 = vsub.f32 %v5691_v20, %v5997_v10  ;;  %1437 = vmatprep.mubr.f32.mxu1 %v7239_v42 }
  0x9b   : > { %v436_v7 = vrot.slane %v5986_v28, %v5658_v6  ;;  %v1076_v2 = vmul.f32 %v1012_v4, %v680_v57  ;;  %v677_v18 = vmax.f32 %v613_v14, 0.0  ;;  %v685_v38 = vmax.f32 %v621_v44, 0.0 }
  0x9c   : > { %v1084_v9 = vmul.f32 %v1020_v31, %v688_v61  ;;  %4977 = vmatprep.subr.bf16.mxu0 %v6044_v17  ;;  %v881_v33 = vand.u32 2147483647, %v817_v49  ;;  %v889_v1 = vand.u32 2147483647, %v825_v5  ;;  %v768_v37 = vrot.slane %v5972_v36, %v5664_v8 }
  0x9d   : > { %v6055_v21 = vrot.slane %v436_v7, %v5658_v6  ;;  %v502_v28 = vsub.f32 %v5711_v35, %v5991_v3  ;;  %v510_v57 = vsub.f32 %v5717_v39, %v5991_v3  ;;  %v834_v4 = vsub.f32 %v5727_v46, %v5983_v54 }
  0x9e   : > { %v6059_v12 = vpack.c.bf16 %v1084_v9, %v1076_v2  ;;  %v945_v61 = vsub.f32 1.0, %v881_v33  ;;  %v953_v31 = vsub.f32 1.0, %v889_v1  ;;  %v6073_v36 = vrot.slane %v768_v37, %v5664_v8 }
  0x9f   : > { %v487_v16 = vsub.f32 %v5670_v11, %v6055_v21  ;;  %v495_v15 = vsub.f32 %v5689_v19, %v6055_v21  ;;  %v566_v63 = vand.u32 2147483647, %v502_v28  ;;  %v574_v62 = vand.u32 2147483647, %v510_v57 }
  0xa0   : > { %4993 = vmatprep.subr.bf16.mxu1 %v6059_v12  ;;  %v842_v40 = vsub.f32 %v5729_v47, %v5983_v54  ;;  %v1009_v50 = vmax.f32 %v945_v61, 0.0  ;;  %v1017_v48 = vmax.f32 %v953_v31, 0.0  ;;  %v819_v11 = vsub.f32 %v5672_v13, %v6073_v36 }
  0xa1   : > { %v551_v23 = vand.u32 2147483647, %v487_v16  ;;  %v559_v58 = vand.u32 2147483647, %v495_v15  ;;  %v827_v19 = vsub.f32 %v5691_v20, %v6073_v36  ;;  %v630_v14 = vsub.f32 1.0, %v566_v63 }
  0xa2   : > { %v638_v44 = vsub.f32 1.0, %v574_v62  ;;  %v1073_v49 = vmul.f32 %v1009_v50, %v677_v18  ;;  %v1081_v5 = vmul.f32 %v1017_v48, %v685_v38  ;;  %v883_v9 = vand.u32 2147483647, %v819_v11 }
  0xa3   : > { %v615_v7 = vsub.f32 1.0, %v551_v23  ;;  %v623_v2 = vsub.f32 1.0, %v559_v58  ;;  %v891_v33 = vand.u32 2147483647, %v827_v19  ;;  %v694_v1 = vmax.f32 %v630_v14, 0.0 }
  0xa4   : > { %v702_v37 = vmax.f32 %v638_v44, 0.0  ;;  %v6081_v28 = vpack.c.bf16 %v1081_v5, %v1073_v49  ;;  %v898_v31 = vand.u32 2147483647, %v834_v4  ;;  %v947_v16 = vsub.f32 1.0, %v883_v9 }
  0xa5   : > { %v679_v57 = vmax.f32 %v615_v7, 0.0  ;;  %v687_v61 = vmax.f32 %v623_v2, 0.0  ;;  %v955_v13 = vsub.f32 1.0, %v891_v33  ;;  %v906_v15 = vand.u32 2147483647, %v842_v40 }
  0xa6   : > { %v504_v20 = vsub.f32 %v5711_v35, %v6023_v43  ;;  %4979 = vmatpush1.bf16.msra.mxu0 %v6081_v28  ;;  %v962_v18 = vsub.f32 1.0, %v898_v31  ;;  %v512_v38 = vsub.f32 %v5717_v39, %v6023_v43  ;;  %v836_v63 = vsub.f32 %v5727_v46, %v6008_v60 }
  0xa7   : > { %v844_v62 = vsub.f32 %v5729_v47, %v6008_v60  ;;  %v1011_v50 = vmax.f32 %v947_v16, 0.0  ;;  %v1019_v4 = vmax.f32 %v955_v13, 0.0  ;;  %v970_v48 = vsub.f32 1.0, %v906_v15 }
  0xa8   : > { %v568_v23 = vand.u32 2147483647, %v504_v20  ;;  %v1026_v40 = vmax.f32 %v962_v18, 0.0  ;;  %v576_v58 = vand.u32 2147483647, %v512_v38  ;;  %v501_v19 = vsub.f32 %v5711_v35, %v5994_v29 }
  0xa9   : > { %v900_v11 = vand.u32 2147483647, %v836_v63  ;;  %v1075_v14 = vmul.f32 %v1011_v50, %v679_v57  ;;  %v1083_v44 = vmul.f32 %v1019_v4, %v687_v61  ;;  %v1034_v49 = vmax.f32 %v970_v48, 0.0 }
  0xaa   : > { %v632_v5 = vsub.f32 1.0, %v568_v23  ;;  %v1090_v7 = vmul.f32 %v1026_v40, %v694_v1  ;;  %v640_v2 = vsub.f32 1.0, %v576_v58  ;;  %v908_v9 = vand.u32 2147483647, %v844_v62 }
  0xab   : > { %v964_v33 = vsub.f32 1.0, %v900_v11  ;;  %v6094_v31 = vpack.c.bf16 %v1083_v44, %v1075_v14  ;;  %v1098_v16 = vmul.f32 %v1034_v49, %v702_v37  ;;  %v509_v15 = vsub.f32 %v5717_v39, %v5994_v29 }
  0xac   : > { %v696_v13 = vmax.f32 %v632_v5, 0.0  ;;  %v704_v20 = vmax.f32 %v640_v2, 0.0  ;;  %v972_v18 = vsub.f32 1.0, %v908_v9  ;;  %v565_v63 = vand.u32 2147483647, %v501_v19 }
  0xad   : > { %v1028_v38 = vmax.f32 %v964_v33, 0.0  ;;  %4995 = vmatpush1.bf16.msra.mxu1 %v6094_v31  ;;  %v6099_v57 = vpack.c.bf16 %v1098_v16, %v1090_v7  ;;  %v573_v61 = vand.u32 2147483647, %v509_v15  ;;  %v833_v1 = vsub.f32 %v5727_v46, %v5997_v10 }
  0xae   : > { %v841_v62 = vsub.f32 %v5729_v47, %v5997_v10  ;;  %v1036_v37 = vmax.f32 %v972_v18, 0.0  ;;  %v629_v4 = vsub.f32 1.0, %v565_v63  ;;  %v503_v48 = vsub.f32 %v5711_v35, %v6055_v21 }
  0xaf   : > { %v1092_v50 = vmul.f32 %v1028_v38, %v696_v13  ;;  %4981 = vmatprep.subr.bf16.mxu0 %v6099_v57  ;;  %v637_v23 = vsub.f32 1.0, %v573_v61  ;;  %v897_v40 = vand.u32 2147483647, %v833_v1  ;;  %v511_v11 = vsub.f32 %v5717_v39, %v6055_v21 }
  0xb0   : > { %v905_v58 = vand.u32 2147483647, %v841_v62  ;;  %v1100_v19 = vmul.f32 %v1036_v37, %v704_v20  ;;  %v693_v14 = vmax.f32 %v629_v4, 0.0  ;;  %v567_v44 = vand.u32 2147483647, %v503_v48 }
  0xb1   : > { %v835_v49 = vsub.f32 %v5727_v46, %v6073_v36  ;;  %v701_v5 = vmax.f32 %v637_v23, 0.0  ;;  %v961_v7 = vsub.f32 1.0, %v897_v40  ;;  %v575_v9 = vand.u32 2147483647, %v511_v11 }
  0xb2   : > { %v969_v2 = vsub.f32 1.0, %v905_v58  ;;  %v6112_v33 = vpack.c.bf16 %v1100_v19, %v1092_v50  ;;  %v631_v35 = vsub.f32 1.0, %v567_v44  ;;  %v843_v16 = vsub.f32 %v5729_v47, %v6073_v36 }
  0xb3   : > { %v899_v13 = vand.u32 2147483647, %v835_v49  ;;  %v1025_v15 = vmax.f32 %v961_v7, 0.0  ;;  %v639_v39 = vsub.f32 1.0, %v575_v9  ;;  %v518_v20 = vsub.f32 %v5846_v27, %v5991_v3 }
  0xb4   : > { %v1033_v18 = vmax.f32 %v969_v2, 0.0  ;;  %4997 = vmatprep.subr.bf16.mxu1 %v6112_v33  ;;  %v695_v46 = vmax.f32 %v631_v35, 0.0  ;;  %v907_v38 = vand.u32 2147483647, %v843_v16  ;;  %v526_v61 = vsub.f32 %v5848_v34, %v5991_v3 }
  0xb5   : > { %v963_v63 = vsub.f32 1.0, %v899_v13  ;;  %v1089_v1 = vmul.f32 %v1025_v15, %v693_v14  ;;  %v703_v37 = vmax.f32 %v639_v39, 0.0  ;;  %v582_v50 = vand.u32 2147483647, %v518_v20 }
  0xb6   : > { %v1097_v62 = vmul.f32 %v1033_v18, %v701_v5  ;;  %v971_v47 = vsub.f32 1.0, %v907_v38  ;;  %v590_v48 = vand.u32 2147483647, %v526_v61  ;;  %v850_v23 = vsub.f32 %v5860_v52, %v5983_v54 }
  0xb7   : > { %v1027_v4 = vmax.f32 %v963_v63, 0.0  ;;  %v646_v58 = vsub.f32 1.0, %v582_v50  ;;  %v858_v11 = vsub.f32 %v5862_v53, %v5983_v54  ;;  %v520_v19 = vsub.f32 %v5846_v27, %v6023_v43 }
  0xb8   : > { %v6123_v40 = vpack.c.bf16 %v1097_v62, %v1089_v1  ;;  %v1035_v44 = vmax.f32 %v971_v47, 0.0  ;;  %v654_v49 = vsub.f32 1.0, %v590_v48  ;;  %v914_v5 = vand.u32 2147483647, %v850_v23 }
  0xb9   : > { %v1091_v14 = vmul.f32 %v1027_v4, %v695_v46  ;;  %v710_v7 = vmax.f32 %v646_v58, 0.0  ;;  %v922_v2 = vand.u32 2147483647, %v858_v11  ;;  %v528_v9 = vsub.f32 %v5848_v34, %v6023_v43 }
  0xba   : > { %4983 = vmatpush1.bf16.msra.mxu0 %v6123_v40  ;;  %v584_v35 = vand.u32 2147483647, %v520_v19  ;;  %v1099_v16 = vmul.f32 %v1035_v44, %v703_v37  ;;  %v718_v13 = vmax.f32 %v654_v49, 0.0  ;;  %v978_v15 = vsub.f32 1.0, %v914_v5 }
  0xbb   : > { %v852_v18 = vsub.f32 %v5860_v52, %v6008_v60  ;;  %v986_v39 = vsub.f32 1.0, %v922_v2  ;;  %v592_v20 = vand.u32 2147483647, %v528_v9  ;;  %v860_v46 = vsub.f32 %v5862_v53, %v6008_v60 }
  0xbc   : > { %v648_v38 = vsub.f32 1.0, %v584_v35  ;;  %v6136_v63 = vpack.c.bf16 %v1099_v16, %v1091_v14  ;;  %v1042_v61 = vmax.f32 %v978_v15, 0.0  ;;  %v517_v62 = vsub.f32 %v5846_v27, %v5994_v29 }
  0xbd   : > { %v916_v1 = vand.u32 2147483647, %v852_v18  ;;  %v1050_v50 = vmax.f32 %v986_v39, 0.0  ;;  %v656_v37 = vsub.f32 1.0, %v592_v20  ;;  %v924_v4 = vand.u32 2147483647, %v860_v46 }
  0xbe   : > { %v712_v47 = vmax.f32 %v648_v38, 0.0  ;;  %4999 = vmatpush1.bf16.msra.mxu1 %v6136_v63  ;;  %v1106_v48 = vmul.f32 %v1042_v61, %v710_v7  ;;  %v525_v58 = vsub.f32 %v5848_v34, %v5994_v29  ;;  %v581_v11 = vand.u32 2147483647, %v517_v62 }
  0xbf   : > { %v980_v23 = vsub.f32 1.0, %v916_v1  ;;  %v1114_v19 = vmul.f32 %v1050_v50, %v718_v13  ;;  %v720_v44 = vmax.f32 %v656_v37, 0.0  ;;  %v988_v14 = vsub.f32 1.0, %v924_v4 }
  0xc0   : > { %v849_v49 = vsub.f32 %v5860_v52, %v5997_v10  ;;  %v589_v2 = vand.u32 2147483647, %v525_v58  ;;  %v645_v9 = vsub.f32 1.0, %v581_v11  ;;  %v857_v35 = vsub.f32 %v5862_v53, %v5997_v10 }
  0xc1   : > { %v1044_v5 = vmax.f32 %v980_v23, 0.0  ;;  %v6147_v16 = vpack.c.bf16 %v1114_v19, %v1106_v48  ;;  %v1052_v7 = vmax.f32 %v988_v14, 0.0  ;;  %v519_v18 = vsub.f32 %v5846_v27, %v6055_v21 }
  0xc2   : > { %v913_v15 = vand.u32 2147483647, %v849_v49  ;;  %v653_v13 = vsub.f32 1.0, %v589_v2  ;;  %v709_v20 = vmax.f32 %v645_v9, 0.0  ;;  %v921_v38 = vand.u32 2147483647, %v857_v35 }
  0xc3   : > { %v1108_v39 = vmul.f32 %v1044_v5, %v712_v47  ;;  %4985 = vmatprep.subr.bf16.mxu0 %v6147_v16  ;;  %v1116_v46 = vmul.f32 %v1052_v7, %v720_v44  ;;  %v527_v1 = vsub.f32 %v5848_v34, %v6055_v21  ;;  %v583_v62 = vand.u32 2147483647, %v519_v18 }
  0xc4   : > { %v977_v61 = vsub.f32 1.0, %v913_v15  ;;  %v717_v50 = vmax.f32 %v653_v13, 0.0  ;;  %v985_v37 = vsub.f32 1.0, %v921_v38  ;;  %v851_v4 = vsub.f32 %v5860_v52, %v6073_v36 }
  0xc5   : > { %v859_v27 = vsub.f32 %v5862_v53, %v6073_v36  ;;  %v6158_v47 = vpack.c.bf16 %v1116_v46, %v1108_v39  ;;  %v591_v23 = vand.u32 2147483647, %v527_v1  ;;  %v647_v58 = vsub.f32 1.0, %v583_v62 }
  0xc6   : > { %v1041_v48 = vmax.f32 %v977_v61, 0.0  ;;  %v1049_v11 = vmax.f32 %v985_v37, 0.0  ;;  %v915_v19 = vand.u32 2147483647, %v851_v4  ;;  %v534_v34 = vsub.f32 %v5903_v32, %v5991_v3 }
  0xc7   : > { %v923_v44 = vand.u32 2147483647, %v859_v27  ;;  %5001 = vmatprep.subr.bf16.mxu1 %v6158_v47  ;;  %v655_v49 = vsub.f32 1.0, %v591_v23  ;;  %v711_v5 = vmax.f32 %v647_v58, 0.0  ;;  %v542_v52 = vsub.f32 %v5907_v41, %v5991_v3 }
  0xc8   : > { %v1105_v14 = vmul.f32 %v1041_v48, %v709_v20  ;;  %v1113_v53 = vmul.f32 %v1049_v11, %v717_v50  ;;  %v979_v2 = vsub.f32 1.0, %v915_v19  ;;  %v598_v35 = vand.u32 2147483647, %v534_v34 }
  0xc9   : > { %v987_v9 = vsub.f32 1.0, %v923_v44  ;;  %v719_v7 = vmax.f32 %v655_v49, 0.0  ;;  %v606_v15 = vand.u32 2147483647, %v542_v52  ;;  %v866_v18 = vsub.f32 %v5909_v22, %v5983_v54 }
  0xca   : > { %v874_v39 = vsub.f32 %v5914_v25, %v5983_v54  ;;  %v6169_v13 = vpack.c.bf16 %v1113_v53, %v1105_v14  ;;  %v1043_v20 = vmax.f32 %v979_v2, 0.0  ;;  %v662_v46 = vsub.f32 1.0, %v598_v35 }
  0xcb   : > { %v1051_v38 = vmax.f32 %v987_v9, 0.0  ;;  %v670_v61 = vsub.f32 1.0, %v606_v15  ;;  %v930_v1 = vand.u32 2147483647, %v866_v18  ;;  %v536_v62 = vsub.f32 %v5903_v32, %v6023_v43 }
  0xcc   : > { %v938_v3 = vand.u32 2147483647, %v874_v39  ;;  %4987 = vmatpush1.bf16.msra.mxu0 %v6169_v13  ;;  %v1107_v50 = vmul.f32 %v1043_v20, %v711_v5  ;;  %v726_v4 = vmax.f32 %v662_v46, 0.0  ;;  %v544_v27 = vsub.f32 %v5907_v41, %v6023_v43 }
  0xcd   : > { %v1115_v37 = vmul.f32 %v1051_v38, %v719_v7  ;;  %v734_v54 = vmax.f32 %v670_v61, 0.0  ;;  %v994_v48 = vsub.f32 1.0, %v930_v1  ;;  %v600_v58 = vand.u32 2147483647, %v536_v62 }
  0xce   : > { %v1002_v23 = vsub.f32 1.0, %v938_v3  ;;  %v608_v19 = vand.u32 2147483647, %v544_v27  ;;  %v868_v44 = vsub.f32 %v5909_v22, %v6008_v60  ;;  %v876_v34 = vsub.f32 %v5914_v25, %v6008_v60 }
  0xcf   : > { %v6176_v11 = vpack.c.bf16 %v1115_v37, %v1107_v50  ;;  %v1058_v14 = vmax.f32 %v994_v48, 0.0  ;;  %v664_v5 = vsub.f32 1.0, %v600_v58  ;;  %v533_v52 = vsub.f32 %v5903_v32, %v5994_v29 }
  0xd0   : > { %v1066_v49 = vmax.f32 %v1002_v23, 0.0  ;;  %v672_v43 = vsub.f32 1.0, %v608_v19  ;;  %v932_v53 = vand.u32 2147483647, %v868_v44  ;;  %v940_v2 = vand.u32 2147483647, %v876_v34 }
  0xd1   : > { %5003 = vmatpush1.bf16.msra.mxu1 %v6176_v11  ;;  %v541_v9 = vsub.f32 %v5907_v41, %v5994_v29  ;;  %v1122_v35 = vmul.f32 %v1058_v14, %v726_v4  ;;  %v728_v15 = vmax.f32 %v664_v5, 0.0  ;;  %v597_v18 = vand.u32 2147483647, %v533_v52 }
  0xd2   : > { %v1130_v7 = vmul.f32 %v1066_v49, %v734_v54  ;;  %v736_v39 = vmax.f32 %v672_v43, 0.0  ;;  %v996_v60 = vsub.f32 1.0, %v932_v53  ;;  %v1004_v20 = vsub.f32 1.0, %v940_v2 }
  0xd3   : > { %v605_v38 = vand.u32 2147483647, %v541_v9  ;;  %v661_v61 = vsub.f32 1.0, %v597_v18  ;;  %v865_v1 = vsub.f32 %v5909_v22, %v5997_v10  ;;  %v873_v3 = vsub.f32 %v5914_v25, %v5997_v10 }
  0xd4   : > { %v6187_v46 = vpack.c.bf16 %v1130_v7, %v1122_v35  ;;  %v1060_v62 = vmax.f32 %v996_v60, 0.0  ;;  %v1068_v50 = vmax.f32 %v1004_v20, 0.0  ;;  %v535_v37 = vsub.f32 %v5903_v32, %v6055_v21 }
  0xd5   : > { %v669_v29 = vsub.f32 1.0, %v605_v38  ;;  %v725_v4 = vmax.f32 %v661_v61, 0.0  ;;  %v929_v27 = vand.u32 2147483647, %v865_v1  ;;  %v937_v54 = vand.u32 2147483647, %v873_v3 }
  0xd6   : > { %4989 = vmatprep.subr.bf16.mxu0 %v6187_v46  ;;  %v543_v48 = vsub.f32 %v5907_v41, %v6055_v21  ;;  %v1124_v23 = vmul.f32 %v1060_v62, %v728_v15  ;;  %v1132_v58 = vmul.f32 %v1068_v50, %v736_v39  ;;  %v599_v44 = vand.u32 2147483647, %v535_v37  ;;  %v7240_v61 = vld [vmem:[#allocation9_spill] sm:$0xff]  ;;  %v7241_v1 = vld [vmem:[#allocation10_spill] sm:$0xff]  ;;  %v7242_v3 = vld [vmem:[#allocation11_spill] sm:$0xff] }
  0xd7   : > { %v733_v19 = vmax.f32 %v669_v29, 0.0  ;;  %v993_v34 = vsub.f32 1.0, %v929_v27  ;;  %v1001_v10 = vsub.f32 1.0, %v937_v54  ;;  %v867_v49 = vsub.f32 %v5909_v22, %v6073_v36  ;;  %v7244_v62 = vld [vmem:[#allocation12_spill] sm:$0xff]  ;;  %v7246_v37 = vld [vmem:[#allocation13_spill] sm:$0xff]  ;;  %v4879_v54 = vld [vmem:[%s5963_s19 + $0x20] sm:$0xff] }
  0xd8   : > { %v607_v14 = vand.u32 2147483647, %v543_v48  ;;  %v6200_v5 = vpack.c.bf16 %v1132_v58, %v1124_v23  ;;  %v663_v32 = vsub.f32 1.0, %v599_v44  ;;  %v875_v52 = vsub.f32 %v5914_v25, %v6073_v36  ;;  %v7245_v50 = vld [vmem:[#allocation16_spill] sm:$0xff]  ;;  %v7248_v27 = vld [vmem:[#allocation17_spill] sm:$0xff]  ;;  %v4880_v48 = vld [vmem:[%s5963_s19 + $0x28] sm:$0xff] }
  0xd9   : > { %v1057_v43 = vmax.f32 %v993_v34, 0.0  ;;  %v1065_v53 = vmax.f32 %v1001_v10, 0.0  ;;  %v931_v41 = vand.u32 2147483647, %v867_v49  ;;  %v4869_v29 = vld [vmem:[%s5963_s19 + $0x10] sm:$0xff]  ;;  %v4890_v58 = vld [vmem:[%s5963_s19 + $0x38] sm:$0xff] }
  0xda   : > { %v671_v2 = vsub.f32 1.0, %v607_v14  ;;  %5005 = vmatprep.subr.bf16.mxu1 %v6200_v5  ;;  %v939_v21 = vand.u32 2147483647, %v875_v52  ;;  %v727_v7 = vmax.f32 %v663_v32, 0.0  ;;  %v4889_v23 = vld [vmem:[%s5963_s19 + $0x30] sm:$0xff]  ;;  %v4900_v44 = vld [vmem:[%s5963_s19 + $0x48] sm:$0xff] }
  0xdb   : > { %v1121_v9 = vmul.f32 %v1057_v43, %v725_v4  ;;  %v1129_v35 = vmul.f32 %v1065_v53, %v733_v19  ;;  %v995_v15 = vsub.f32 1.0, %v931_v41  ;;  %v7247_v4 = vld [vmem:[#allocation15_spill] sm:$0xff]  ;;  %v4899_v19 = vld [vmem:[%s5963_s19 + $0x40] sm:$0xff]  ;;  %v4910_v41 = vld [vmem:[%s5963_s19 + $0x58] sm:$0xff] }
  0xdc   : > { %v735_v18 = vmax.f32 %v671_v2, 0.0  ;;  %v1003_v39 = vsub.f32 1.0, %v939_v21  ;;  %v4909_v2 = vld [vmem:[%s5963_s19 + $0x50] sm:$0xff]  ;;  %v4919_v21 = vld [vmem:[%s5963_s19 + $0x60] sm:$0xff] }
  0xdd   : > { %v6205_v22 = vpack.c.bf16 %v1129_v35, %v1121_v9  ;;  %v1059_v60 = vmax.f32 %v995_v15, 0.0  ;;  %v4920_v9 = vld [vmem:[%s5963_s19 + $0x68] sm:$0xff]  ;;  %v244_v35 = vstv %s4859_s20 }
  0xde   : > { %v1067_v20 = vmax.f32 %v1003_v39, 0.0  ;;  %v7249_v39 = vld [vmem:[#allocation6_spill] sm:$0xff] }
  0xdf   : > { %4991 = vmatpush1.bf16.msra.mxu0 %v6205_v22  ;;  %v1123_v25 = vmul.f32 %v1059_v60, %v727_v7  ;;  %v6533_v7 = vld [vmem:[%s5679_s15] sm:$0x77]  ;;  %v6545_v60 = vsub.s32 2, %v7249_v39 }
  0xe0   : > { %v1131_v36 = vmul.f32 %v1067_v20, %v735_v18  ;;  %5009 = vmatprep.subr.bf16.mxu0 %v5782_v26  ;;  %v245_v15 = vmul.f32 %v6533_v7, %v244_v35  ;;  %v6537_v18 = vstv %s4860_s21 }
  0xe2   : > { %v6209_v38 = vpack.c.bf16 %v1131_v36, %v1123_v25  ;;  %4865 = vmatmul.mubr.msk.f32.vlgmr.msra.gmra.mrb[4].mxu0 %vm1135_vm0, %v5977_v0  ;;  %v6554_v25 = vsub.s32 6, %v7249_v39 }
  0xe3   : > { %5011 = vmatpush1.bf16.msra.mxu0 %v5805_v56  ;;  %1366 = vmatprep.mubr.f32.mxu0 %v7239_v42 }
  0xe4   : > { %5007 = vmatpush1.bf16.msra.mxu1 %v6209_v38  ;;  %5013 = vmatprep.subr.bf16.mxu0 %v5827_v24 }
  0xe5   : > { %5025 = vmatprep.subr.bf16.mxu1 %v5789_v30 }
  0xe6   : > { %4866 = vmatmul.mubr.msk.f32.gmra.mrb[6].mxu0 %vm1135_vm0, %v6020_v51 }
  0xe7   : > { %4867 = vmatmul.mubr.msk.f32.vlgmr.msra.gmra.mrb[4].mxu1 %vm1135_vm0, %v5977_v0  ;;  %5015 = vmatpush1.bf16.msra.mxu0 %v5854_v55  ;;  %v7243_v0 = vld [vmem:[#allocation14_spill] sm:$0xff] }
  0xe8   : > { %5027 = vmatpush1.bf16.msra.mxu1 %v7240_v61  ;;  %5017 = vmatprep.subr.bf16.mxu0 %v5886_v59 }
  0xe9   : > { %5029 = vmatprep.subr.bf16.mxu1 %v7241_v1  ;;  %1443 = vmatprep.mubr.f32.mxu1 %v7239_v42 }
  0xea   : > { %1571 = vmatprep.mubr.f32.mxu0 %v7239_v42 }
  0xeb   : > { %5019 = vmatpush1.bf16.msra.mxu0 %v5905_v45  ;;  %4868 = vmatmul.mubr.msk.f32.gmra.mrb[6].mxu1 %vm1135_vm0, %v6020_v51  ;;  %v4870_v51 = vld [vmem:[%s5963_s19 + $0x18] sm:$0xff] }
  0xec   : > { %5031 = vmatpush1.bf16.msra.mxu1 %v7242_v3  ;;  %5021 = vmatprep.subr.bf16.mxu0 %v7243_v0 }
  0xed   : > { %5033 = vmatprep.subr.bf16.mxu1 %v7244_v62  ;;  %1648 = vmatprep.mubr.f32.mxu1 %v7239_v42 }
  0xef   : > { %5023 = vmatpush1.bf16.msra.mxu0 %v7245_v50 }
  0xf0   : > { %5035 = vmatpush1.bf16.msra.mxu1 %v7246_v37  ;;  %5041 = vmatprep.subr.bf16.mxu0 %v6044_v17 }
  0xf1   : > { %5037 = vmatprep.subr.bf16.mxu1 %v7247_v4 }
  0xf2   : > { %4871 = vmatmul.mubr.msk.f32.vlgmr.msra.gmra.mrb[8].mxu0 %vm1135_vm0, %v4869_v29 }
  0xf3   : > { %5043 = vmatpush1.bf16.msra.mxu0 %v6081_v28  ;;  %1577 = vmatprep.mubr.f32.mxu0 %v7239_v42 }
  0xf4   : > { %5039 = vmatpush1.bf16.msra.mxu1 %v7248_v27  ;;  %5045 = vmatprep.subr.bf16.mxu0 %v6099_v57 }
  0xf5   : > { %5057 = vmatprep.subr.bf16.mxu1 %v6059_v12 }
  0xf6   : > { %4872 = vmatmul.mubr.msk.f32.gmra.mrb[10].mxu0 %vm1135_vm0, %v4870_v51 }
  0xf7   : > { %4873 = vmatmul.mubr.msk.f32.vlgmr.msra.gmra.mrb[8].mxu1 %vm1135_vm0, %v4869_v29  ;;  %5047 = vmatpush1.bf16.msra.mxu0 %v6123_v40 }
  0xf8   : > { %5059 = vmatpush1.bf16.msra.mxu1 %v6094_v31  ;;  %1654 = vmatprep.mubr.f32.mxu1 %v7239_v42 }
  0xf9   : > { %5061 = vmatprep.subr.bf16.mxu1 %v6112_v33  ;;  %5049 = vmatprep.subr.bf16.mxu0 %v6147_v16 }
  0xfa   : > { %1725 = vmatprep.mubr.f32.mxu0 %v7239_v42 }
  0xfb   : > { %4874 = vmatmul.mubr.msk.f32.gmra.mrb[10].mxu1 %vm1135_vm0, %v4870_v51  ;;  %5051 = vmatpush1.bf16.msra.mxu0 %v6169_v13 }
  0xfc   : > { %5063 = vmatpush1.bf16.msra.mxu1 %v6136_v63  ;;  %5053 = vmatprep.subr.bf16.mxu0 %v6187_v46 }
  0xfd   : > { %5065 = vmatprep.subr.bf16.mxu1 %v6158_v47  ;;  %1802 = vmatprep.mubr.f32.mxu1 %v7239_v42 }
  0xff   : > { %5055 = vmatpush1.bf16.msra.mxu0 %v6205_v22 }
 0x100   : > { %5067 = vmatpush1.bf16.msra.mxu1 %v6176_v11  ;;  %5073 = vmatprep.subr.bf16.mxu0 %v5782_v26 }
 0x101   : > { %5069 = vmatprep.subr.bf16.mxu1 %v6200_v5 }
 0x102   : > { %4875 = vmatmul.mubr.msk.f32.vlgmr.msra.gmra.mrb[12].mxu0 %vm1135_vm0, %v4869_v29 }
 0x103   : > { %5075 = vmatpush1.bf16.msra.mxu0 %v5805_v56  ;;  %1731 = vmatprep.mubr.f32.mxu0 %v7239_v42 }
 0x104   : > { %5071 = vmatpush1.bf16.msra.mxu1 %v6209_v38  ;;  %5077 = vmatprep.subr.bf16.mxu0 %v5827_v24 }
 0x105   : > { %5089 = vmatprep.subr.bf16.mxu1 %v5789_v30 }
 0x106   : > { %4876 = vmatmul.mubr.msk.f32.gmra.mrb[14].mxu0 %vm1135_vm0, %v4870_v51 }
 0x107   : > { %4877 = vmatmul.mubr.msk.f32.vlgmr.msra.gmra.mrb[12].mxu1 %vm1135_vm0, %v4869_v29  ;;  %5079 = vmatpush1.bf16.msra.mxu0 %v5854_v55 }
 0x108   : > { %5091 = vmatpush1.bf16.msra.mxu1 %v7240_v61  ;;  %1808 = vmatprep.mubr.f32.mxu1 %v7239_v42 }
 0x109   : > { %5093 = vmatprep.subr.bf16.mxu1 %v7241_v1  ;;  %5081 = vmatprep.subr.bf16.mxu0 %v5886_v59 }
 0x10a   : > { %1952 = vmatprep.mubr.f32.mxu0 %v7239_v42 }
 0x10b   : > { %4878 = vmatmul.mubr.msk.f32.gmra.mrb[14].mxu1 %vm1135_vm0, %v4870_v51  ;;  %5083 = vmatpush1.bf16.msra.mxu0 %v5905_v45 }
 0x10c   : > { %5095 = vmatpush1.bf16.msra.mxu1 %v7242_v3  ;;  %5085 = vmatprep.subr.bf16.mxu0 %v7243_v0 }
 0x10d   : > { %5097 = vmatprep.subr.bf16.mxu1 %v7244_v62  ;;  %2029 = vmatprep.mubr.f32.mxu1 %v7239_v42 }
 0x10f   : > { %5087 = vmatpush1.bf16.msra.mxu0 %v7245_v50 }
 0x110   : > { %5099 = vmatpush1.bf16.msra.mxu1 %v7246_v37  ;;  %5105 = vmatprep.subr.bf16.mxu0 %v6044_v17 }
 0x111   : > { %5101 = vmatprep.subr.bf16.mxu1 %v7247_v4 }
 0x112   : > { %4881 = vmatmul.mubr.msk.f32.vlgmr.msra.gmra.mrb[16].mxu0 %vm1135_vm0, %v4879_v54 }
 0x113   : > { %5107 = vmatpush1.bf16.msra.mxu0 %v6081_v28  ;;  %1958 = vmatprep.mubr.f32.mxu0 %v7239_v42 }
 0x114   : > { %5103 = vmatpush1.bf16.msra.mxu1 %v7248_v27  ;;  %5109 = vmatprep.subr.bf16.mxu0 %v6099_v57 }
 0x115   : > { %5121 = vmatprep.subr.bf16.mxu1 %v6059_v12 }
 0x116   : > { %4882 = vmatmul.mubr.msk.f32.gmra.mrb[18].mxu0 %vm1135_vm0, %v4880_v48 }
 0x117   : > { %4883 = vmatmul.mubr.msk.f32.vlgmr.msra.gmra.mrb[16].mxu1 %vm1135_vm0, %v4879_v54  ;;  %5111 = vmatpush1.bf16.msra.mxu0 %v6123_v40 }
 0x118   : > { %5123 = vmatpush1.bf16.msra.mxu1 %v6094_v31  ;;  %2035 = vmatprep.mubr.f32.mxu1 %v7239_v42 }
 0x119   : > { %5125 = vmatprep.subr.bf16.mxu1 %v6112_v33  ;;  %5113 = vmatprep.subr.bf16.mxu0 %v6147_v16 }
 0x11a   : > { %2106 = vmatprep.mubr.f32.mxu0 %v7239_v42 }
 0x11b   : > { %4884 = vmatmul.mubr.msk.f32.gmra.mrb[18].mxu1 %vm1135_vm0, %v4880_v48  ;;  %5115 = vmatpush1.bf16.msra.mxu0 %v6169_v13 }
 0x11c   : > { %5127 = vmatpush1.bf16.msra.mxu1 %v6136_v63  ;;  %5117 = vmatprep.subr.bf16.mxu0 %v6187_v46 }
 0x11d   : > { %5129 = vmatprep.subr.bf16.mxu1 %v6158_v47  ;;  %2183 = vmatprep.mubr.f32.mxu1 %v7239_v42 }
 0x11f   : > { %5119 = vmatpush1.bf16.msra.mxu0 %v6205_v22 }
 0x120   : > { %5131 = vmatpush1.bf16.msra.mxu1 %v6176_v11  ;;  %5137 = vmatprep.subr.bf16.mxu0 %v5782_v26 }
 0x121   : > { %5133 = vmatprep.subr.bf16.mxu1 %v6200_v5 }
 0x122   : > { %4885 = vmatmul.mubr.msk.f32.vlgmr.msra.gmra.mrb[20].mxu0 %vm1135_vm0, %v4879_v54 }
 0x123   : > { %5139 = vmatpush1.bf16.msra.mxu0 %v5805_v56  ;;  %2112 = vmatprep.mubr.f32.mxu0 %v7239_v42 }
 0x124   : > { %5135 = vmatpush1.bf16.msra.mxu1 %v6209_v38  ;;  %5141 = vmatprep.subr.bf16.mxu0 %v5827_v24 }
 0x125   : > { %5153 = vmatprep.subr.bf16.mxu1 %v5789_v30 }
 0x126   : > { %4886 = vmatmul.mubr.msk.f32.gmra.mrb[22].mxu0 %vm1135_vm0, %v4880_v48 }
 0x127   : > { %4887 = vmatmul.mubr.msk.f32.vlgmr.msra.gmra.mrb[20].mxu1 %vm1135_vm0, %v4879_v54  ;;  %5143 = vmatpush1.bf16.msra.mxu0 %v5854_v55  ;;  %v6606_v54 = vld [vmem:[%s5679_s15 + $0x18] sm:$0x77] }
 0x128   : > { %5155 = vmatpush1.bf16.msra.mxu1 %v7240_v61  ;;  %2189 = vmatprep.mubr.f32.mxu1 %v7239_v42 }
 0x129   : > { %5157 = vmatprep.subr.bf16.mxu1 %v7241_v1  ;;  %5145 = vmatprep.subr.bf16.mxu0 %v5886_v59 }
 0x12a   : > { %2333 = vmatprep.mubr.f32.mxu0 %v7239_v42 }
 0x12b   : > { %4888 = vmatmul.mubr.msk.f32.gmra.mrb[22].mxu1 %vm1135_vm0, %v4880_v48  ;;  %5147 = vmatpush1.bf16.msra.mxu0 %v5905_v45  ;;  %v248_v48 = vmul.f32 %v6606_v54, %v244_v35 }
 0x12c   : > { %5159 = vmatpush1.bf16.msra.mxu1 %v7242_v3  ;;  %5149 = vmatprep.subr.bf16.mxu0 %v7243_v0 }
 0x12d   : > { %5161 = vmatprep.subr.bf16.mxu1 %v7244_v62  ;;  %2410 = vmatprep.mubr.f32.mxu1 %v7239_v42 }
 0x12f   : > { %5151 = vmatpush1.bf16.msra.mxu0 %v7245_v50 }
 0x130   : > { %5163 = vmatpush1.bf16.msra.mxu1 %v7246_v37  ;;  %5169 = vmatprep.subr.bf16.mxu0 %v6044_v17 }
 0x131   : > { %5165 = vmatprep.subr.bf16.mxu1 %v7247_v4 }
 0x132   : > { %4891 = vmatmul.mubr.msk.f32.vlgmr.msra.gmra.mrb[24].mxu0 %vm1135_vm0, %v4889_v23 }
 0x133   : > { %5171 = vmatpush1.bf16.msra.mxu0 %v6081_v28  ;;  %2339 = vmatprep.mubr.f32.mxu0 %v7239_v42 }
 0x134   : > { %5167 = vmatpush1.bf16.msra.mxu1 %v7248_v27  ;;  %5173 = vmatprep.subr.bf16.mxu0 %v6099_v57 }
 0x135   : > { %5185 = vmatprep.subr.bf16.mxu1 %v6059_v12 }
 0x136   : > { %4892 = vmatmul.mubr.msk.f32.gmra.mrb[26].mxu0 %vm1135_vm0, %v4890_v58 }
 0x137   : > { %4893 = vmatmul.mubr.msk.f32.vlgmr.msra.gmra.mrb[24].mxu1 %vm1135_vm0, %v4889_v23  ;;  %5175 = vmatpush1.bf16.msra.mxu0 %v6123_v40 }
 0x138   : > { %5187 = vmatpush1.bf16.msra.mxu1 %v6094_v31  ;;  %2416 = vmatprep.mubr.f32.mxu1 %v7239_v42 }
 0x139   : > { %5189 = vmatprep.subr.bf16.mxu1 %v6112_v33  ;;  %5177 = vmatprep.subr.bf16.mxu0 %v6147_v16 }
 0x13a   : > { %2487 = vmatprep.mubr.f32.mxu0 %v7239_v42 }
 0x13b   : > { %4894 = vmatmul.mubr.msk.f32.gmra.mrb[26].mxu1 %vm1135_vm0, %v4890_v58  ;;  %5179 = vmatpush1.bf16.msra.mxu0 %v6169_v13 }
 0x13c   : > { %5191 = vmatpush1.bf16.msra.mxu1 %v6136_v63  ;;  %5181 = vmatprep.subr.bf16.mxu0 %v6187_v46 }
 0x13d   : > { %5193 = vmatprep.subr.bf16.mxu1 %v6158_v47  ;;  %2564 = vmatprep.mubr.f32.mxu1 %v7239_v42 }
 0x13f   : > { %5183 = vmatpush1.bf16.msra.mxu0 %v6205_v22 }
 0x140   : > { %5195 = vmatpush1.bf16.msra.mxu1 %v6176_v11  ;;  %5201 = vmatprep.subr.bf16.mxu0 %v5782_v26 }
 0x141   : > { %5197 = vmatprep.subr.bf16.mxu1 %v6200_v5 }
 0x142   : > { %4895 = vmatmul.mubr.msk.f32.vlgmr.msra.gmra.mrb[28].mxu0 %vm1135_vm0, %v4889_v23 }
 0x143   : > { %5203 = vmatpush1.bf16.msra.mxu0 %v5805_v56  ;;  %2493 = vmatprep.mubr.f32.mxu0 %v7239_v42 }
 0x144   : > { %5199 = vmatpush1.bf16.msra.mxu1 %v6209_v38  ;;  %5205 = vmatprep.subr.bf16.mxu0 %v5827_v24 }
 0x145   : > { %5217 = vmatprep.subr.bf16.mxu1 %v5789_v30 }
 0x146   : > { %4896 = vmatmul.mubr.msk.f32.gmra.mrb[30].mxu0 %vm1135_vm0, %v4890_v58 }
 0x147   : > { %4897 = vmatmul.mubr.msk.f32.vlgmr.msra.gmra.mrb[28].mxu1 %vm1135_vm0, %v4889_v23  ;;  %5207 = vmatpush1.bf16.msra.mxu0 %v5854_v55 }
 0x148   : > { %5219 = vmatpush1.bf16.msra.mxu1 %v7240_v61  ;;  %2570 = vmatprep.mubr.f32.mxu1 %v7239_v42 }
 0x149   : > { %5221 = vmatprep.subr.bf16.mxu1 %v7241_v1  ;;  %5209 = vmatprep.subr.bf16.mxu0 %v5886_v59 }
 0x14a   : > { %2714 = vmatprep.mubr.f32.mxu0 %v7239_v42 }
 0x14b   : > { %4898 = vmatmul.mubr.msk.f32.gmra.mrb[30].mxu1 %vm1135_vm0, %v4890_v58  ;;  %5211 = vmatpush1.bf16.msra.mxu0 %v5905_v45 }
 0x14c   : > { %5223 = vmatpush1.bf16.msra.mxu1 %v7242_v3  ;;  %5213 = vmatprep.subr.bf16.mxu0 %v7243_v0 }
 0x14d   : > { %5225 = vmatprep.subr.bf16.mxu1 %v7244_v62  ;;  %2791 = vmatprep.mubr.f32.mxu1 %v7239_v42 }
 0x14f   : > { %5215 = vmatpush1.bf16.msra.mxu0 %v7245_v50 }
 0x150   : > { %5227 = vmatpush1.bf16.msra.mxu1 %v7246_v37  ;;  %5233 = vmatprep.subr.bf16.mxu0 %v6044_v17 }
 0x151   : > { %5229 = vmatprep.subr.bf16.mxu1 %v7247_v4 }
 0x152   : > { %4901 = vmatmul.mubr.msk.f32.vlgmr.msra.gmra.mrb[32].mxu0 %vm1135_vm0, %v4899_v19 }
 0x153   : > { %5235 = vmatpush1.bf16.msra.mxu0 %v6081_v28  ;;  %2720 = vmatprep.mubr.f32.mxu0 %v7239_v42 }
 0x154   : > { %5231 = vmatpush1.bf16.msra.mxu1 %v7248_v27  ;;  %5237 = vmatprep.subr.bf16.mxu0 %v6099_v57 }
 0x155   : > { %5249 = vmatprep.subr.bf16.mxu1 %v6059_v12 }
 0x156   : > { %4902 = vmatmul.mubr.msk.f32.gmra.mrb[34].mxu0 %vm1135_vm0, %v4900_v44 }
 0x157   : > { %4903 = vmatmul.mubr.msk.f32.vlgmr.msra.gmra.mrb[32].mxu1 %vm1135_vm0, %v4899_v19  ;;  %5239 = vmatpush1.bf16.msra.mxu0 %v6123_v40 }
 0x158   : > { %5251 = vmatpush1.bf16.msra.mxu1 %v6094_v31  ;;  %2797 = vmatprep.mubr.f32.mxu1 %v7239_v42 }
 0x159   : > { %5253 = vmatprep.subr.bf16.mxu1 %v6112_v33  ;;  %5241 = vmatprep.subr.bf16.mxu0 %v6147_v16 }
 0x15a   : > { %2868 = vmatprep.mubr.f32.mxu0 %v7239_v42 }
 0x15b   : > { %4904 = vmatmul.mubr.msk.f32.gmra.mrb[34].mxu1 %vm1135_vm0, %v4900_v44  ;;  %5243 = vmatpush1.bf16.msra.mxu0 %v6169_v13 }
 0x15c   : > { %5255 = vmatpush1.bf16.msra.mxu1 %v6136_v63  ;;  %5245 = vmatprep.subr.bf16.mxu0 %v6187_v46 }
 0x15d   : > { %5257 = vmatprep.subr.bf16.mxu1 %v6158_v47  ;;  %2945 = vmatprep.mubr.f32.mxu1 %v7239_v42 }
 0x15f   : > { %5247 = vmatpush1.bf16.msra.mxu0 %v6205_v22 }
 0x160   : > { %5259 = vmatpush1.bf16.msra.mxu1 %v6176_v11  ;;  %5265 = vmatprep.subr.bf16.mxu0 %v5782_v26 }
 0x161   : > { %5261 = vmatprep.subr.bf16.mxu1 %v6200_v5 }
 0x162   : > { %4905 = vmatmul.mubr.msk.f32.vlgmr.msra.gmra.mrb[36].mxu0 %vm1135_vm0, %v4899_v19  ;;  %v6416_v34 = vpop.f32.mrb[0].mxu0 }
 0x163   : > { %5267 = vmatpush1.bf16.msra.mxu0 %v5805_v56  ;;  %2874 = vmatprep.mubr.f32.mxu0 %v7239_v42  ;;  %v6420_v10 = vpop.f32.mrb[1].mxu0 }
 0x164   : > { %5263 = vmatpush1.bf16.msra.mxu1 %v6209_v38  ;;  %5269 = vmatprep.subr.bf16.mxu0 %v5827_v24 }
 0x165   : > { %5281 = vmatprep.subr.bf16.mxu1 %v5789_v30 }
 0x166   : > { %4906 = vmatmul.mubr.msk.f32.gmra.mrb[38].mxu0 %vm1135_vm0, %v4900_v44  ;;  %v6426_v14 = vpop.f32.mrb[2].mxu0 }
 0x167   : > { %4907 = vmatmul.mubr.msk.f32.vlgmr.msra.gmra.mrb[36].mxu1 %vm1135_vm0, %v4899_v19  ;;  %5271 = vmatpush1.bf16.msra.mxu0 %v5854_v55  ;;  %v6430_v49 = vpop.f32.mrb[3].mxu0 }
 0x168   : > { %5283 = vmatpush1.bf16.msra.mxu1 %v7240_v61  ;;  %2951 = vmatprep.mubr.f32.mxu1 %v7239_v42  ;;  %v6434_v32 = vpop.f32.mrb[0].mxu1 }
 0x169   : > { %5285 = vmatprep.subr.bf16.mxu1 %v7241_v1  ;;  %5273 = vmatprep.subr.bf16.mxu0 %v5886_v59  ;;  %v6438_v52 = vpop.f32.mrb[1].mxu1 }
 0x16a   : > { %3095 = vmatprep.mubr.f32.mxu0 %v7239_v42 }
 0x16b   : > { %4908 = vmatmul.mubr.msk.f32.gmra.mrb[38].mxu1 %vm1135_vm0, %v4900_v44  ;;  %5275 = vmatpush1.bf16.msra.mxu0 %v5905_v45 }
 0x16c   : > { %5287 = vmatpush1.bf16.msra.mxu1 %v7242_v3  ;;  %5277 = vmatprep.subr.bf16.mxu0 %v7243_v0  ;;  %v6445_v43 = vpop.f32.mrb[2].mxu1 }
 0x16d   : > { %5289 = vmatprep.subr.bf16.mxu1 %v7244_v62  ;;  %3172 = vmatprep.mubr.f32.mxu1 %v7239_v42  ;;  %v6449_v53 = vpop.f32.mrb[3].mxu1 }
 0x16f   : > { %5279 = vmatpush1.bf16.msra.mxu0 %v7245_v50 }
 0x170   : > { %5291 = vmatpush1.bf16.msra.mxu1 %v7246_v37  ;;  %5297 = vmatprep.subr.bf16.mxu0 %v6044_v17 }
 0x171   : > { %5293 = vmatprep.subr.bf16.mxu1 %v7247_v4 }
 0x172   : > { %4911 = vmatmul.mubr.msk.f32.vlgmr.msra.gmra.mrb[40].mxu0 %vm1135_vm0, %v4909_v2 }
 0x173   : > { %5299 = vmatpush1.bf16.msra.mxu0 %v6081_v28  ;;  %3101 = vmatprep.mubr.f32.mxu0 %v7239_v42 }
 0x174   : > { %5295 = vmatpush1.bf16.msra.mxu1 %v7248_v27  ;;  %5301 = vmatprep.subr.bf16.mxu0 %v6099_v57 }
 0x175   : > { %5313 = vmatprep.subr.bf16.mxu1 %v6059_v12 }
 0x176   : > { %4912 = vmatmul.mubr.msk.f32.gmra.mrb[42].mxu0 %vm1135_vm0, %v4910_v41 }
 0x177   : > { %4913 = vmatmul.mubr.msk.f32.vlgmr.msra.gmra.mrb[40].mxu1 %vm1135_vm0, %v4909_v2  ;;  %5303 = vmatpush1.bf16.msra.mxu0 %v6123_v40 }
 0x178   : > { %5315 = vmatpush1.bf16.msra.mxu1 %v6094_v31  ;;  %3178 = vmatprep.mubr.f32.mxu1 %v7239_v42 }
 0x179   : > { %5317 = vmatprep.subr.bf16.mxu1 %v6112_v33  ;;  %5305 = vmatprep.subr.bf16.mxu0 %v6147_v16 }
 0x17a   : > { %3249 = vmatprep.mubr.f32.mxu0 %v7239_v42 }
 0x17b   : > { %4914 = vmatmul.mubr.msk.f32.gmra.mrb[42].mxu1 %vm1135_vm0, %v4910_v41  ;;  %5307 = vmatpush1.bf16.msra.mxu0 %v6169_v13 }
 0x17c   : > { %5319 = vmatpush1.bf16.msra.mxu1 %v6136_v63  ;;  %5309 = vmatprep.subr.bf16.mxu0 %v6187_v46 }
 0x17d   : > { %5321 = vmatprep.subr.bf16.mxu1 %v6158_v47  ;;  %3326 = vmatprep.mubr.f32.mxu1 %v7239_v42 }
 0x17f   : > { %5311 = vmatpush1.bf16.msra.mxu0 %v6205_v22 }
 0x180   : > { %5323 = vmatpush1.bf16.msra.mxu1 %v6176_v11  ;;  %5329 = vmatprep.subr.bf16.mxu0 %v5782_v26 }
 0x181   : > { %5325 = vmatprep.subr.bf16.mxu1 %v6200_v5 }
 0x182   : > { %4915 = vmatmul.mubr.msk.f32.vlgmr.msra.gmra.mrb[44].mxu0 %vm1135_vm0, %v4909_v2 }
 0x183   : > { %5331 = vmatpush1.bf16.msra.mxu0 %v5805_v56  ;;  %3255 = vmatprep.mubr.f32.mxu0 %v7239_v42 }
 0x184   : > { %5327 = vmatpush1.bf16.msra.mxu1 %v6209_v38  ;;  %5333 = vmatprep.subr.bf16.mxu0 %v5827_v24 }
 0x185   : > { %5345 = vmatprep.subr.bf16.mxu1 %v5789_v30 }
 0x186   : > { %4916 = vmatmul.mubr.msk.f32.gmra.mrb[46].mxu0 %vm1135_vm0, %v4910_v41 }
 0x187   : > { %4917 = vmatmul.mubr.msk.f32.vlgmr.msra.gmra.mrb[44].mxu1 %vm1135_vm0, %v4909_v2  ;;  %5335 = vmatpush1.bf16.msra.mxu0 %v5854_v55 }
 0x188   : > { %5347 = vmatpush1.bf16.msra.mxu1 %v7240_v61  ;;  %3332 = vmatprep.mubr.f32.mxu1 %v7239_v42 }
 0x189   : > { %5349 = vmatprep.subr.bf16.mxu1 %v7241_v1  ;;  %5337 = vmatprep.subr.bf16.mxu0 %v5886_v59 }
 0x18a   : > { %3476 = vmatprep.mubr.f32.mxu0 %v7239_v42 }
 0x18b   : > { %4918 = vmatmul.mubr.msk.f32.gmra.mrb[46].mxu1 %vm1135_vm0, %v4910_v41  ;;  %5339 = vmatpush1.bf16.msra.mxu0 %v5905_v45 }
 0x18c   : > { %5351 = vmatpush1.bf16.msra.mxu1 %v7242_v3  ;;  %5341 = vmatprep.subr.bf16.mxu0 %v7243_v0 }
 0x18d   : > { %5353 = vmatprep.subr.bf16.mxu1 %v7244_v62  ;;  %3553 = vmatprep.mubr.f32.mxu1 %v7239_v42 }
 0x18f   : > { %5343 = vmatpush1.bf16.msra.mxu0 %v7245_v50 }
 0x190   : > { %5355 = vmatpush1.bf16.msra.mxu1 %v7246_v37  ;;  %5361 = vmatprep.subr.bf16.mxu0 %v6044_v17 }
 0x191   : > { %5357 = vmatprep.subr.bf16.mxu1 %v7247_v4 }
 0x192   : > { %4921 = vmatmul.mubr.msk.f32.vlgmr.msra.gmra.mrb[48].mxu0 %vm1135_vm0, %v4919_v21 }
 0x193   : > { %5363 = vmatpush1.bf16.msra.mxu0 %v6081_v28  ;;  %3482 = vmatprep.mubr.f32.mxu0 %v7239_v42 }
 0x194   : > { %5359 = vmatpush1.bf16.msra.mxu1 %v7248_v27  ;;  %5365 = vmatprep.subr.bf16.mxu0 %v6099_v57 }
 0x195   : > { %5377 = vmatprep.subr.bf16.mxu1 %v6059_v12 }
 0x196   : > { %4922 = vmatmul.mubr.msk.f32.gmra.mrb[50].mxu0 %vm1135_vm0, %v4920_v9 }
 0x197   : > { %4923 = vmatmul.mubr.msk.f32.vlgmr.msra.gmra.mrb[48].mxu1 %vm1135_vm0, %v4919_v21  ;;  %5367 = vmatpush1.bf16.msra.mxu0 %v6123_v40 }
 0x198   : > { %5379 = vmatpush1.bf16.msra.mxu1 %v6094_v31  ;;  %3559 = vmatprep.mubr.f32.mxu1 %v7239_v42 }
 0x199   : > { %5381 = vmatprep.subr.bf16.mxu1 %v6112_v33  ;;  %5369 = vmatprep.subr.bf16.mxu0 %v6147_v16 }
 0x19a   : > { %3630 = vmatprep.mubr.f32.mxu0 %v7239_v42 }
 0x19b   : > { %4924 = vmatmul.mubr.msk.f32.gmra.mrb[50].mxu1 %vm1135_vm0, %v4920_v9  ;;  %5371 = vmatpush1.bf16.msra.mxu0 %v6169_v13 }
 0x19c   : > { %5383 = vmatpush1.bf16.msra.mxu1 %v6136_v63  ;;  %5373 = vmatprep.subr.bf16.mxu0 %v6187_v46 }
 0x19d   : > { %5385 = vmatprep.subr.bf16.mxu1 %v6158_v47  ;;  %3707 = vmatprep.mubr.f32.mxu1 %v7239_v42 }
 0x19f   : > { %5375 = vmatpush1.bf16.msra.mxu0 %v6205_v22 }
 0x1a0   : > { %5387 = vmatpush1.bf16.msra.mxu1 %v6176_v11  ;;  %5393 = vmatprep.subr.bf16.mxu0 %v5782_v26  ;;  %v251_v26 = vadd.f32 %v6537_v18, %v245_v15 }
 0x1a1   : > { %5389 = vmatprep.subr.bf16.mxu1 %v6200_v5 }
 0x1a2   : > { %4925 = vmatmul.mubr.msk.f32.vlgmr.msra.gmra.mrb[52].mxu0 %vm1135_vm0, %v4919_v21  ;;  %v269_v36 = vrot.slane %v251_v26, %v6554_v25 }
 0x1a3   : > { %5395 = vmatpush1.bf16.msra.mxu0 %v5805_v56  ;;  %3636 = vmatprep.mubr.f32.mxu0 %v7239_v42  ;;  %v6550_v56 = vld [vmem:[%s5679_s15 + $0x8] sm:$0x77] }
 0x1a4   : > { %5391 = vmatpush1.bf16.msra.mxu1 %v6209_v38  ;;  %5397 = vmatprep.subr.bf16.mxu0 %v5827_v24  ;;  %v246_v20 = vmul.f32 %v6550_v56, %v244_v35 }
 0x1a5   : > { %5409 = vmatprep.subr.bf16.mxu1 %v5789_v30  ;;  %v265_v30 = vrot.slane %v251_v26, %v6545_v60 }
 0x1a6   : > { %4926 = vmatmul.mubr.msk.f32.gmra.mrb[54].mxu0 %vm1135_vm0, %v4920_v9  ;;  %v252_v24 = vadd.f32 %v6537_v18, %v246_v20 }
 0x1a7   : > { %4927 = vmatmul.mubr.msk.f32.vlgmr.msra.gmra.mrb[52].mxu1 %vm1135_vm0, %v4919_v21  ;;  %5399 = vmatpush1.bf16.msra.mxu0 %v5854_v55  ;;  %v305_v55 = vrot.slane %v265_v30, %v6545_v60 }
 0x1a8   : > { %5411 = vmatpush1.bf16.msra.mxu1 %v7240_v61  ;;  %3713 = vmatprep.mubr.f32.mxu1 %v7239_v42  ;;  %v273_v61 = vrot.slane %v252_v24, %v6545_v60 }
 0x1a9   : > { %5413 = vmatprep.subr.bf16.mxu1 %v7241_v1  ;;  %5401 = vmatprep.subr.bf16.mxu0 %v5886_v59  ;;  %v6572_v59 = vcvt.s32.f32 %v7249_v39  ;;  %v309_v1 = vrot.slane %v269_v36, %v6545_v60 }
 0x1aa   : > { %3857 = vmatprep.mubr.f32.mxu0 %v7239_v42  ;;  %v313_v29 = vrot.slane %v273_v61, %v6545_v60 }
 0x1ab   : > { %4928 = vmatmul.mubr.msk.f32.gmra.mrb[54].mxu1 %vm1135_vm0, %v4920_v9  ;;  %5403 = vmatpush1.bf16.msra.mxu0 %v5905_v45  ;;  %v6579_v45 = vld [vmem:[%s5963_s19 + $0x70] sm:$0xff]  ;;  %v335_v51 = vsub.f32 %v6572_v59, %v309_v1 }
 0x1ac   : > { %5415 = vmatpush1.bf16.msra.mxu1 %v7242_v3  ;;  %5405 = vmatprep.subr.bf16.mxu0 %v7243_v0  ;;  %v277_v3 = vrot.slane %v252_v24, %v6554_v25  ;;  %v334_v0 = vsub.f32 %v6572_v59, %v305_v55 }
 0x1ad   : > { %5417 = vmatprep.subr.bf16.mxu1 %v7244_v62  ;;  %3934 = vmatprep.mubr.f32.mxu1 %v7239_v42  ;;  %v6589_v62 = vld [vmem:[%s5679_s15 + $0x10] sm:$0x77]  ;;  %v343_v19 = vand.u32 2147483647, %v335_v51 }
 0x1ae   : > { %v342_v23 = vand.u32 2147483647, %v334_v0 }
 0x1af   : > { %5407 = vmatpush1.bf16.msra.mxu0 %v7245_v50  ;;  %v247_v50 = vmul.f32 %v6589_v62, %v244_v35  ;;  %v351_v35 = vsub.f32 1.0, %v343_v19 }
 0x1b0   : > { %5419 = vmatpush1.bf16.msra.mxu1 %v7246_v37  ;;  %5425 = vmatprep.subr.bf16.mxu0 %v6044_v17  ;;  %v6597_v17 = vld [vmem:[%s5963_s19 + $0x78] sm:$0xff]  ;;  %v317_v37 = vrot.slane %v277_v3, %v6545_v60  ;;  %v350_v2 = vsub.f32 1.0, %v342_v23 }
 0x1b1   : > { %5421 = vmatprep.subr.bf16.mxu1 %v7247_v4  ;;  %v6649_v24 = vmax.f32 %v351_v35, 0.0 }
 0x1b2   : > { %4931 = vmatmul.mubr.msk.f32.vlgmr.msra.gmra.mrb[56].mxu0 %vm1135_vm0, %v6579_v45 }
 0x1b3   : > { %5427 = vmatpush1.bf16.msra.mxu0 %v6081_v28  ;;  %3863 = vmatprep.mubr.f32.mxu0 %v7239_v42  ;;  %v253_v28 = vadd.f32 %v6537_v18, %v247_v50 }
 0x1b4   : > { %5423 = vmatpush1.bf16.msra.mxu1 %v7248_v27  ;;  %5429 = vmatprep.subr.bf16.mxu0 %v6099_v57  ;;  %v336_v27 = vsub.f32 %v6572_v59, %v313_v29  ;;  %v254_v57 = vadd.f32 %v6537_v18, %v248_v48  ;;  %v6643_v18 = vmax.f32 %v350_v2, 0.0 }
 0x1b5   : > { %5441 = vmatprep.subr.bf16.mxu1 %v6059_v12  ;;  %v6603_v4 = vpop.f32.mrb[4].mxu0  ;;  %v337_v12 = vsub.f32 %v6572_v59, %v317_v37  ;;  %v281_v41 = vrot.slane %v253_v28, %v6545_v60 }
 0x1b6   : > { %v6610_v58 = vpop.f32.mrb[5].mxu0  ;;  %4932 = vmatmul.mubr.msk.f32.gmra.mrb[58].mxu0 %vm1135_vm0, %v6597_v17  ;;  %v344_v9 = vand.u32 2147483647, %v336_v27  ;;  %v1453_v55 = vrot.slane %v6643_v18, %v5664_v8 }
 0x1b7   : > { %4933 = vmatmul.mubr.msk.f32.vlgmr.msra.gmra.mrb[56].mxu1 %vm1135_vm0, %v6579_v45  ;;  %5431 = vmatpush1.bf16.msra.mxu0 %v6123_v40  ;;  %v285_v40 = vrot.slane %v253_v28, %v6554_v25  ;;  %v321_v26 = vrot.slane %v281_v41, %v6545_v60 }
 0x1b8   : > { %5443 = vmatpush1.bf16.msra.mxu1 %v6094_v31  ;;  %3940 = vmatprep.mubr.f32.mxu1 %v7239_v42  ;;  %v1482_v37 = vmul.f32 %v1453_v55, %v6416_v34  ;;  %v1490_v35 = vmul.f32 %v1453_v55, %v6426_v14 }
 0x1b9   : > { %5445 = vmatprep.subr.bf16.mxu1 %v6112_v33  ;;  %5433 = vmatprep.subr.bf16.mxu0 %v6147_v16  ;;  %v6624_v44 = vpop.f32.mrb[6].mxu0  ;;  %v345_v33 = vand.u32 2147483647, %v337_v12  ;;  %v289_v16 = vrot.slane %v254_v57, %v6545_v60  ;;  %v325_v20 = vrot.slane %v285_v40, %v6545_v60  ;;  %v338_v61 = vsub.f32 %v6572_v59, %v321_v26 }
 0x1ba   : > { %v6627_v21 = vpop.f32.mrb[4].mxu1  ;;  %4011 = vmatprep.mubr.f32.mxu0 %v7239_v42  ;;  %v6631_v31 = vpop.f32.mrb[7].mxu0 }
 0x1bb   : > { %v6633_v15 = vpop.f32.mrb[5].mxu1  ;;  %4934 = vmatmul.mubr.msk.f32.gmra.mrb[58].mxu1 %vm1135_vm0, %v6597_v17  ;;  %5435 = vmatpush1.bf16.msra.mxu0 %v6169_v13  ;;  %v352_v13 = vsub.f32 1.0, %v344_v9  ;;  %v329_v36 = vrot.slane %v289_v16, %v6545_v60  ;;  %v339_v1 = vsub.f32 %v6572_v59, %v325_v20  ;;  %v346_v48 = vand.u32 2147483647, %v338_v61 }
 0x1bc   : > { %5447 = vmatpush1.bf16.msra.mxu1 %v6136_v63  ;;  %5437 = vmatprep.subr.bf16.mxu0 %v6187_v46  ;;  %v353_v46 = vsub.f32 1.0, %v345_v33 }
 0x1bd   : > { %5449 = vmatprep.subr.bf16.mxu1 %v6158_v47  ;;  %4088 = vmatprep.mubr.f32.mxu1 %v7239_v42  ;;  %v293_v47 = vrot.slane %v254_v57, %v6554_v25  ;;  %v6666_v3 = vmax.f32 %v352_v13, 0.0  ;;  %v340_v29 = vsub.f32 %v6572_v59, %v329_v36  ;;  %v347_v23 = vand.u32 2147483647, %v339_v1 }
 0x1be   : > { %v6647_v30 = vpop.f32.mrb[6].mxu1  ;;  %v6673_v0 = vmax.f32 %v353_v46, 0.0  ;;  %v354_v33 = vsub.f32 1.0, %v346_v48 }
 0x1bf   : > { %5439 = vmatpush1.bf16.msra.mxu0 %v6205_v22  ;;  %v6652_v63 = vpop.f32.mrb[7].mxu1  ;;  %v1818_v22 = vrot.slane %v6643_v18, %v5658_v6  ;;  %v333_v50 = vrot.slane %v293_v47, %v6545_v60  ;;  %v1461_v19 = vrot.slane %v6666_v3, %v5664_v8  ;;  %v355_v16 = vsub.f32 1.0, %v347_v23 }
 0x1c0   : > { %5451 = vmatpush1.bf16.msra.mxu1 %v6176_v11  ;;  %v1457_v11 = vrot.slane %v6649_v24, %v5664_v8  ;;  %v1465_v34 = vrot.slane %v6673_v0, %v5664_v8  ;;  %v1830_v40 = vrot.slane %v6673_v0, %v5658_v6 }
 0x1c1   : > { %5453 = vmatprep.subr.bf16.mxu1 %v6200_v5  ;;  %v1822_v5 = vrot.slane %v6649_v24, %v5658_v6  ;;  %v341_v2 = vsub.f32 %v6572_v59, %v333_v50  ;;  %v1484_v59 = vmul.f32 %v1461_v19, %v6434_v32 }
 0x1c2   : > { %4935 = vmatmul.mubr.msk.f32.vlgmr.msra.gmra.mrb[60].mxu0 %vm1135_vm0, %v6579_v45  ;;  %v1483_v12 = vmul.f32 %v1457_v11, %v6420_v10  ;;  %v348_v10 = vand.u32 2147483647, %v340_v29  ;;  %v1491_v46 = vmul.f32 %v1457_v11, %v6430_v49  ;;  %v1485_v61 = vmul.f32 %v1465_v34, %v6438_v52 }
 0x1c3   : > { %4017 = vmatprep.mubr.f32.mxu0 %v7239_v42  ;;  %v349_v1 = vand.u32 2147483647, %v341_v2  ;;  %v6710_v29 = vmax.f32 %v354_v33, 0.0  ;;  %v1492_v11 = vmul.f32 %v1461_v19, %v6445_v43 }
 0x1c4   : > { %5455 = vmatpush1.bf16.msra.mxu1 %v6209_v38  ;;  %v1826_v38 = vrot.slane %v6666_v3, %v5658_v6 }
 0x1c5   : > { %v1573_v51 = vpop.f32.mrb[8].mxu0  ;;  %v357_v48 = vsub.f32 1.0, %v349_v1 }
 0x1c6   : > { %v1847_v28 = vmul.f32 %v1818_v22, %v1573_v51  ;;  %v1575_v27 = vpop.f32.mrb[9].mxu0  ;;  %4936 = vmatmul.mubr.msk.f32.gmra.mrb[62].mxu0 %vm1135_vm0, %v6597_v17  ;;  %v356_v51 = vsub.f32 1.0, %v348_v10 }
 0x1c7   : > { %4937 = vmatmul.mubr.msk.f32.vlgmr.msra.gmra.mrb[60].mxu1 %vm1135_vm0, %v6579_v45  ;;  %v1848_v57 = vmul.f32 %v1822_v5, %v1575_v27  ;;  %v1469_v27 = vrot.slane %v6710_v29, %v5664_v8 }
 0x1c8   : > { %v6691_v41 = vadd.f32 %v1847_v28, %v1482_v37  ;;  %4094 = vmatprep.mubr.f32.mxu1 %v7239_v42  ;;  %v1493_v37 = vmul.f32 %v1465_v34, %v6449_v53  ;;  %v6726_v43 = vmax.f32 %v356_v51, 0.0 }
 0x1c9   : > { %v6696_v9 = vadd.f32 %v1848_v57, %v1483_v12  ;;  %v1579_v45 = vpop.f32.mrb[10].mxu0  ;;  %v1834_v57 = vrot.slane %v6710_v29, %v5658_v6  ;;  %v1486_v2 = vmul.f32 %v1469_v27, %v6603_v4 }
 0x1ca   : > { %v1650_v26 = vpop.f32.mrb[8].mxu1  ;;  %v1855_v20 = vmul.f32 %v1818_v22, %v1579_v45  ;;  %v1581_v13 = vpop.f32.mrb[11].mxu0  ;;  %v1477_v45 = vrot.slane %v6726_v43, %v5664_v8  ;;  %v1842_v33 = vrot.slane %v6726_v43, %v5658_v6 }
 0x1cb   : > { %v1849_v47 = vmul.f32 %v1826_v38, %v1650_v26  ;;  %v1652_v42 = vpop.f32.mrb[9].mxu1  ;;  %4938 = vmatmul.mubr.msk.f32.gmra.mrb[62].mxu1 %vm1135_vm0, %v6597_v17  ;;  %v1856_v36 = vmul.f32 %v1822_v5, %v1581_v13  ;;  %v6715_v17 = vmax.f32 %v355_v16, 0.0 }
 0x1cc   : > { %v1850_v50 = vmul.f32 %v1830_v40, %v1652_v42  ;;  %v6704_v14 = vadd.f32 %v1855_v20, %v1490_v35 }
 0x1cd   : > { %v6706_v55 = vadd.f32 %v1849_v47, %v1484_v59  ;;  %v6708_v22 = vadd.f32 %v1856_v36, %v1491_v46  ;;  %v1473_v19 = vrot.slane %v6715_v17, %v5664_v8  ;;  %v1838_v53 = vrot.slane %v6715_v17, %v5658_v6 }
 0x1ce   : > { %v6712_v32 = vadd.f32 %v1850_v50, %v1485_v61  ;;  %v1656_v49 = vpop.f32.mrb[10].mxu1  ;;  %v1494_v46 = vmul.f32 %v1469_v27, %v6624_v44  ;;  %v1496_v44 = vmul.f32 %v1477_v45, %v6647_v30 }
 0x1cf   : > { %v1857_v5 = vmul.f32 %v1826_v38, %v1656_v49  ;;  %v1658_v52 = vpop.f32.mrb[11].mxu1  ;;  %v6732_v38 = vmax.f32 %v357_v48, 0.0  ;;  %v1487_v35 = vmul.f32 %v1473_v19, %v6610_v58  ;;  %v1488_v58 = vmul.f32 %v1477_v45, %v6627_v21 }
 0x1d0   : > { %v1858_v23 = vmul.f32 %v1830_v40, %v1658_v52  ;;  %v1495_v61 = vmul.f32 %v1473_v19, %v6631_v31  ;;  %v2199_v19 = vrot.slane %v6643_v18, %v6545_v60 }
 0x1d1   : > { %v6718_v28 = vadd.f32 %v1857_v5, %v1492_v11  ;;  %v1481_v26 = vrot.slane %v6732_v38, %v5664_v8  ;;  %v1846_v13 = vrot.slane %v6732_v38, %v5658_v6 }
 0x1d2   : > { %v6722_v12 = vadd.f32 %v1858_v23, %v1493_v37 }
 0x1d3   : > { %v1489_v11 = vmul.f32 %v1481_v26, %v6633_v15  ;;  %v2203_v15 = vrot.slane %v6649_v24, %v6545_v60 }
 0x1d5   : > { %v1727_v34 = vpop.f32.mrb[12].mxu0 }
 0x1d6   : > { %v1851_v40 = vmul.f32 %v1834_v57, %v1727_v34  ;;  %v1729_v10 = vpop.f32.mrb[13].mxu0  ;;  %v1497_v34 = vmul.f32 %v1481_v26, %v6652_v63  ;;  %v2211_v63 = vrot.slane %v6673_v0, %v6545_v60 }
 0x1d7   : > { %v1852_v16 = vmul.f32 %v1838_v53, %v1729_v10 }
 0x1d8   : > { %v1867_v20 = vadd.f32 %v1851_v40, %v1486_v2 }
 0x1d9   : > { %v1868_v59 = vadd.f32 %v1852_v16, %v1487_v35  ;;  %v1733_v4 = vpop.f32.mrb[14].mxu0  ;;  %v2207_v35 = vrot.slane %v6666_v3, %v6545_v60 }
 0x1da   : > { %v1804_v47 = vpop.f32.mrb[12].mxu1  ;;  %v1859_v42 = vmul.f32 %v1834_v57, %v1733_v4  ;;  %v1735_v36 = vpop.f32.mrb[15].mxu0 }
 0x1db   : > { %v1853_v1 = vmul.f32 %v1842_v33, %v1804_v47  ;;  %v1806_v50 = vpop.f32.mrb[13].mxu1  ;;  %v1860_v49 = vmul.f32 %v1838_v53, %v1735_v36 }
 0x1dc   : > { %v1854_v51 = vmul.f32 %v1846_v13, %v1806_v50  ;;  %v1875_v5 = vadd.f32 %v1859_v42, %v1494_v46 }
 0x1dd   : > { %v1869_v52 = vadd.f32 %v1853_v1, %v1488_v58  ;;  %v1876_v37 = vadd.f32 %v1860_v49, %v1495_v61 }
 0x1de   : > { %v1870_v48 = vadd.f32 %v1854_v51, %v1489_v11  ;;  %v1810_v23 = vpop.f32.mrb[14].mxu1 }
 0x1df   : > { %v1861_v27 = vmul.f32 %v1842_v33, %v1810_v23  ;;  %v1812_v57 = vpop.f32.mrb[15].mxu1 }
 0x1e0   : > { %v1862_v21 = vmul.f32 %v1846_v13, %v1812_v57 }
 0x1e1   : > { %v1877_v2 = vadd.f32 %v1861_v27, %v1496_v44  ;;  %v2215_v44 = vrot.slane %v6710_v29, %v6545_v60 }
 0x1e2   : > { %v1878_v31 = vadd.f32 %v1862_v21, %v1497_v34  ;;  %v2227_v21 = vrot.slane %v6732_v38, %v6545_v60 }
 0x1e5   : > { %v1954_v53 = vpop.f32.mrb[16].mxu0 }
 0x1e6   : > { %v2228_v40 = vmul.f32 %v2199_v19, %v1954_v53  ;;  %v1956_v10 = vpop.f32.mrb[17].mxu0 }
 0x1e7   : > { %v2229_v30 = vmul.f32 %v2203_v15, %v1956_v10 }
 0x1e8   : > { %v2244_v45 = vadd.f32 %v2228_v40, %v6691_v41 }
 0x1e9   : > { %v2245_v33 = vadd.f32 %v2229_v30, %v6696_v9  ;;  %v1960_v16 = vpop.f32.mrb[18].mxu0 }
 0x1ea   : > { %v2031_v26 = vpop.f32.mrb[16].mxu1  ;;  %v2236_v13 = vmul.f32 %v2199_v19, %v1960_v16  ;;  %v1962_v4 = vpop.f32.mrb[19].mxu0 }
 0x1eb   : > { %v2230_v46 = vmul.f32 %v2207_v35, %v2031_v26  ;;  %v2033_v47 = vpop.f32.mrb[17].mxu1  ;;  %v2237_v42 = vmul.f32 %v2203_v15, %v1962_v4 }
 0x1ec   : > { %v2231_v36 = vmul.f32 %v2211_v63, %v2033_v47  ;;  %v2252_v58 = vadd.f32 %v2236_v13, %v6704_v14  ;;  %v2219_v14 = vrot.slane %v6715_v17, %v6545_v60 }
 0x1ed   : > { %v2246_v61 = vadd.f32 %v2230_v46, %v6706_v55  ;;  %v2253_v1 = vadd.f32 %v2237_v42, %v6708_v22  ;;  %v2223_v22 = vrot.slane %v6726_v43, %v6545_v60  ;;  %v2579_v46 = vsub.s32 3, %v7249_v39 }
 0x1ee   : > { %v2247_v41 = vadd.f32 %v2231_v36, %v6712_v32  ;;  %v2037_v50 = vpop.f32.mrb[18].mxu1 }
 0x1ef   : > { %v2238_v49 = vmul.f32 %v2207_v35, %v2037_v50  ;;  %v2039_v11 = vpop.f32.mrb[19].mxu1  ;;  %v2580_v50 = vrot.slane %v6643_v18, %v2579_v46 }
 0x1f0   : > { %v2239_v9 = vmul.f32 %v2211_v63, %v2039_v11 }
 0x1f1   : > { %v2254_v51 = vadd.f32 %v2238_v49, %v6718_v28  ;;  %v2584_v49 = vrot.slane %v6649_v24, %v2579_v46 }
 0x1f2   : > { %v2255_v23 = vadd.f32 %v2239_v9, %v6722_v12 }
 0x1f5   : > { %v2108_v27 = vpop.f32.mrb[20].mxu0 }
 0x1f6   : > { %v2232_v55 = vmul.f32 %v2215_v44, %v2108_v27  ;;  %v2110_v57 = vpop.f32.mrb[21].mxu0 }
 0x1f7   : > { %v2233_v32 = vmul.f32 %v2219_v14, %v2110_v57 }
 0x1f8   : > { %v2248_v34 = vadd.f32 %v2232_v55, %v1867_v20 }
 0x1f9   : > { %v2249_v28 = vadd.f32 %v2233_v32, %v1868_v59  ;;  %v2114_v19 = vpop.f32.mrb[22].mxu0 }
 0x1fa   : > { %v2185_v12 = vpop.f32.mrb[20].mxu1  ;;  %v2240_v15 = vmul.f32 %v2215_v44, %v2114_v19  ;;  %v2116_v53 = vpop.f32.mrb[23].mxu0 }
 0x1fb   : > { %v2234_v40 = vmul.f32 %v2223_v22, %v2185_v12  ;;  %v2187_v10 = vpop.f32.mrb[21].mxu1  ;;  %v2241_v35 = vmul.f32 %v2219_v14, %v2116_v53 }
 0x1fc   : > { %v2235_v30 = vmul.f32 %v2227_v21, %v2187_v10  ;;  %v2256_v63 = vadd.f32 %v2240_v15, %v1875_v5  ;;  %v2588_v5 = vrot.slane %v6666_v3, %v2579_v46 }
 0x1fd   : > { %v2250_v16 = vadd.f32 %v2234_v40, %v1869_v52  ;;  %v2257_v26 = vadd.f32 %v2241_v35, %v1876_v37 }
 0x1fe   : > { %v2251_v13 = vadd.f32 %v2235_v30, %v1870_v48  ;;  %v2191_v4 = vpop.f32.mrb[22].mxu1  ;;  %v2592_v48 = vrot.slane %v6673_v0, %v2579_v46 }
 0x1ff   : > { %v2242_v20 = vmul.f32 %v2223_v22, %v2191_v4  ;;  %v2193_v47 = vpop.f32.mrb[23].mxu1 }
 0x200   : > { %v2243_v42 = vmul.f32 %v2227_v21, %v2193_v47 }
 0x201   : > { %v2258_v36 = vadd.f32 %v2242_v20, %v1877_v2  ;;  %v2600_v20 = vrot.slane %v6715_v17, %v2579_v46 }
 0x202   : > { %v2259_v59 = vadd.f32 %v2243_v42, %v1878_v31 }
 0x205   : > { %v2335_v11 = vpop.f32.mrb[24].mxu0 }
 0x206   : > { %v2609_v9 = vmul.f32 %v2580_v50, %v2335_v11  ;;  %v2337_v44 = vpop.f32.mrb[25].mxu0 }
 0x207   : > { %v2610_v52 = vmul.f32 %v2584_v49, %v2337_v44 }
 0x208   : > { %v2625_v37 = vadd.f32 %v2609_v9, %v2244_v45 }
 0x209   : > { %v2626_v14 = vadd.f32 %v2610_v52, %v2245_v33  ;;  %v2341_v27 = vpop.f32.mrb[26].mxu0  ;;  %v2596_v33 = vrot.slane %v6710_v29, %v2579_v46 }
 0x20a   : > { %v2412_v55 = vpop.f32.mrb[24].mxu1  ;;  %v2617_v57 = vmul.f32 %v2580_v50, %v2341_v27  ;;  %v2343_v22 = vpop.f32.mrb[27].mxu0 }
 0x20b   : > { %v2611_v2 = vmul.f32 %v2588_v5, %v2412_v55  ;;  %v2414_v31 = vpop.f32.mrb[25].mxu1  ;;  %v2618_v32 = vmul.f32 %v2584_v49, %v2343_v22  ;;  %v2604_v49 = vrot.slane %v6726_v43, %v2579_v46 }
 0x20c   : > { %v2612_v21 = vmul.f32 %v2592_v48, %v2414_v31  ;;  %v2633_v19 = vadd.f32 %v2617_v57, %v2252_v58 }
 0x20d   : > { %v2627_v12 = vadd.f32 %v2611_v2, %v2246_v61  ;;  %v2634_v15 = vadd.f32 %v2618_v32, %v2253_v1  ;;  %v2608_v61 = vrot.slane %v6732_v38, %v2579_v46  ;;  %v7250_v46 = vld [vmem:[#allocation8_spill] sm:$0xff] }
 0x20e   : > { %v2628_v53 = vadd.f32 %v2612_v21, %v2247_v41  ;;  %v2418_v40 = vpop.f32.mrb[26].mxu1 }
 0x20f   : > { %v2619_v10 = vmul.f32 %v2588_v5, %v2418_v40  ;;  %v2420_v35 = vpop.f32.mrb[27].mxu1 }
 0x210   : > { %v2620_v30 = vmul.f32 %v2592_v48, %v2420_v35 }
 0x211   : > { %v2635_v45 = vadd.f32 %v2619_v10, %v2254_v51  ;;  %v2965_v10 = vrot.slane %v6649_v24, %v7250_v46 }
 0x212   : > { %v2636_v4 = vadd.f32 %v2620_v30, %v2255_v23 }
 0x215   : > { %v2489_v47 = vpop.f32.mrb[28].mxu0 }
 0x216   : > { %v2613_v42 = vmul.f32 %v2596_v33, %v2489_v47  ;;  %v2491_v50 = vpop.f32.mrb[29].mxu0 }
 0x217   : > { %v2614_v11 = vmul.f32 %v2600_v20, %v2491_v50 }
 0x218   : > { %v2629_v58 = vadd.f32 %v2613_v42, %v2248_v34 }
 0x219   : > { %v2630_v1 = vadd.f32 %v2614_v11, %v2249_v28  ;;  %v2495_v41 = vpop.f32.mrb[30].mxu0  ;;  %v2961_v28 = vrot.slane %v6643_v18, %v7250_v46 }
 0x21a   : > { %v2566_v9 = vpop.f32.mrb[28].mxu1  ;;  %v2621_v44 = vmul.f32 %v2596_v33, %v2495_v41  ;;  %v2497_v5 = vpop.f32.mrb[31].mxu0 }
 0x21b   : > { %v2615_v51 = vmul.f32 %v2604_v49, %v2566_v9  ;;  %v2568_v23 = vpop.f32.mrb[29].mxu1  ;;  %v2622_v52 = vmul.f32 %v2600_v20, %v2497_v5 }
 0x21c   : > { %v2616_v48 = vmul.f32 %v2608_v61, %v2568_v23  ;;  %v2637_v27 = vadd.f32 %v2621_v44, %v2256_v63  ;;  %v2969_v63 = vrot.slane %v6666_v3, %v7250_v46 }
 0x21d   : > { %v2631_v55 = vadd.f32 %v2615_v51, %v2250_v16  ;;  %v2638_v57 = vadd.f32 %v2622_v52, %v2257_v26 }
 0x21e   : > { %v2632_v22 = vadd.f32 %v2616_v48, %v2251_v13  ;;  %v2572_v2 = vpop.f32.mrb[30].mxu1  ;;  %v2973_v13 = vrot.slane %v6673_v0, %v7250_v46 }
 0x21f   : > { %v2623_v31 = vmul.f32 %v2604_v49, %v2572_v2  ;;  %v2574_v32 = vpop.f32.mrb[31].mxu1 }
 0x220   : > { %v2624_v21 = vmul.f32 %v2608_v61, %v2574_v32 }
 0x221   : > { %v2639_v34 = vadd.f32 %v2623_v31, %v2258_v36  ;;  %v2981_v31 = vrot.slane %v6715_v17, %v7250_v46 }
 0x222   : > { %v2640_v40 = vadd.f32 %v2624_v21, %v2259_v59 }
 0x225   : > { %v2716_v35 = vpop.f32.mrb[32].mxu0 }
 0x226   : > { %v2990_v30 = vmul.f32 %v2961_v28, %v2716_v35  ;;  %v2718_v33 = vpop.f32.mrb[33].mxu0 }
 0x227   : > { %v2991_v16 = vmul.f32 %v2965_v10, %v2718_v33 }
 0x228   : > { %v3006_v26 = vadd.f32 %v2990_v30, %v2625_v37 }
 0x229   : > { %v3007_v20 = vadd.f32 %v2991_v16, %v2626_v14  ;;  %v2722_v36 = vpop.f32.mrb[34].mxu0  ;;  %v2977_v14 = vrot.slane %v6710_v29, %v7250_v46 }
 0x22a   : > { %v2793_v59 = vpop.f32.mrb[32].mxu1  ;;  %v2998_v47 = vmul.f32 %v2961_v28, %v2722_v36  ;;  %v2724_v42 = vpop.f32.mrb[35].mxu0 }
 0x22b   : > { %v2992_v50 = vmul.f32 %v2969_v63, %v2793_v59  ;;  %v2795_v49 = vpop.f32.mrb[33].mxu1  ;;  %v2999_v11 = vmul.f32 %v2965_v10, %v2724_v42 }
 0x22c   : > { %v2993_v61 = vmul.f32 %v2973_v13, %v2795_v49  ;;  %v3014_v41 = vadd.f32 %v2998_v47, %v2633_v19  ;;  %v2985_v19 = vrot.slane %v6726_v43, %v7250_v46 }
 0x22d   : > { %v3008_v9 = vadd.f32 %v2992_v50, %v2627_v12  ;;  %v3015_v44 = vadd.f32 %v2999_v11, %v2634_v15 }
 0x22e   : > { %v3009_v5 = vadd.f32 %v2993_v61, %v2628_v53  ;;  %v2799_v51 = vpop.f32.mrb[34].mxu1  ;;  %v2989_v53 = vrot.slane %v6732_v38, %v7250_v46 }
 0x22f   : > { %v3000_v23 = vmul.f32 %v2969_v63, %v2799_v51  ;;  %v2801_v52 = vpop.f32.mrb[35].mxu1 }
 0x230   : > { %v3001_v37 = vmul.f32 %v2973_v13, %v2801_v52 }
 0x231   : > { %v3016_v48 = vadd.f32 %v3000_v23, %v2635_v45  ;;  %v7251_v23 = vld [vmem:[#allocation7_spill] sm:$0xff] }
 0x232   : > { %v3017_v2 = vadd.f32 %v3001_v37, %v2636_v4  ;;  %v3346_v52 = vrot.slane %v6649_v24, %v7251_v23 }
 0x235   : > { %v2870_v32 = vpop.f32.mrb[36].mxu0 }
 0x236   : > { %v2994_v21 = vmul.f32 %v2977_v14, %v2870_v32  ;;  %v2872_v28 = vpop.f32.mrb[37].mxu0 }
 0x237   : > { %v2995_v12 = vmul.f32 %v2981_v31, %v2872_v28 }
 0x238   : > { %v3010_v15 = vadd.f32 %v2994_v21, %v2629_v58 }
 0x239   : > { %v3011_v10 = vadd.f32 %v2995_v12, %v2630_v1  ;;  %v2876_v45 = vpop.f32.mrb[38].mxu0  ;;  %v3342_v1 = vrot.slane %v6643_v18, %v7251_v23 }
 0x23a   : > { %v2947_v4 = vpop.f32.mrb[36].mxu1  ;;  %v3002_v35 = vmul.f32 %v2977_v14, %v2876_v45  ;;  %v2878_v30 = vpop.f32.mrb[39].mxu0 }
 0x23b   : > { %v2996_v33 = vmul.f32 %v2985_v19, %v2947_v4  ;;  %v2949_v63 = vpop.f32.mrb[37].mxu1  ;;  %v3003_v16 = vmul.f32 %v2981_v31, %v2878_v30 }
 0x23c   : > { %v2997_v13 = vmul.f32 %v2989_v53, %v2949_v63  ;;  %v3018_v36 = vadd.f32 %v3002_v35, %v2637_v27  ;;  %v3350_v27 = vrot.slane %v6666_v3, %v7251_v23 }
 0x23d   : > { %v3012_v59 = vadd.f32 %v2996_v33, %v2631_v55  ;;  %v3019_v47 = vadd.f32 %v3003_v16, %v2638_v57 }
 0x23e   : > { %v3013_v42 = vadd.f32 %v2997_v13, %v2632_v22  ;;  %v2953_v50 = vpop.f32.mrb[38].mxu1  ;;  %v3354_v22 = vrot.slane %v6673_v0, %v7251_v23 }
 0x23f   : > { %v3004_v49 = vmul.f32 %v2985_v19, %v2953_v50  ;;  %v2955_v11 = vpop.f32.mrb[39].mxu1 }
 0x240   : > { %v3005_v58 = vmul.f32 %v2989_v53, %v2955_v11  ;;  %v3362_v11 = vrot.slane %v6715_v17, %v7251_v23 }
 0x241   : > { %v3020_v61 = vadd.f32 %v3004_v49, %v2639_v34 }
 0x242   : > { %v3021_v51 = vadd.f32 %v3005_v58, %v2640_v40 }
 0x245   : > { %v3097_v37 = vpop.f32.mrb[40].mxu0 }
 0x246   : > { %v3371_v14 = vmul.f32 %v3342_v1, %v3097_v37  ;;  %v3099_v31 = vpop.f32.mrb[41].mxu0 }
 0x247   : > { %v3372_v55 = vmul.f32 %v3346_v52, %v3099_v31 }
 0x248   : > { %v3387_v57 = vadd.f32 %v3371_v14, %v3006_v26 }
 0x249   : > { %v3388_v32 = vadd.f32 %v3372_v55, %v3007_v20  ;;  %v3103_v34 = vpop.f32.mrb[42].mxu0  ;;  %v3358_v20 = vrot.slane %v6710_v29, %v7251_v23 }
 0x24a   : > { %v3174_v40 = vpop.f32.mrb[40].mxu1  ;;  %v3379_v21 = vmul.f32 %v3342_v1, %v3103_v34  ;;  %v3105_v28 = vpop.f32.mrb[43].mxu0 }
 0x24b   : > { %v3373_v19 = vmul.f32 %v3350_v27, %v3174_v40  ;;  %v3176_v12 = vpop.f32.mrb[41].mxu1  ;;  %v3380_v53 = vmul.f32 %v3346_v52, %v3105_v28 }
 0x24c   : > { %v3374_v45 = vmul.f32 %v3354_v22, %v3176_v12  ;;  %v3395_v4 = vadd.f32 %v3379_v21, %v3014_v41  ;;  %v3366_v41 = vrot.slane %v6726_v43, %v7251_v23 }
 0x24d   : > { %v3389_v35 = vadd.f32 %v3373_v19, %v3008_v9  ;;  %v3396_v30 = vadd.f32 %v3380_v53, %v3015_v44 }
 0x24e   : > { %v3390_v33 = vadd.f32 %v3374_v45, %v3009_v5  ;;  %v3180_v63 = vpop.f32.mrb[42].mxu1  ;;  %v3370_v5 = vrot.slane %v6732_v38, %v7251_v23 }
 0x24f   : > { %v3381_v16 = vmul.f32 %v3350_v27, %v3180_v63  ;;  %v3182_v13 = vpop.f32.mrb[43].mxu1 }
 0x250   : > { %v3382_v26 = vmul.f32 %v3354_v22, %v3182_v13  ;;  %v3727_v13 = vrot.slane %v6649_v24, %v6554_v25 }
 0x251   : > { %v3397_v50 = vadd.f32 %v3381_v16, %v3016_v48 }
 0x252   : > { %v3398_v49 = vadd.f32 %v3382_v26, %v3017_v2 }
 0x255   : > { %v3251_v58 = vpop.f32.mrb[44].mxu0 }
 0x256   : > { %v3375_v1 = vmul.f32 %v3358_v20, %v3251_v58  ;;  %v3253_v52 = vpop.f32.mrb[45].mxu0 }
 0x257   : > { %v3376_v9 = vmul.f32 %v3362_v11, %v3253_v52 }
 0x258   : > { %v3391_v44 = vadd.f32 %v3375_v1, %v3010_v15 }
 0x259   : > { %v3392_v37 = vadd.f32 %v3376_v9, %v3011_v10  ;;  %v3257_v48 = vpop.f32.mrb[46].mxu0  ;;  %v3723_v10 = vrot.slane %v6643_v18, %v6554_v25 }
 0x25a   : > { %v3328_v2 = vpop.f32.mrb[44].mxu1  ;;  %v3383_v14 = vmul.f32 %v3358_v20, %v3257_v48  ;;  %v3259_v31 = vpop.f32.mrb[47].mxu0 }
 0x25b   : > { %v3377_v27 = vmul.f32 %v3366_v41, %v3328_v2  ;;  %v3330_v55 = vpop.f32.mrb[45].mxu1  ;;  %v3384_v22 = vmul.f32 %v3362_v11, %v3259_v31 }
 0x25c   : > { %v3378_v34 = vmul.f32 %v3370_v5, %v3330_v55  ;;  %v3399_v40 = vadd.f32 %v3383_v14, %v3018_v36 }
 0x25d   : > { %v3393_v21 = vadd.f32 %v3377_v27, %v3012_v59  ;;  %v3400_v28 = vadd.f32 %v3384_v22, %v3019_v47  ;;  %v3731_v59 = vrot.slane %v6666_v3, %v6554_v25 }
 0x25e   : > { %v3394_v19 = vadd.f32 %v3378_v34, %v3013_v42  ;;  %v3334_v12 = vpop.f32.mrb[46].mxu1 }
 0x25f   : > { %v3385_v53 = vmul.f32 %v3366_v41, %v3334_v12  ;;  %v3336_v45 = vpop.f32.mrb[47].mxu1 }
 0x260   : > { %v3386_v15 = vmul.f32 %v3370_v5, %v3336_v45 }
 0x261   : > { %v6815_v63 = vadd.f32 %v3385_v53, %v3020_v61  ;;  %v3735_v61 = vrot.slane %v6673_v0, %v6554_v25  ;;  %v3739_v53 = vrot.slane %v6710_v29, %v6554_v25 }
 0x262   : > { %v6817_v16 = vadd.f32 %v3386_v15, %v3021_v51 }
 0x265   : > { %v3478_v26 = vpop.f32.mrb[48].mxu0 }
 0x266   : > { %v3752_v20 = vmul.f32 %v3723_v10, %v3478_v26  ;;  %v3480_v36 = vpop.f32.mrb[49].mxu0 }
 0x267   : > { %v3753_v47 = vmul.f32 %v3727_v13, %v3480_v36 }
 0x268   : > { %v6825_v42 = vadd.f32 %v3752_v20, %v3387_v57 }
 0x269   : > { %v6829_v51 = vadd.f32 %v3753_v47, %v3388_v32  ;;  %v3484_v11 = vpop.f32.mrb[50].mxu0 }
 0x26a   : > { %v3555_v58 = vpop.f32.mrb[48].mxu1  ;;  %v3760_v1 = vmul.f32 %v3723_v10, %v3484_v11  ;;  %v3486_v52 = vpop.f32.mrb[51].mxu0 }
 0x26b   : > { %v3754_v41 = vmul.f32 %v3731_v59, %v3555_v58  ;;  %v3557_v9 = vpop.f32.mrb[49].mxu1  ;;  %v3761_v5 = vmul.f32 %v3727_v13, %v3486_v52  ;;  %v4103_v52 = vsub.s32 7, %v7249_v39 }
 0x26c   : > { %v3755_v48 = vmul.f32 %v3735_v61, %v3557_v9  ;;  %v6831_v2 = vadd.f32 %v3760_v1, %v3395_v4  ;;  %v3743_v4 = vrot.slane %v6715_v17, %v6554_v25  ;;  %v5575_v9 = vmov 1966171168  }
 0x26d   : > { %v6833_v14 = vadd.f32 %v3754_v41, %v3389_v35  ;;  %v6835_v57 = vadd.f32 %v3761_v5, %v3396_v30  ;;  %v4437_v5 = vunpack.c.l.s4 %v5575_v9  ;;  %v6948_v9 = vrot.slane %v6715_v17, %v4103_v52 }
 0x26e   : > { %v6837_v31 = vadd.f32 %v3755_v48, %v3390_v33  ;;  %v3561_v27 = vpop.f32.mrb[50].mxu1  ;;  %v3747_v33 = vrot.slane %v6726_v43, %v6554_v25 }
 0x26f   : > { %v3762_v32 = vmul.f32 %v3731_v59, %v3561_v27  ;;  %v3563_v55 = vpop.f32.mrb[51].mxu1 }
 0x270   : > { %v3763_v22 = vmul.f32 %v3735_v61, %v3563_v55  ;;  %v6878_v55 = vrot.slane %v6533_v7, %v5658_v6 }
 0x271   : > { %v6839_v34 = vadd.f32 %v3762_v32, %v3397_v50  ;;  %v3751_v50 = vrot.slane %v6732_v38, %v6554_v25 }
 0x272   : > { %v6841_v12 = vadd.f32 %v3763_v22, %v3398_v49  ;;  %v6881_v22 = vrot.slane %v6666_v3, %v4103_v52  ;;  %v6901_v3 = vrot.slane %v6550_v56, %v6545_v60 }
 0x275   : > { %v3632_v35 = vpop.f32.mrb[52].mxu0 }
 0x276   : > { %v3756_v45 = vmul.f32 %v3739_v53, %v3632_v35  ;;  %v3634_v30 = vpop.f32.mrb[53].mxu0  ;;  %v6897_v35 = vrot.slane %v6550_v56, %v5658_v6 }
 0x277   : > { %v3757_v15 = vmul.f32 %v3743_v4, %v3634_v30  ;;  %v6909_v30 = vrot.slane %v6533_v7, %v7251_v23 }
 0x278   : > { %v6850_v10 = vadd.f32 %v3756_v45, %v3391_v44  ;;  %v6905_v45 = vrot.slane %v6533_v7, %v7250_v46 }
 0x279   : > { %v6854_v49 = vadd.f32 %v3757_v15, %v3392_v37  ;;  %v3638_v13 = vpop.f32.mrb[54].mxu0  ;;  %v6921_v15 = vrot.slane %v6550_v56, %v7251_v23 }
 0x27a   : > { %v3709_v26 = vpop.f32.mrb[52].mxu1  ;;  %v3764_v20 = vmul.f32 %v3739_v53, %v3638_v13  ;;  %v3640_v36 = vpop.f32.mrb[55].mxu0  ;;  %v4438_v53 = vunpack.c.0.s8 %v4437_v5 }
 0x27b   : > { %7252 = vst [vmem:[#allocation9_spill] sm:$0xff] %v6854_v49  ;;  %v3758_v59 = vmul.f32 %v3747_v33, %v3709_v26  ;;  %v3711_v47 = vpop.f32.mrb[53].mxu1  ;;  %v3765_v61 = vmul.f32 %v3743_v4, %v3640_v36  ;;  %v4108_v4 = vrot.slane %v6649_v24, %v4103_v52  ;;  %v6927_v26 = vstv %s4166_s1 }
 0x27c   : > { %v3759_v11 = vmul.f32 %v3751_v50, %v3711_v47  ;;  %v6856_v58 = vadd.f32 %v3764_v20, %v3399_v40  ;;  %v6929_v20 = vstv %s4168_s24  ;;  %v6934_v47 = vstv %s4170_s30 }
 0x27d   : > { %v6858_v1 = vadd.f32 %v3758_v59, %v3393_v21  ;;  %v6860_v44 = vadd.f32 %v3765_v61, %v3400_v28  ;;  %v4104_v21 = vrot.slane %v6643_v18, %v4103_v52  ;;  %v6871_v28 = vrot.slane %v6533_v7, %v5664_v8 }
 0x27e   : > { %7253 = vst [vmem:[#allocation10_spill] sm:$0xff] %v6856_v58  ;;  %v6863_v37 = vadd.f32 %v3759_v11, %v3394_v19  ;;  %v3715_v41 = vpop.f32.mrb[54].mxu1  ;;  %v6889_v18 = vrot.slane %v6550_v56, %v5664_v8  ;;  %v6937_v61 = vrot.slane %v6710_v29, %v4103_v52  ;;  %v6940_v11 = vrot.slane %v6726_v43, %v4103_v52 }
 0x27f   : > { %7254 = vst [vmem:[#allocation11_spill] sm:$0xff] %v6860_v44  ;;  %v3766_v48 = vmul.f32 %v3747_v33, %v3715_v41  ;;  %v3717_v27 = vpop.f32.mrb[55].mxu1  ;;  %v6917_v33 = vrot.slane %v6550_v56, %v7250_v46  ;;  %v6945_v41 = vrot.slane %v6589_v62, %v5664_v8  ;;  %v6956_v29 = vrot.slane %v6589_v62, %v5658_v6 }
 0x280   : > { %7255 = vst [vmem:[#allocation14_spill] sm:$0xff] %v6863_v37  ;;  %v3767_v32 = vmul.f32 %v3751_v50, %v3717_v27  ;;  %v6925_v50 = vrot.slane %v6550_v56, %v6554_v25  ;;  %v6960_v43 = vrot.slane %v6589_v62, %v6545_v60 }
 0x281   : > { %v6866_v40 = vadd.f32 %v3766_v48, %v6815_v63  ;;  %v6885_v63 = vrot.slane %v6533_v7, %v6545_v60 }
 0x282   : > { %v6874_v19 = vadd.f32 %v3767_v32, %v6817_v16  ;;  %v6893_v16 = vrot.slane %v6673_v0, %v4103_v52  ;;  %v6913_v0 = vrot.slane %v6533_v7, %v6554_v25  ;;  %v6932_v7 = vsub.s32 %v4438_v53, %v7249_v39 }
 0x283   : > { %7256 = vst [vmem:[#allocation12_spill] sm:$0xff] %v6866_v40  ;;  %v6951_v39 = vrot.slane %v6732_v38, %v4103_v52  ;;  %v6974_v32 = vrot.slane %v6606_v54, %v6545_v60 }
 0x284   : > { %7257 = vst [vmem:[#allocation16_spill] sm:$0xff] %v6874_v19 }
 0x285   : > { %v3859_v24 = vpop.f32.mrb[56].mxu0  ;;  %7258 = vst [vmem:[#allocation13_spill] sm:$0xff] %v6951_v39  ;;  %7260 = vst [vmem:[#allocation17_spill] sm:$0xff] %v6974_v32 }
 0x286   : > { %v4133_v13 = vmul.f32 %v4104_v21, %v3859_v24  ;;  %v3861_v36 = vpop.f32.mrb[57].mxu0 }
 0x287   : > { %v4134_v59 = vmul.f32 %v4108_v4, %v3861_v36  ;;  %v6981_v36 = vrot.slane %v6589_v62, %v7250_v46 }
 0x288   : > { %v4149_v56 = vadd.f32 %v4133_v13, %v6825_v42  ;;  %v6964_v42 = vrot.slane %v6606_v54, %v5664_v8 }
 0x289   : > { %v4150_v5 = vadd.f32 %v4134_v59, %v6829_v51  ;;  %v3865_v48 = vpop.f32.mrb[58].mxu0  ;;  %v6970_v51 = vrot.slane %v6606_v54, %v5658_v6  ;;  %7261 = vst [vmem:[#allocation6_spill] sm:$0xff] %v6981_v36 }
 0x28a   : > { %7259 = vst [vmem:[#allocation15_spill] sm:$0xff] %v6964_v42  ;;  %v4263_v17 = vmul.f32 %v6878_v55, %v4149_v56  ;;  %v4343_v38 = vmul.f32 %v6885_v63, %v4149_v56  ;;  %v3936_v52 = vpop.f32.mrb[56].mxu1  ;;  %v3867_v27 = vpop.f32.mrb[59].mxu0  ;;  %v4215_v59 = vmul.f32 %v6871_v28, %v4149_v56  ;;  %v4391_v6 = vrot.slane %v4149_v56, 3 }
 0x28b   : > { %v4135_v53 = vmul.f32 %v6881_v22, %v3936_v52  ;;  %v4264_v24 = vmul.f32 %v6909_v30, %v4150_v5  ;;  %v4344_v8 = vmul.f32 %v6913_v0, %v4150_v5  ;;  %v3938_v13 = vpop.f32.mrb[57].mxu1  ;;  %v4216_v54 = vmul.f32 %v6905_v45, %v4150_v5 }
 0x28c   : > { %v4279_v19 = vrot.slane %v4263_v17, 1  ;;  %v4136_v44 = vmul.f32 %v6893_v16, %v3938_v13  ;;  %v4359_v40 = vrot.slane %v4343_v38, 2  ;;  %v4392_v37 = vrot.slane %v4150_v5, 3 }
 0x28d   : > { %v4151_v60 = vadd.f32 %v4135_v53, %v6833_v14  ;;  %v4280_v52 = vrot.slane %v4264_v24, 1  ;;  %v4141_v42 = vmul.f32 %v4104_v21, %v3865_v48  ;;  %v4360_v17 = vrot.slane %v4344_v8, 2 }
 0x28e   : > { %v4295_v58 = vadd.f32 %v4279_v19, %v4215_v59  ;;  %v4152_v39 = vadd.f32 %v4136_v44, %v6837_v31  ;;  %v3942_v49 = vpop.f32.mrb[58].mxu1  ;;  %v4142_v56 = vmul.f32 %v4108_v4, %v3867_v27 }
 0x28f   : > { %v4265_v62 = vmul.f32 %v6897_v35, %v4151_v60  ;;  %v4345_v46 = vmul.f32 %v6901_v3, %v4151_v60  ;;  %v6990_v36 = vpop.f32.mrb[59].mxu1  ;;  %v4217_v14 = vmul.f32 %v6889_v18, %v4151_v60  ;;  %v4296_v53 = vadd.f32 %v4280_v52, %v4216_v54 }
 0x290   : > { %v4375_v38 = vadd.f32 %v4359_v40, %v4295_v58  ;;  %v4266_v24 = vmul.f32 %v6921_v15, %v4152_v39  ;;  %v4218_v31 = vmul.f32 %v6917_v33, %v4152_v39  ;;  %v4346_v44 = vmul.f32 %v6925_v50, %v4152_v39 }
 0x291   : > { %v4281_v19 = vrot.slane %v4265_v62, 1  ;;  %v4361_v5 = vrot.slane %v4345_v46, 2  ;;  %v4376_v48 = vadd.f32 %v4360_v17, %v4296_v53  ;;  %v4157_v8 = vadd.f32 %v4141_v42, %v6831_v2 }
 0x292   : > { %v4407_v21 = vadd.f32 %v4391_v6, %v4375_v38  ;;  %v4282_v13 = vrot.slane %v4266_v24, 1  ;;  %v4362_v27 = vrot.slane %v4346_v44, 2  ;;  %v4143_v58 = vmul.f32 %v6881_v22, %v3942_v49 }
 0x293   : > { %v4297_v4 = vadd.f32 %v4281_v19, %v4217_v14  ;;  %v6999_v40 = vadd.f32 %v4142_v56, %v6835_v57  ;;  %v4408_v54 = vadd.f32 %v4392_v37, %v4376_v48  ;;  %v4393_v32 = vrot.slane %v4151_v60, 3  ;;  %v5504_v19 = vld [vmem:[%s5679_s15 + $0x10] sm:$0x77] }
 0x294   : > { %v4416_v59 = vadd.f32 %v6927_v26, %v4407_v21  ;;  %v4484_v46 = vadd.f32 %v6929_v20, %v4407_v21  ;;  %v4298_v52 = vadd.f32 %v4282_v13, %v4218_v31  ;;  %v4560_v6 = vmul.f32 %v6878_v55, %v4157_v8 }
 0x295   : > { %v4377_v62 = vadd.f32 %v4361_v5, %v4297_v4  ;;  %v4600_v2 = vmul.f32 %v6885_v63, %v4157_v8  ;;  %v4013_v42 = vpop.f32.mrb[60].mxu0  ;;  %v4417_v17 = vadd.f32 %v6927_v26, %v4408_v54  ;;  %v4485_v49 = vadd.f32 %v6929_v20, %v4408_v54 }
 0x296   : > { %v4378_v57 = vadd.f32 %v4362_v27, %v4298_v52  ;;  %v4394_v22 = vrot.slane %v4152_v39, 3  ;;  %v7007_v56 = vpop.f32.mrb[61].mxu0  ;;  %v4552_v37 = vmul.f32 %v6871_v28, %v4157_v8  ;;  %v4576_v14 = vrot.slane %v4560_v6, 1 }
 0x297   : > { %v4409_v38 = vadd.f32 %v4393_v32, %v4377_v62  ;;  %v4159_v60 = vadd.f32 %v4143_v58, %v6839_v34  ;;  %v4432_v53 = vcombine.low %v4416_v59, %v4417_v17  ;;  %v4500_v24 = vcombine.high %v4484_v46, %v4485_v49 }
 0x298   : > { %v4410_v55 = vadd.f32 %v4394_v22, %v4378_v57  ;;  %v7013_v63 = vrot.slane %v5504_v19, %v7251_v23  ;;  %v4592_v39 = vadd.f32 %v4576_v14, %v4552_v37  ;;  %v4616_v44 = vrot.slane %v4600_v2, 2 }
 0x299   : > { %v4418_v5 = vadd.f32 %v6927_v26, %v4409_v38  ;;  %v4486_v31 = vadd.f32 %v6929_v20, %v4409_v38  ;;  %v7017_v21 = vpop.f32.mrb[62].mxu0  ;;  %v7020_v28 = vrot.slane %v4432_v53, %v6932_v7  ;;  %v4648_v48 = vrot.slane %v4157_v8, 3 }
 0x29a   : > { %v4419_v34 = vadd.f32 %v6927_v26, %v4410_v55  ;;  %v4487_v32 = vadd.f32 %v6929_v20, %v4410_v55  ;;  %v4090_v13 = vpop.f32.mrb[60].mxu1  ;;  %v7024_v4 = vpop.f32.mrb[63].mxu0  ;;  %v7027_v27 = vrot.slane %v4500_v24, %v6932_v7  ;;  %v4632_v58 = vadd.f32 %v4616_v44, %v4592_v39 }
 0x29b   : > { %v4562_v59 = vmul.f32 %v6897_v35, %v4159_v60  ;;  %v4602_v46 = vmul.f32 %v6901_v3, %v4159_v60  ;;  %v4092_v54 = vpop.f32.mrb[61].mxu1  ;;  %v4561_v6 = vmul.f32 %v6909_v30, %v6999_v40  ;;  %v4601_v8 = vmul.f32 %v6913_v0, %v6999_v40 }
 0x29c   : > { %v4433_v52 = vcombine.low %v4418_v5, %v4419_v34  ;;  %v4501_v62 = vcombine.high %v4486_v31, %v4487_v32  ;;  %v4664_v2 = vadd.f32 %v4648_v48, %v4632_v58  ;;  %v4554_v17 = vmul.f32 %v6889_v18, %v4159_v60  ;;  %v5505_v32 = vld [vmem:[%s5679_s15 + $0x18] sm:$0x77] }
 0x29d   : > { %v4578_v49 = vrot.slane %v4562_v59, 1  ;;  %v4553_v57 = vmul.f32 %v6905_v45, %v6999_v40  ;;  %v4618_v22 = vrot.slane %v4602_v46, 2  ;;  %v4577_v38 = vrot.slane %v4561_v6, 1 }
 0x29e   : > { %v7039_v35 = vrot.slane %v4433_v52, %v6932_v7  ;;  %v7042_v3 = vrot.slane %v4501_v62, %v6932_v7  ;;  %v4096_v37 = vpop.f32.mrb[62].mxu1  ;;  %v4617_v14 = vrot.slane %v4601_v8, 2  ;;  %v4144_v0 = vmul.f32 %v6893_v16, %v6990_v36 }
 0x29f   : > { %v4594_v30 = vadd.f32 %v4578_v49, %v4554_v17  ;;  %v4137_v18 = vmul.f32 %v6937_v61, %v4013_v42  ;;  %v7047_v53 = vpop.f32.mrb[63].mxu1  ;;  %v4593_v55 = vadd.f32 %v4577_v38, %v4553_v57  ;;  %v4139_v5 = vmul.f32 %v6940_v11, %v4090_v13  ;;  %v7262_v17 = vld [vmem:[#allocation17_spill] sm:$0xff] }
 0x2a0   : > { %v4464_v45 = vcombine.low %v7020_v28, %v7039_v35  ;;  %v4532_v24 = vcombine.low %v7027_v27, %v7042_v3  ;;  %v4160_v39 = vadd.f32 %v4144_v0, %v6841_v12  ;;  %v7057_v16 = vrot.slane %v5504_v19, %v6554_v25 }
 0x2a1   : > { %v4634_v31 = vadd.f32 %v4618_v22, %v4594_v30  ;;  %v4153_v44 = vadd.f32 %v4137_v18, %v6850_v10  ;;  %v4633_v36 = vadd.f32 %v4617_v14, %v4593_v55  ;;  %v4649_v42 = vrot.slane %v6999_v40, 3  ;;  %v7263_v22 = vld [vmem:[#allocation9_spill] sm:$0xff]  ;;  %v7264_v14 = vld [vmem:[#allocation15_spill] sm:$0xff] }
 0x2a2   : > { %v7061_v34 = vadd.f32 %v4139_v5, %v6858_v1  ;;  %v7065_v48 = vrot.slane %v5505_v32, %v7251_v23  ;;  %v4650_v58 = vrot.slane %v4159_v60, 3  ;;  %v4563_v13 = vmul.f32 %v6921_v15, %v4160_v39  ;;  %v7265_v55 = vld [vmem:[#allocation13_spill] sm:$0xff] }
 0x2a3   : > { %v4603_v12 = vmul.f32 %v6925_v50, %v4160_v39  ;;  %v7070_v10 = vrot.slane %v5505_v32, %v6554_v25  ;;  %v4673_v19 = vadd.f32 %v6934_v47, %v4664_v2  ;;  %v4665_v59 = vadd.f32 %v4649_v42, %v4633_v36 }
 0x2a4   : > { %v4267_v40 = vmul.f32 %v6956_v29, %v4153_v44  ;;  %v4138_v1 = vmul.f32 %v6948_v9, %v7007_v56  ;;  %v4666_v46 = vadd.f32 %v4650_v58, %v4634_v31  ;;  %v4555_v23 = vmul.f32 %v6917_v33, %v4160_v39 }
 0x2a5   : > { %v4579_v52 = vrot.slane %v4563_v13, 1  ;;  %v4347_v60 = vmul.f32 %v6960_v43, %v4153_v44  ;;  %v4674_v15 = vadd.f32 %v6934_v47, %v4665_v59  ;;  %v4651_v50 = vrot.slane %v4160_v39, 3  ;;  %v7266_v59 = vld [vmem:[#allocation6_spill] sm:$0xff] }
 0x2a6   : > { %v4219_v25 = vmul.f32 %v6945_v41, %v4153_v44  ;;  %v4283_v62 = vrot.slane %v4267_v40, 1  ;;  %v4619_v8 = vrot.slane %v4603_v12, 2  ;;  %v4269_v2 = vmul.f32 %v6970_v51, %v7061_v34 }
 0x2a7   : > { %v4595_v6 = vadd.f32 %v4579_v52, %v4555_v23  ;;  %v4349_v56 = vmul.f32 %v7262_v17, %v7061_v34  ;;  %v4689_v49 = vcombine.low %v4673_v19, %v4674_v15  ;;  %v4363_v33 = vrot.slane %v4347_v60, 2  ;;  %v7267_v23 = vld [vmem:[#allocation14_spill] sm:$0xff]  ;;  %v7268_v15 = vld [vmem:[#allocation8_spill] sm:$0xff] }
 0x2a8   : > { %v4299_v57 = vadd.f32 %v4283_v62, %v4219_v25  ;;  %v4154_v38 = vadd.f32 %v4138_v1, %v7263_v22  ;;  %v4221_v0 = vmul.f32 %v7264_v14, %v7061_v34  ;;  %v4285_v18 = vrot.slane %v4269_v2, 1  ;;  %v7269_v22 = vld [vmem:[#allocation10_spill] sm:$0xff] }
 0x2a9   : > { %v4635_v30 = vadd.f32 %v4619_v8, %v4595_v6  ;;  %v4140_v5 = vmul.f32 %v7265_v55, %v4092_v54  ;;  %v4675_v31 = vadd.f32 %v6934_v47, %v4666_v46  ;;  %v4395_v36 = vrot.slane %v4153_v44, 3 }
 0x2aa   : > { %v4379_v39 = vadd.f32 %v4363_v33, %v4299_v57  ;;  %v4268_v42 = vmul.f32 %v7013_v63, %v4154_v38  ;;  %v4301_v13 = vadd.f32 %v4285_v18, %v4221_v0  ;;  %v4365_v12 = vrot.slane %v4349_v56, 2 }
 0x2ab   : > { %v4667_v58 = vadd.f32 %v4651_v50, %v4635_v30  ;;  %v4348_v19 = vmul.f32 %v7057_v16, %v4154_v38  ;;  %v4220_v40 = vmul.f32 %v7266_v59, %v4154_v38  ;;  %v4156_v52 = vadd.f32 %v4140_v5, %v7267_v23  ;;  %v7270_v30 = vld [vmem:[#allocation12_spill] sm:$0xff] }
 0x2ac   : > { %v4284_v1 = vrot.slane %v4268_v42, 1  ;;  %v4145_v60 = vmul.f32 %v6937_v61, %v7017_v21  ;;  %v4411_v46 = vadd.f32 %v4395_v36, %v4379_v39  ;;  %v7097_v44 = vrot.slane %v5505_v32, %v7268_v15 }
 0x2ad   : > { %v4676_v54 = vadd.f32 %v6934_v47, %v4667_v58  ;;  %v4147_v50 = vmul.f32 %v6940_v11, %v4096_v37  ;;  %v4381_v25 = vadd.f32 %v4365_v12, %v4301_v13  ;;  %v4397_v62 = vrot.slane %v7061_v34, 3 }
 0x2ae   : > { %v4300_v6 = vadd.f32 %v4284_v1, %v4220_v40  ;;  %v4364_v8 = vrot.slane %v4348_v19, 2  ;;  %v7102_v2 = vrot.slane %v4689_v49, %v6932_v7  ;;  %v4270_v57 = vmul.f32 %v7065_v48, %v4156_v52 }
 0x2af   : > { %v4690_v56 = vcombine.low %v4675_v31, %v4676_v54  ;;  %v4350_v61 = vmul.f32 %v7070_v10, %v4156_v52  ;;  %v4396_v33 = vrot.slane %v4154_v38, 3  ;;  %v4161_v32 = vadd.f32 %v4145_v60, %v7269_v22 }
 0x2b0   : > { %v4380_v21 = vadd.f32 %v4364_v8, %v4300_v6  ;;  %v7108_v0 = vadd.f32 %v4147_v50, %v7270_v30  ;;  %v4420_v37 = vadd.f32 %v6927_v26, %v4411_v46  ;;  %v4222_v34 = vmul.f32 %v7097_v44, %v4156_v52 }
 0x2b1   : > { %v7111_v11 = vrot.slane %v4690_v56, %v6932_v7  ;;  %v4286_v49 = vrot.slane %v4270_v57, 1  ;;  %v4488_v18 = vadd.f32 %v6929_v20, %v4411_v46  ;;  %v4413_v5 = vadd.f32 %v4397_v62, %v4381_v25  ;;  %v7271_v56 = vld [vmem:[#allocation11_spill] sm:$0xff] }
 0x2b2   : > { %v4412_v31 = vadd.f32 %v4396_v33, %v4380_v21  ;;  %v4564_v39 = vmul.f32 %v6956_v29, %v4161_v32  ;;  %v4366_v42 = vrot.slane %v4350_v61, 2  ;;  %v4604_v19 = vmul.f32 %v6960_v43, %v4161_v32 }
 0x2b3   : > { %v4721_v38 = vcombine.low %v7102_v2, %v7111_v11  ;;  %v4302_v36 = vadd.f32 %v4286_v49, %v4222_v34  ;;  %v4398_v1 = vrot.slane %v4156_v52, 3  ;;  %v4556_v23 = vmul.f32 %v6945_v41, %v4161_v32  ;;  %v7272_v49 = vld [vmem:[#allocation16_spill] sm:$0xff] }
 0x2b4   : > { %v4421_v58 = vadd.f32 %v6927_v26, %v4412_v31  ;;  %v4489_v13 = vadd.f32 %v6929_v20, %v4412_v31  ;;  %v4580_v12 = vrot.slane %v4564_v39, 1  ;;  %v4566_v60 = vmul.f32 %v6970_v51, %v7108_v0 }
 0x2b5   : > { %v4382_v40 = vadd.f32 %v4366_v42, %v4302_v36  ;;  %v4422_v29 = vadd.f32 %v6927_v26, %v4413_v5  ;;  %v4490_v54 = vadd.f32 %v6929_v20, %v4413_v5  ;;  %v4146_v6 = vmul.f32 %v6948_v9, %v7024_v4 }
 0x2b6   : > { %v4434_v46 = vcombine.low %v4420_v37, %v4421_v58  ;;  %v4502_v15 = vcombine.high %v4488_v18, %v4489_v13  ;;  %v4596_v25 = vadd.f32 %v4580_v12, %v4556_v23  ;;  %v4582_v62 = vrot.slane %v4566_v60, 1 }
 0x2b7   : > { %v4414_v50 = vadd.f32 %v4398_v1, %v4382_v40  ;;  %v4620_v43 = vrot.slane %v4604_v19, 2  ;;  %v4558_v52 = vmul.f32 %v7264_v14, %v7108_v0  ;;  %v4606_v8 = vmul.f32 %v7262_v17, %v7108_v0 }
 0x2b8   : > { %v4162_v57 = vadd.f32 %v4146_v6, %v7271_v56  ;;  %v4456_v61 = vrot.slane %v4434_v46, %v6932_v7  ;;  %v4524_v21 = vrot.slane %v4502_v15, %v6932_v7  ;;  %v4148_v9 = vmul.f32 %v7265_v55, %v7047_v53 }
 0x2b9   : > { %v4423_v41 = vadd.f32 %v6927_v26, %v4414_v50  ;;  %v4491_v51 = vadd.f32 %v6929_v20, %v4414_v50  ;;  %v4636_v22 = vadd.f32 %v4620_v43, %v4596_v25  ;;  %v4598_v14 = vadd.f32 %v4582_v62, %v4558_v52 }
 0x2ba   : > { %v4652_v30 = vrot.slane %v4161_v32, 3  ;;  %v4565_v26 = vmul.f32 %v7013_v63, %v4162_v57  ;;  %v4605_v20 = vmul.f32 %v7057_v16, %v4162_v57  ;;  %v4622_v34 = vrot.slane %v4606_v8, 2 }
 0x2bb   : > { %v4435_v4 = vcombine.low %v4422_v29, %v4423_v41  ;;  %v4503_v33 = vcombine.high %v4490_v54, %v4491_v51  ;;  %v4164_v18 = vadd.f32 %v4148_v9, %v7272_v49  ;;  %v4472_v53 = vrot.slane %v4464_v45, %v6932_v7 }
 0x2bc   : > { %v4557_v55 = vmul.f32 %v7266_v59, %v4162_v57  ;;  %v4581_v32 = vrot.slane %v4565_v26, 1  ;;  %v4668_v31 = vadd.f32 %v4652_v30, %v4636_v22  ;;  %v4638_v16 = vadd.f32 %v4622_v34, %v4598_v14 }
 0x2bd   : > { %v4463_v17 = vrot.slane %v4435_v4, %v6932_v7  ;;  %v4531_v37 = vrot.slane %v4503_v33, %v6932_v7  ;;  %v4621_v36 = vrot.slane %v4605_v20, 2  ;;  %v4567_v42 = vmul.f32 %v7065_v48, %v4164_v18 }
 0x2be   : > { %v4597_v39 = vadd.f32 %v4581_v32, %v4557_v55  ;;  %v4607_v58 = vmul.f32 %v7070_v10, %v4164_v18  ;;  %v4540_v28 = vrot.slane %v4532_v24, %v6932_v7  ;;  %v4654_v59 = vrot.slane %v7108_v0, 3 }
 0x2bf   : > { %v4465_v5 = vcombine.low %v4456_v61, %v4463_v17  ;;  %v4533_v63 = vcombine.low %v4524_v21, %v4531_v37  ;;  %v4653_v48 = vrot.slane %v4162_v57, 3  ;;  %v4559_v10 = vmul.f32 %v7097_v44, %v4164_v18 }
 0x2c0   : > { %v4637_v13 = vadd.f32 %v4621_v36, %v4597_v39  ;;  %v4583_v12 = vrot.slane %v4567_v42, 1  ;;  %v4677_v27 = vadd.f32 %v6934_v47, %v4668_v31  ;;  %v4670_v3 = vadd.f32 %v4654_v59, %v4638_v16 }
 0x2c1   : > { %v4479_v35 = vrot.slane %v4465_v5, %v6932_v7  ;;  %v4547_v45 = vrot.slane %v4533_v63, %v6932_v7  ;;  %v4623_v23 = vrot.slane %v4607_v58, 2  ;;  %v4655_v29 = vrot.slane %v4164_v18, 3 }
 0x2c2   : > { %v4669_v24 = vadd.f32 %v4653_v48, %v4637_v13  ;;  %v4599_v1 = vadd.f32 %v4583_v12, %v4559_v10  ;;  %v4679_v54 = vadd.f32 %v6934_v47, %v4670_v3  ;;  %v4729_v43 = vrot.slane %v4721_v38, %v6932_v7 }
 0x2c3   : > { %v4480_v19 = vcombine.low %v4472_v53, %v4479_v35  ;;  %v4548_v40 = vcombine.low %v4540_v28, %v4547_v45 }
 0x2c4   : > { %v4678_v0 = vadd.f32 %v6934_v47, %v4669_v24  ;;  %v4639_v60 = vadd.f32 %v4623_v23, %v4599_v1 }
 0x2c5   : > { %4482 = vst [vmem:[%s213_s7] ss:$4 sm:$0xff] %v4480_v19  ;;  %4939 = vst [vmem:[%s213_s7 + $0x1] ss:$4 sm:$0xff] %v4548_v40 }
 0x2c6   : > { %v4691_v46 = vcombine.low %v4677_v27, %v4678_v0  ;;  %v4671_v15 = vadd.f32 %v4655_v29, %v4639_v60 }
 0x2c8   : > { %v4680_v44 = vadd.f32 %v6934_v47, %v4671_v15  ;;  %v4713_v50 = vrot.slane %v4691_v46, %v6932_v7 }
 0x2ca   : > { %v4692_v25 = vcombine.low %v4679_v54, %v4680_v44 }
 0x2cc   : > { %v4720_v62 = vrot.slane %v4692_v25, %v6932_v7 }
 0x2ce   : > { %v4722_v6 = vcombine.low %v4713_v50, %v4720_v62 }
 0x2d0   : > { %v4736_v52 = vrot.slane %v4722_v6, %v6932_v7 }
 0x2d2   : > { %v4737_v41 = vcombine.low %v4729_v43, %v4736_v52 }
 0x2d4   : > { %4940 = vst [vmem:[%s213_s7 + $0x2] ss:$4 sm:$0xff] %v4737_v41 }
 0x2d5 PF: > { %s24_s27 = sadd.s32 1, %s5570_s27   ;;  %s7273_s1 = smov %s5562_s25 }
 0x2d6   : > { %p21_p3 = scmp.ge.s32.totalorder %s24_s27, 6   ;;  %s7274_s24 = smov %s5566_s26 }
 0x2d7   : > { %s7275_s25 = smov %s7278_s28  ;;  %s7276_s26 = smov %s7282_s29 }
 0x2d8   :  { %23 = sbr.rel (!%p21_p3) target bundleno = 28 (0x1c), region = 70 }

</bundles_post_ra>
